<compile_context>
chip_gen: v7x
topology: tpu7x:2x2x1
jax: 0.10.0
libtpu: 0.0.40
codegen_flags: <defaults>
</compile_context>

<pallas_src>
import functools
import math

import jax
import jax.numpy as jnp
import numpy as np
from jax import lax
from jax.experimental import pallas as pl
from jax.experimental.pallas import tpu as pltpu

# ----------------------------- hyper-parameters (module defaults) --------------
NUM_PATCHES = 13
NUM_CLASSES = 3
DIM = 9
DEPTH = 3
HEADS = 3
MLP_DIM = 12
HH_DIM = 7
HEAD_DIM = DIM // HEADS
LN_EPS = 1e-5
ATTN_SCALE = 1.0 / math.sqrt(HEAD_DIM)

PAD = 16          # narrow slab / activation lane width
OUT_PAD = 128     # wide slab / output lane width

# Fused QKV lane layout inside the 128-lane projection result.
Q_BASE, K_BASE, V_BASE = 0, 16, 32

# Wide slab (128 lanes) row layout.
W_STRIDE = 24                       # per-layer: W_qkv (16 rows) + b_qkv (1 row), padded
W_QKV, W_BQKV = 0, 16
W_HEAD = DEPTH * W_STRIDE           # 72
W_HW2 = W_HEAD                      # classifier second linear, lane-dense
W_HB2 = W_HEAD + 16
W_FIX = W_HEAD + 24                 # 96: start of batch-dependent region (mask, selector)

# Narrow slab (16 lanes) row layout.
N_STRIDE = 56                       # per-layer: W_O(16) + W1(16) + W2(16) + 7 vec rows
N_WO, N_W1, N_W2 = 0, 16, 32
N_OPB, N_LN1W, N_LN1B, N_B1, N_B2, N_LN2W, N_LN2B = 48, 49, 50, 51, 52, 53, 54
N_HEAD = DEPTH * N_STRIDE           # 168
N_HW1 = N_HEAD
N_HB1 = N_HEAD + 16


def _round8(n):
    return ((n + 7) // 8) * 8


N_FIX = _round8(N_HB1 + 1)          # 192: start of the positional table


def make_layout(batch_block):
    """Static row offsets for the batch-block-dependent slab regions."""
    Tp = _round8(batch_block * NUM_PATCHES)
    mask = W_FIX
    sel = mask + Tp
    return {
        "mask": mask,
        "sel": sel,
        "wide_rows": _round8(sel + 8),
        "pos": N_FIX,
        "pos_stride": Tp,
        "narrow_rows": N_FIX + NUM_CLASSES * Tp,
    }


# ----------------------------- Pallas kernel -----------------------------------
def transformer_kernel(x_ref, wide_ref, narrow_ref, out_ref, *, batch_block, lay):
    f32 = jnp.float32
    T = batch_block * NUM_PATCHES
    inv_d = 1.0 / DIM

    def mm(a, b):                    # MXU matmul
        return jnp.dot(a, b, preferred_element_type=f32)

    def mm_bt(a, b):                 # a @ b.T (contract the lane axis of both operands)
        return lax.dot_general(a, b, (((1,), (1,)), ((), ())),
                               preferred_element_type=f32)

    def nrow(r):                     # (1, 16) vector row from the narrow slab
        return narrow_ref[r:r + 1, :]

    def nmat(r):                     # (16, 16) matrix from the narrow slab
        return narrow_ref[r:r + 16, :]

    def layernorm(t, w, b):
        # Two independent XLU lane reductions (zero MXU pushes, no mean->var serial dep);
        # padded lanes of t are exactly zero so sums over 16 lanes == sums over DIM.
        mu = jnp.sum(t, axis=-1, keepdims=True) * inv_d
        ex2 = jnp.sum(t * t, axis=-1, keepdims=True) * inv_d
        var = ex2 - mu * mu
        return (t - mu) * lax.rsqrt(var + LN_EPS) * w + b   # padded lanes -> 0 (w=b=0)

    # Per-head lane masks over the concatenated-head 16-lane layout (hoisted constants).
    lane = lax.broadcasted_iota(jnp.int32, (1, PAD), 1)
    hmask = [((lane >= hh * HEAD_DIM) & (lane < (hh + 1) * HEAD_DIM)).astype(f32)
             for hh in range(HEADS)]

    if batch_block > 1:              # host-precomputed block-diagonal cross-batch mask
        amask = wide_ref[lay["mask"]:lay["mask"] + T, 0:T]

    # ---- patch embedding (torch.bmm): h[t] = sum_c x[t, c] * pos[t % P, c, :] --------
    x = x_ref[0]                                          # (T, NUM_CLASSES)
    h = jnp.zeros((T, PAD), f32)
    for c in range(NUM_CLASSES):
        p0 = lay["pos"] + c * lay["pos_stride"]
        h = h + x[:, c:c + 1] * narrow_ref[p0:p0 + T, :]  # padded lanes stay zero

    # ---- DEPTH post-norm encoder layers ----------------------------------------------
    for l in range(DEPTH):
        wb = l * W_STRIDE
        nb = l * N_STRIDE

        # Fused QKV projection for all heads: one (16 -> 128 lane) MXU push + one bias add.
        qkv = mm(h, wide_ref[wb + W_QKV:wb + W_QKV + PAD, :]) \
            + wide_ref[wb + W_BQKV:wb + W_BQKV + 1, :]
        q_all = qkv[:, Q_BASE:Q_BASE + PAD]               # heads concatenated on lanes 0..8
        k_all = qkv[:, K_BASE:K_BASE + PAD]
        v_all = qkv[:, V_BASE:V_BASE + PAD]

        ctx = jnp.zeros((T, PAD), f32)
        for hh in range(HEADS):
            # Zeroed non-head lanes on q kill cross-head terms in the contraction.
            s = mm_bt(q_all * hmask[hh], k_all) * ATTN_SCALE
            if batch_block > 1:
                s = s + amask
            s = s - jnp.max(s, axis=-1, keepdims=True)
            e = jnp.exp(s)
            pr = e * pl.reciprocal(jnp.sum(e, axis=-1, keepdims=True), approx=True)
            ctx = ctx + mm(pr, v_all * hmask[hh])         # lands on head hh's lanes only

        attn = mm(ctx, nmat(nb + N_WO)) + nrow(nb + N_OPB)   # single fused out-projection

        h = layernorm(h + attn, nrow(nb + N_LN1W), nrow(nb + N_LN1B))

        ff = jnp.maximum(mm(h, nmat(nb + N_W1)) + nrow(nb + N_B1), 0.0)
        ff = mm(ff, nmat(nb + N_W2)) + nrow(nb + N_B2)

        h = layernorm(h + ff, nrow(nb + N_LN2W), nrow(nb + N_LN2B))

    # ---- CLS gather (one-hot MXU select) + classifier head ---------------------------
    sel = wide_ref[lay["sel"]:lay["sel"] + 8, 0:T]        # (8, T) one-hot rows
    cls = mm(sel, h)                                      # (8, 16): CLS token per element
    z = jnp.maximum(mm(cls, nmat(N_HW1)) + nrow(N_HB1), 0.0)
    out = mm(z, wide_ref[W_HW2:W_HW2 + PAD, :]) + wide_ref[W_HB2:W_HB2 + 1, :]
    out_ref[0] = out                                      # dense (8, 128) store


# ----------------------------- host-side parameter packing ---------------------
def pack_params(p, batch_block):
    """One-time weight layout prep (pure layout plumbing, no forward compute)."""
    lay = make_layout(batch_block)
    T = batch_block * NUM_PATCHES
    Tp = lay["pos_stride"]

    wide = np.zeros((lay["wide_rows"], OUT_PAD), np.float32)
    narrow = np.zeros((lay["narrow_rows"], PAD), np.float32)

    for l in range(DEPTH):
        ipw = np.asarray(p["ipw"][l])
        ipb = np.asarray(p["ipb"][l])
        wb = l * W_STRIDE
        for part, base in enumerate((Q_BASE, K_BASE, V_BASE)):
            w_part = ipw[part * DIM:(part + 1) * DIM, :]             # (DIM, DIM)
            b_part = ipb[part * DIM:(part + 1) * DIM]
            wide[wb + W_QKV:wb + W_QKV + DIM, base:base + DIM] = w_part.T
            wide[wb + W_BQKV, base:base + DIM] = b_part

        nb = l * N_STRIDE
        narrow[nb + N_WO:nb + N_WO + DIM, :DIM] = np.asarray(p["opw"][l]).T
        narrow[nb + N_W1:nb + N_W1 + DIM, :MLP_DIM] = np.asarray(p["l1w"][l]).T
        narrow[nb + N_W2:nb + N_W2 + MLP_DIM, :DIM] = np.asarray(p["l2w"][l]).T
        narrow[nb + N_OPB, :DIM] = np.asarray(p["opb"][l])
        narrow[nb + N_LN1W, :DIM] = np.asarray(p["ln1w"][l])
        narrow[nb + N_LN1B, :DIM] = np.asarray(p["ln1b"][l])
        narrow[nb + N_B1, :MLP_DIM] = np.asarray(p["l1b"][l])
        narrow[nb + N_B2, :DIM] = np.asarray(p["l2b"][l])
        narrow[nb + N_LN2W, :DIM] = np.asarray(p["ln2w"][l])
        narrow[nb + N_LN2B, :DIM] = np.asarray(p["ln2b"][l])

    # classifier head
    narrow[N_HW1:N_HW1 + DIM, :HH_DIM] = np.asarray(p["hw1"]).T
    narrow[N_HB1, :HH_DIM] = np.asarray(p["hb1"]).reshape(-1)
    wide[W_HW2:W_HW2 + HH_DIM, :NUM_CLASSES] = np.asarray(p["hw2"]).T
    wide[W_HB2, :NUM_CLASSES] = np.asarray(p["hb2"]).reshape(-1)

    # positional table: row (pos + c*Tp + t) holds pos_embedding[t % P, c, :]
    pos = np.asarray(p["pos"])                                        # (P, C, D)
    for c in range(NUM_CLASSES):
        narrow[lay["pos"] + c * Tp:lay["pos"] + c * Tp + T, :DIM] = \
            np.tile(pos[:, c, :], (batch_block, 1))

    # block-diagonal cross-batch additive attention mask (all zeros if batch_block == 1)
    tok = np.arange(T) // NUM_PATCHES
    wide[lay["mask"]:lay["mask"] + T, :T] = \
        np.where(tok[:, None] == tok[None, :], 0.0, -1e9).astype(np.float32)

    # one-hot CLS row selector
    for i in range(batch_block):
        wide[lay["sel"] + i, i * NUM_PATCHES] = 1.0

    return {"wide": jnp.asarray(wide), "narrow": jnp.asarray(narrow)}


# ----------------------------- wrapper ------------------------------------------
def transformer_forward(x, wide, narrow, *, num_batch_blocks=1):
    """num_batch_blocks=1: whole batch in one grid point (best on 1-TC v5e/v6e).
    num_batch_blocks=B: leading 'parallel' batch grid axis (both TensorCores on v7x)."""
    B, P, C = x.shape
    assert P == NUM_PATCHES and C == NUM_CLASSES
    assert B % num_batch_blocks == 0
    bb = B // num_batch_blocks
    lay = make_layout(bb)
    assert wide.shape == (lay["wide_rows"], OUT_PAD)
    assert narrow.shape == (lay["narrow_rows"], PAD)
    T = bb * NUM_PATCHES
    xg = x.reshape(num_batch_blocks, T, C)

    out = pl.pallas_call(
        functools.partial(transformer_kernel, batch_block=bb, lay=lay),
        out_shape=jax.ShapeDtypeStruct((num_batch_blocks, 8, OUT_PAD), jnp.float32),
        grid=(num_batch_blocks,),
        in_specs=[
            pl.BlockSpec((1, T, C), lambda b: (b, 0, 0)),
            pl.BlockSpec(wide.shape, lambda b: (0, 0)),
            pl.BlockSpec(narrow.shape, lambda b: (0, 0)),
        ],
        out_specs=pl.BlockSpec((1, 8, OUT_PAD), lambda b: (b, 0, 0)),
        compiler_params=pltpu.CompilerParams(dimension_semantics=("parallel",)),
    )(xg, wide, narrow)

    # CLS prediction of each batch element, first NUM_CLASSES lanes (pure slicing).
    return out[:, :bb, :NUM_CLASSES].reshape(B, NUM_CLASSES)


# ----------------------------- deterministic parameter init ---------------------
def init_params(key):
    ks = jax.random.split(key, 16)

    def u(k, shape, scale):
        return jax.random.uniform(k, shape, jnp.float32, -1.0, 1.0) * scale

    p = {}
    p["pos"] = u(ks[0], (NUM_PATCHES, NUM_CLASSES, DIM), 0.2)
    p["ipw"] = u(ks[1], (DEPTH, 3 * DIM, DIM), 1.0 / math.sqrt(DIM))
    p["ipb"] = u(ks[2], (DEPTH, 3 * DIM), 0.1)
    p["opw"] = u(ks[3], (DEPTH, DIM, DIM), 1.0 / math.sqrt(DIM))
    p["opb"] = u(ks[4], (DEPTH, DIM), 0.1)
    p["ln1w"] = jnp.ones((DEPTH, DIM), jnp.float32)
    p["ln1b"] = jnp.zeros((DEPTH, DIM), jnp.float32)
    p["l1w"] = u(ks[5], (DEPTH, MLP_DIM, DIM), 1.0 / math.sqrt(DIM))
    p["l1b"] = u(ks[6], (DEPTH, MLP_DIM), 0.1)
    p["l2w"] = u(ks[7], (DEPTH, DIM, MLP_DIM), 1.0 / math.sqrt(MLP_DIM))
    p["l2b"] = u(ks[8], (DEPTH, DIM), 0.1)
    p["ln2w"] = jnp.ones((DEPTH, DIM), jnp.float32)
    p["ln2b"] = jnp.zeros((DEPTH, DIM), jnp.float32)
    p["hw1"] = u(ks[9], (HH_DIM, DIM), 1.0 / math.sqrt(DIM))
    p["hb1"] = u(ks[10], (1, HH_DIM), 0.1)
    p["hw2"] = u(ks[11], (NUM_CLASSES, HH_DIM), 1.0 / math.sqrt(HH_DIM))
    p["hb2"] = u(ks[12], (1, NUM_CLASSES), 0.1)
    return p


# ----------------------------- pure-JAX reference (for verification) ------------
def reference_forward(x, p):
    def layer_norm(t, w, b):
        mu = jnp.mean(t, axis=-1, keepdims=True)
        var = jnp.mean((t - mu) ** 2, axis=-1, keepdims=True)
        return (t - mu) / jnp.sqrt(var + LN_EPS) * w + b

    h = jnp.einsum("bpc,pcd->bpd", x, p["pos"])
    B, P, D = h.shape
    for l in range(DEPTH):
        qkv = h @ p["ipw"][l].T + p["ipb"][l]
        q, k, v = jnp.split(qkv, 3, axis=-1)

        def split_heads(t):
            return t.reshape(B, P, HEADS, HEAD_DIM).transpose(0, 2, 1, 3)

        qh, kh, vh = map(split_heads, (q, k, v))
        s = jnp.einsum("bhpd,bhqd->bhpq", qh, kh) * ATTN_SCALE
        a = jax.nn.softmax(s, axis=-1)
        o = jnp.einsum("bhpq,bhqd->bhpd", a, vh).transpose(0, 2, 1, 3).reshape(B, P, D)
        o = o @ p["opw"][l].T + p["opb"][l]
        h = layer_norm(h + o, p["ln1w"][l], p["ln1b"][l])
        ff = jnp.maximum(h @ p["l1w"][l].T + p["l1b"][l], 0.0)
        ff = ff @ p["l2w"][l].T + p["l2b"][l]
        h = layer_norm(h + ff, p["ln2w"][l], p["ln2b"][l])
    cls = h[:, 0]
    z = jnp.maximum(cls @ p["hw1"].T + p["hb1"], 0.0)
    return z @ p["hw2"].T + p["hb2"]


# ----------------------------- main ----------------------------------------------
if __name__ == "__main__":
    key = jax.random.PRNGKey(0)
    k_x, k_p = jax.random.split(key)
    batch = 2
    x = jax.random.normal(k_x, (batch, NUM_PATCHES, NUM_CLASSES), jnp.float32)
    params = init_params(k_p)
    ref = jax.block_until_ready(reference_forward(x, params))

    # Default path (v5e/v6e): single grid point over the flattened B*P token axis.
    packed1 = pack_params(params, batch_block=batch)
    fwd1 = jax.jit(functools.partial(transformer_forward, num_batch_blocks=1))
    out1 = jax.block_until_ready(fwd1(x, packed1["wide"], packed1["narrow"]))
    assert out1.shape == (batch, NUM_CLASSES), out1.shape
    # 2e-3 tolerance: approx (EUP) softmax reciprocal + rsqrt LayerNorm.
    np.testing.assert_allclose(np.asarray(out1), np.asarray(ref), rtol=2e-3, atol=2e-3)

    # v7x path: leading "parallel" batch grid axis (one batch element per step, so both
    # TensorCores are used and the cross-batch mask vanishes); verified here for
    # correctness on any TPU generation.
    packed2 = pack_params(params, batch_block=1)
    fwd2 = jax.jit(functools.partial(transformer_forward, num_batch_blocks=batch))
    out2 = jax.block_until_ready(fwd2(x, packed2["wide"], packed2["narrow"]))
    np.testing.assert_allclose(np.asarray(out2), np.asarray(ref), rtol=2e-3, atol=2e-3)

    print("KERNEL_OK")
</pallas_src>

<mosaic_0001>
module attributes {stable_mosaic.version = 11 : i64} {
  func.func @transformer_kernel(%arg0: i32, %arg1: memref<1x26x3xf32, #tpu.memory_space<vmem>>, %arg2: memref<136x128xf32, #tpu.memory_space<vmem>>, %arg3: memref<288x16xf32, #tpu.memory_space<vmem>>, %arg4: memref<1x8x128xf32, #tpu.memory_space<vmem>>) attributes {dimension_semantics = [#tpu.dimension_semantics<parallel>], iteration_bounds = array<i64: 1>, scalar_prefetch = 0 : i64, scratch_operands = 0 : i64, tpu.core_type = #tpu.core_type<tc>, window_params = [{transform_indices = @transform_0, window_bounds = array<i64: 1, 26, 3>}, {pipeline_mode = #tpu.pipeline_mode<synchronous>, transform_indices = @transform_1, window_bounds = array<i64: 136, 128>}, {pipeline_mode = #tpu.pipeline_mode<synchronous>, transform_indices = @transform_2, window_bounds = array<i64: 288, 16>}, {transform_indices = @transform_3, window_bounds = array<i64: 1, 8, 128>}]} {
    %0 = tpu.iota {dimensions = array<i32: 1>} : vector<1x16xi32>
    %c0_i32 = arith.constant 0 : i32
    %1 = vector.broadcast %c0_i32 : i32 to vector<1x16xi32>
    %2 = arith.cmpi sge, %0, %1 : vector<1x16xi32>
    %c3_i32 = arith.constant 3 : i32
    %3 = vector.broadcast %c3_i32 : i32 to vector<1x16xi32>
    %4 = arith.cmpi slt, %0, %3 : vector<1x16xi32>
    %5 = arith.andi %2, %4 : vector<1x16xi1>
    %6 = arith.extui %5 : vector<1x16xi1> to vector<1x16xi32>
    %7 = arith.sitofp %6 : vector<1x16xi32> to vector<1x16xf32>
    %c3_i32_0 = arith.constant 3 : i32
    %8 = vector.broadcast %c3_i32_0 : i32 to vector<1x16xi32>
    %9 = arith.cmpi sge, %0, %8 : vector<1x16xi32>
    %c6_i32 = arith.constant 6 : i32
    %10 = vector.broadcast %c6_i32 : i32 to vector<1x16xi32>
    %11 = arith.cmpi slt, %0, %10 : vector<1x16xi32>
    %12 = arith.andi %9, %11 : vector<1x16xi1>
    %13 = arith.extui %12 : vector<1x16xi1> to vector<1x16xi32>
    %14 = arith.sitofp %13 : vector<1x16xi32> to vector<1x16xf32>
    %c6_i32_1 = arith.constant 6 : i32
    %15 = vector.broadcast %c6_i32_1 : i32 to vector<1x16xi32>
    %16 = arith.cmpi sge, %0, %15 : vector<1x16xi32>
    %c9_i32 = arith.constant 9 : i32
    %17 = vector.broadcast %c9_i32 : i32 to vector<1x16xi32>
    %18 = arith.cmpi slt, %0, %17 : vector<1x16xi32>
    %19 = arith.andi %16, %18 : vector<1x16xi1>
    %20 = arith.extui %19 : vector<1x16xi1> to vector<1x16xi32>
    %21 = arith.sitofp %20 : vector<1x16xi32> to vector<1x16xf32>
    %c96 = arith.constant 96 : index
    %c0 = arith.constant 0 : index
    %22 = vector.load %arg2[%c96, %c0] : memref<136x128xf32, #tpu.memory_space<vmem>>, vector<26x26xf32>
    %c0_2 = arith.constant 0 : index
    %c0_3 = arith.constant 0 : index
    %c0_4 = arith.constant 0 : index
    %23 = vector.load %arg1[%c0_2, %c0_3, %c0_4] : memref<1x26x3xf32, #tpu.memory_space<vmem>>, vector<1x26x3xf32>
    %24 = vector.shape_cast %23 : vector<1x26x3xf32> to vector<26x3xf32>
    %cst = arith.constant 0.000000e+00 : f32
    %25 = vector.broadcast %cst : f32 to vector<26x16xf32>
    %26 = vector.extract_strided_slice %24 {offsets = [0, 0], sizes = [26, 1], strides = [1, 1]} : vector<26x3xf32> to vector<26x1xf32>
    %c192 = arith.constant 192 : index
    %c0_5 = arith.constant 0 : index
    %27 = vector.load %arg3[%c192, %c0_5] : memref<288x16xf32, #tpu.memory_space<vmem>>, vector<26x16xf32>
    %28 = vector.broadcast %26 : vector<26x1xf32> to vector<26x16xf32>
    %29 = arith.mulf %28, %27 : vector<26x16xf32>
    %30 = arith.addf %25, %29 : vector<26x16xf32>
    %31 = vector.extract_strided_slice %24 {offsets = [0, 1], sizes = [26, 1], strides = [1, 1]} : vector<26x3xf32> to vector<26x1xf32>
    %c224 = arith.constant 224 : index
    %c0_6 = arith.constant 0 : index
    %32 = vector.load %arg3[%c224, %c0_6] : memref<288x16xf32, #tpu.memory_space<vmem>>, vector<26x16xf32>
    %33 = vector.broadcast %31 : vector<26x1xf32> to vector<26x16xf32>
    %34 = arith.mulf %33, %32 : vector<26x16xf32>
    %35 = arith.addf %30, %34 : vector<26x16xf32>
    %36 = vector.extract_strided_slice %24 {offsets = [0, 2], sizes = [26, 1], strides = [1, 1]} : vector<26x3xf32> to vector<26x1xf32>
    %c256 = arith.constant 256 : index
    %c0_7 = arith.constant 0 : index
    %37 = vector.load %arg3[%c256, %c0_7] : memref<288x16xf32, #tpu.memory_space<vmem>>, vector<26x16xf32>
    %38 = vector.broadcast %36 : vector<26x1xf32> to vector<26x16xf32>
    %39 = arith.mulf %38, %37 : vector<26x16xf32>
    %40 = arith.addf %35, %39 : vector<26x16xf32>
    %c0_8 = arith.constant 0 : index
    %c0_9 = arith.constant 0 : index
    %41 = vector.load %arg2[%c0_8, %c0_9] : memref<136x128xf32, #tpu.memory_space<vmem>>, vector<16x128xf32>
    %cst_10 = arith.constant dense<0.000000e+00> : vector<26x128xf32>
    %42 = tpu.matmul %40, %41, %cst_10 {dimension_numbers = #tpu.dot_dimension_numbers<[1], [0], [0], [1], [0, 0, 1, 1], [], []>} : vector<26x16xf32>, vector<16x128xf32>, vector<26x128xf32> -> vector<26x128xf32>
    %c16 = arith.constant 16 : index
    %c0_11 = arith.constant 0 : index
    %43 = vector.load %arg2[%c16, %c0_11] : memref<136x128xf32, #tpu.memory_space<vmem>>, vector<1x128xf32>
    %44 = vector.broadcast %43 : vector<1x128xf32> to vector<26x128xf32>
    %45 = arith.addf %42, %44 : vector<26x128xf32>
    %46 = vector.extract_strided_slice %45 {offsets = [0, 0], sizes = [26, 16], strides = [1, 1]} : vector<26x128xf32> to vector<26x16xf32>
    %47 = vector.extract_strided_slice %45 {offsets = [0, 16], sizes = [26, 16], strides = [1, 1]} : vector<26x128xf32> to vector<26x16xf32>
    %48 = vector.extract_strided_slice %45 {offsets = [0, 32], sizes = [26, 16], strides = [1, 1]} : vector<26x128xf32> to vector<26x16xf32>
    %cst_12 = arith.constant 0.000000e+00 : f32
    %49 = vector.broadcast %cst_12 : f32 to vector<26x16xf32>
    %50 = vector.broadcast %7 : vector<1x16xf32> to vector<26x16xf32>
    %51 = arith.mulf %46, %50 : vector<26x16xf32>
    %cst_13 = arith.constant dense<0.000000e+00> : vector<26x26xf32>
    %52 = tpu.matmul %51, %47, %cst_13 {dimension_numbers = #tpu.dot_dimension_numbers<[1], [1], [0], [0], [0, 0, 1, 0], [], []>} : vector<26x16xf32>, vector<26x16xf32>, vector<26x26xf32> -> vector<26x26xf32>
    %cst_14 = arith.constant 0.577350259 : f32
    %53 = vector.broadcast %cst_14 : f32 to vector<26x26xf32>
    %54 = arith.mulf %52, %53 : vector<26x26xf32>
    %55 = arith.addf %54, %22 : vector<26x26xf32>
    %cst_15 = arith.constant dense<0xFF800000> : vector<26xf32>
    %56 = vector.multi_reduction <maximumf>, %55, %cst_15 [1] : vector<26x26xf32> to vector<26xf32>
    %57 = vector.shape_cast %56 : vector<26xf32> to vector<26x1xf32>
    %58 = vector.broadcast %57 : vector<26x1xf32> to vector<26x26xf32>
    %59 = arith.subf %55, %58 : vector<26x26xf32>
    %60 = math.exp %59 : vector<26x26xf32>
    %cst_16 = arith.constant dense<0.000000e+00> : vector<26xf32>
    %61 = vector.multi_reduction <add>, %60, %cst_16 [1] : vector<26x26xf32> to vector<26xf32>
    %62 = vector.shape_cast %61 : vector<26xf32> to vector<26x1xf32>
    %63 = tpu.reciprocal %62 {approx = true} : vector<26x1xf32> -> vector<26x1xf32>
    %64 = vector.broadcast %63 : vector<26x1xf32> to vector<26x26xf32>
    %65 = arith.mulf %60, %64 : vector<26x26xf32>
    %66 = vector.broadcast %7 : vector<1x16xf32> to vector<26x16xf32>
    %67 = arith.mulf %48, %66 : vector<26x16xf32>
    %cst_17 = arith.constant dense<0.000000e+00> : vector<26x16xf32>
    %68 = tpu.matmul %65, %67, %cst_17 {dimension_numbers = #tpu.dot_dimension_numbers<[1], [0], [0], [1], [0, 0, 1, 1], [], []>} : vector<26x26xf32>, vector<26x16xf32>, vector<26x16xf32> -> vector<26x16xf32>
    %69 = arith.addf %49, %68 : vector<26x16xf32>
    %70 = vector.broadcast %14 : vector<1x16xf32> to vector<26x16xf32>
    %71 = arith.mulf %46, %70 : vector<26x16xf32>
    %cst_18 = arith.constant dense<0.000000e+00> : vector<26x26xf32>
    %72 = tpu.matmul %71, %47, %cst_18 {dimension_numbers = #tpu.dot_dimension_numbers<[1], [1], [0], [0], [0, 0, 1, 0], [], []>} : vector<26x16xf32>, vector<26x16xf32>, vector<26x26xf32> -> vector<26x26xf32>
    %cst_19 = arith.constant 0.577350259 : f32
    %73 = vector.broadcast %cst_19 : f32 to vector<26x26xf32>
    %74 = arith.mulf %72, %73 : vector<26x26xf32>
    %75 = arith.addf %74, %22 : vector<26x26xf32>
    %cst_20 = arith.constant dense<0xFF800000> : vector<26xf32>
    %76 = vector.multi_reduction <maximumf>, %75, %cst_20 [1] : vector<26x26xf32> to vector<26xf32>
    %77 = vector.shape_cast %76 : vector<26xf32> to vector<26x1xf32>
    %78 = vector.broadcast %77 : vector<26x1xf32> to vector<26x26xf32>
    %79 = arith.subf %75, %78 : vector<26x26xf32>
    %80 = math.exp %79 : vector<26x26xf32>
    %cst_21 = arith.constant dense<0.000000e+00> : vector<26xf32>
    %81 = vector.multi_reduction <add>, %80, %cst_21 [1] : vector<26x26xf32> to vector<26xf32>
    %82 = vector.shape_cast %81 : vector<26xf32> to vector<26x1xf32>
    %83 = tpu.reciprocal %82 {approx = true} : vector<26x1xf32> -> vector<26x1xf32>
    %84 = vector.broadcast %83 : vector<26x1xf32> to vector<26x26xf32>
    %85 = arith.mulf %80, %84 : vector<26x26xf32>
    %86 = vector.broadcast %14 : vector<1x16xf32> to vector<26x16xf32>
    %87 = arith.mulf %48, %86 : vector<26x16xf32>
    %cst_22 = arith.constant dense<0.000000e+00> : vector<26x16xf32>
    %88 = tpu.matmul %85, %87, %cst_22 {dimension_numbers = #tpu.dot_dimension_numbers<[1], [0], [0], [1], [0, 0, 1, 1], [], []>} : vector<26x26xf32>, vector<26x16xf32>, vector<26x16xf32> -> vector<26x16xf32>
    %89 = arith.addf %69, %88 : vector<26x16xf32>
    %90 = vector.broadcast %21 : vector<1x16xf32> to vector<26x16xf32>
    %91 = arith.mulf %46, %90 : vector<26x16xf32>
    %cst_23 = arith.constant dense<0.000000e+00> : vector<26x26xf32>
    %92 = tpu.matmul %91, %47, %cst_23 {dimension_numbers = #tpu.dot_dimension_numbers<[1], [1], [0], [0], [0, 0, 1, 0], [], []>} : vector<26x16xf32>, vector<26x16xf32>, vector<26x26xf32> -> vector<26x26xf32>
    %cst_24 = arith.constant 0.577350259 : f32
    %93 = vector.broadcast %cst_24 : f32 to vector<26x26xf32>
    %94 = arith.mulf %92, %93 : vector<26x26xf32>
    %95 = arith.addf %94, %22 : vector<26x26xf32>
    %cst_25 = arith.constant dense<0xFF800000> : vector<26xf32>
    %96 = vector.multi_reduction <maximumf>, %95, %cst_25 [1] : vector<26x26xf32> to vector<26xf32>
    %97 = vector.shape_cast %96 : vector<26xf32> to vector<26x1xf32>
    %98 = vector.broadcast %97 : vector<26x1xf32> to vector<26x26xf32>
    %99 = arith.subf %95, %98 : vector<26x26xf32>
    %100 = math.exp %99 : vector<26x26xf32>
    %cst_26 = arith.constant dense<0.000000e+00> : vector<26xf32>
    %101 = vector.multi_reduction <add>, %100, %cst_26 [1] : vector<26x26xf32> to vector<26xf32>
    %102 = vector.shape_cast %101 : vector<26xf32> to vector<26x1xf32>
    %103 = tpu.reciprocal %102 {approx = true} : vector<26x1xf32> -> vector<26x1xf32>
    %104 = vector.broadcast %103 : vector<26x1xf32> to vector<26x26xf32>
    %105 = arith.mulf %100, %104 : vector<26x26xf32>
    %106 = vector.broadcast %21 : vector<1x16xf32> to vector<26x16xf32>
    %107 = arith.mulf %48, %106 : vector<26x16xf32>
    %cst_27 = arith.constant dense<0.000000e+00> : vector<26x16xf32>
    %108 = tpu.matmul %105, %107, %cst_27 {dimension_numbers = #tpu.dot_dimension_numbers<[1], [0], [0], [1], [0, 0, 1, 1], [], []>} : vector<26x26xf32>, vector<26x16xf32>, vector<26x16xf32> -> vector<26x16xf32>
    %109 = arith.addf %89, %108 : vector<26x16xf32>
    %c0_28 = arith.constant 0 : index
    %c0_29 = arith.constant 0 : index
    %110 = vector.load %arg3[%c0_28, %c0_29] : memref<288x16xf32, #tpu.memory_space<vmem>>, vector<16x16xf32>
    %cst_30 = arith.constant dense<0.000000e+00> : vector<26x16xf32>
    %111 = tpu.matmul %109, %110, %cst_30 {dimension_numbers = #tpu.dot_dimension_numbers<[1], [0], [0], [1], [0, 0, 1, 1], [], []>} : vector<26x16xf32>, vector<16x16xf32>, vector<26x16xf32> -> vector<26x16xf32>
    %c48 = arith.constant 48 : index
    %c0_31 = arith.constant 0 : index
    %112 = vector.load %arg3[%c48, %c0_31] : memref<288x16xf32, #tpu.memory_space<vmem>>, vector<1x16xf32>
    %113 = vector.broadcast %112 : vector<1x16xf32> to vector<26x16xf32>
    %114 = arith.addf %111, %113 : vector<26x16xf32>
    %115 = arith.addf %40, %114 : vector<26x16xf32>
    %c49 = arith.constant 49 : index
    %c0_32 = arith.constant 0 : index
    %116 = vector.load %arg3[%c49, %c0_32] : memref<288x16xf32, #tpu.memory_space<vmem>>, vector<1x16xf32>
    %c50 = arith.constant 50 : index
    %c0_33 = arith.constant 0 : index
    %117 = vector.load %arg3[%c50, %c0_33] : memref<288x16xf32, #tpu.memory_space<vmem>>, vector<1x16xf32>
    %cst_34 = arith.constant dense<0.000000e+00> : vector<26xf32>
    %118 = vector.multi_reduction <add>, %115, %cst_34 [1] : vector<26x16xf32> to vector<26xf32>
    %119 = vector.shape_cast %118 : vector<26xf32> to vector<26x1xf32>
    %cst_35 = arith.constant 0.111111112 : f32
    %120 = vector.broadcast %cst_35 : f32 to vector<26x1xf32>
    %121 = arith.mulf %119, %120 : vector<26x1xf32>
    %122 = arith.mulf %115, %115 : vector<26x16xf32>
    %cst_36 = arith.constant dense<0.000000e+00> : vector<26xf32>
    %123 = vector.multi_reduction <add>, %122, %cst_36 [1] : vector<26x16xf32> to vector<26xf32>
    %124 = vector.shape_cast %123 : vector<26xf32> to vector<26x1xf32>
    %cst_37 = arith.constant 0.111111112 : f32
    %125 = vector.broadcast %cst_37 : f32 to vector<26x1xf32>
    %126 = arith.mulf %124, %125 : vector<26x1xf32>
    %127 = arith.mulf %121, %121 : vector<26x1xf32>
    %128 = arith.subf %126, %127 : vector<26x1xf32>
    %129 = vector.broadcast %121 : vector<26x1xf32> to vector<26x16xf32>
    %130 = arith.subf %115, %129 : vector<26x16xf32>
    %cst_38 = arith.constant 9.99999974E-6 : f32
    %131 = vector.broadcast %cst_38 : f32 to vector<26x1xf32>
    %132 = arith.addf %128, %131 : vector<26x1xf32>
    %133 = math.rsqrt %132 : vector<26x1xf32>
    %134 = vector.broadcast %133 : vector<26x1xf32> to vector<26x16xf32>
    %135 = arith.mulf %130, %134 : vector<26x16xf32>
    %136 = vector.broadcast %116 : vector<1x16xf32> to vector<26x16xf32>
    %137 = arith.mulf %135, %136 : vector<26x16xf32>
    %138 = vector.broadcast %117 : vector<1x16xf32> to vector<26x16xf32>
    %139 = arith.addf %137, %138 : vector<26x16xf32>
    %c16_39 = arith.constant 16 : index
    %c0_40 = arith.constant 0 : index
    %140 = vector.load %arg3[%c16_39, %c0_40] : memref<288x16xf32, #tpu.memory_space<vmem>>, vector<16x16xf32>
    %cst_41 = arith.constant dense<0.000000e+00> : vector<26x16xf32>
    %141 = tpu.matmul %139, %140, %cst_41 {dimension_numbers = #tpu.dot_dimension_numbers<[1], [0], [0], [1], [0, 0, 1, 1], [], []>} : vector<26x16xf32>, vector<16x16xf32>, vector<26x16xf32> -> vector<26x16xf32>
    %c51 = arith.constant 51 : index
    %c0_42 = arith.constant 0 : index
    %142 = vector.load %arg3[%c51, %c0_42] : memref<288x16xf32, #tpu.memory_space<vmem>>, vector<1x16xf32>
    %143 = vector.broadcast %142 : vector<1x16xf32> to vector<26x16xf32>
    %144 = arith.addf %141, %143 : vector<26x16xf32>
    %cst_43 = arith.constant 0.000000e+00 : f32
    %145 = vector.broadcast %cst_43 : f32 to vector<26x16xf32>
    %146 = arith.maximumf %144, %145 : vector<26x16xf32>
    %c32 = arith.constant 32 : index
    %c0_44 = arith.constant 0 : index
    %147 = vector.load %arg3[%c32, %c0_44] : memref<288x16xf32, #tpu.memory_space<vmem>>, vector<16x16xf32>
    %cst_45 = arith.constant dense<0.000000e+00> : vector<26x16xf32>
    %148 = tpu.matmul %146, %147, %cst_45 {dimension_numbers = #tpu.dot_dimension_numbers<[1], [0], [0], [1], [0, 0, 1, 1], [], []>} : vector<26x16xf32>, vector<16x16xf32>, vector<26x16xf32> -> vector<26x16xf32>
    %c52 = arith.constant 52 : index
    %c0_46 = arith.constant 0 : index
    %149 = vector.load %arg3[%c52, %c0_46] : memref<288x16xf32, #tpu.memory_space<vmem>>, vector<1x16xf32>
    %150 = vector.broadcast %149 : vector<1x16xf32> to vector<26x16xf32>
    %151 = arith.addf %148, %150 : vector<26x16xf32>
    %152 = arith.addf %139, %151 : vector<26x16xf32>
    %c53 = arith.constant 53 : index
    %c0_47 = arith.constant 0 : index
    %153 = vector.load %arg3[%c53, %c0_47] : memref<288x16xf32, #tpu.memory_space<vmem>>, vector<1x16xf32>
    %c54 = arith.constant 54 : index
    %c0_48 = arith.constant 0 : index
    %154 = vector.load %arg3[%c54, %c0_48] : memref<288x16xf32, #tpu.memory_space<vmem>>, vector<1x16xf32>
    %cst_49 = arith.constant dense<0.000000e+00> : vector<26xf32>
    %155 = vector.multi_reduction <add>, %152, %cst_49 [1] : vector<26x16xf32> to vector<26xf32>
    %156 = vector.shape_cast %155 : vector<26xf32> to vector<26x1xf32>
    %cst_50 = arith.constant 0.111111112 : f32
    %157 = vector.broadcast %cst_50 : f32 to vector<26x1xf32>
    %158 = arith.mulf %156, %157 : vector<26x1xf32>
    %159 = arith.mulf %152, %152 : vector<26x16xf32>
    %cst_51 = arith.constant dense<0.000000e+00> : vector<26xf32>
    %160 = vector.multi_reduction <add>, %159, %cst_51 [1] : vector<26x16xf32> to vector<26xf32>
    %161 = vector.shape_cast %160 : vector<26xf32> to vector<26x1xf32>
    %cst_52 = arith.constant 0.111111112 : f32
    %162 = vector.broadcast %cst_52 : f32 to vector<26x1xf32>
    %163 = arith.mulf %161, %162 : vector<26x1xf32>
    %164 = arith.mulf %158, %158 : vector<26x1xf32>
    %165 = arith.subf %163, %164 : vector<26x1xf32>
    %166 = vector.broadcast %158 : vector<26x1xf32> to vector<26x16xf32>
    %167 = arith.subf %152, %166 : vector<26x16xf32>
    %cst_53 = arith.constant 9.99999974E-6 : f32
    %168 = vector.broadcast %cst_53 : f32 to vector<26x1xf32>
    %169 = arith.addf %165, %168 : vector<26x1xf32>
    %170 = math.rsqrt %169 : vector<26x1xf32>
    %171 = vector.broadcast %170 : vector<26x1xf32> to vector<26x16xf32>
    %172 = arith.mulf %167, %171 : vector<26x16xf32>
    %173 = vector.broadcast %153 : vector<1x16xf32> to vector<26x16xf32>
    %174 = arith.mulf %172, %173 : vector<26x16xf32>
    %175 = vector.broadcast %154 : vector<1x16xf32> to vector<26x16xf32>
    %176 = arith.addf %174, %175 : vector<26x16xf32>
    %c24 = arith.constant 24 : index
    %c0_54 = arith.constant 0 : index
    %177 = vector.load %arg2[%c24, %c0_54] : memref<136x128xf32, #tpu.memory_space<vmem>>, vector<16x128xf32>
    %cst_55 = arith.constant dense<0.000000e+00> : vector<26x128xf32>
    %178 = tpu.matmul %176, %177, %cst_55 {dimension_numbers = #tpu.dot_dimension_numbers<[1], [0], [0], [1], [0, 0, 1, 1], [], []>} : vector<26x16xf32>, vector<16x128xf32>, vector<26x128xf32> -> vector<26x128xf32>
    %c40 = arith.constant 40 : index
    %c0_56 = arith.constant 0 : index
    %179 = vector.load %arg2[%c40, %c0_56] : memref<136x128xf32, #tpu.memory_space<vmem>>, vector<1x128xf32>
    %180 = vector.broadcast %179 : vector<1x128xf32> to vector<26x128xf32>
    %181 = arith.addf %178, %180 : vector<26x128xf32>
    %182 = vector.extract_strided_slice %181 {offsets = [0, 0], sizes = [26, 16], strides = [1, 1]} : vector<26x128xf32> to vector<26x16xf32>
    %183 = vector.extract_strided_slice %181 {offsets = [0, 16], sizes = [26, 16], strides = [1, 1]} : vector<26x128xf32> to vector<26x16xf32>
    %184 = vector.extract_strided_slice %181 {offsets = [0, 32], sizes = [26, 16], strides = [1, 1]} : vector<26x128xf32> to vector<26x16xf32>
    %cst_57 = arith.constant 0.000000e+00 : f32
    %185 = vector.broadcast %cst_57 : f32 to vector<26x16xf32>
    %186 = vector.broadcast %7 : vector<1x16xf32> to vector<26x16xf32>
    %187 = arith.mulf %182, %186 : vector<26x16xf32>
    %cst_58 = arith.constant dense<0.000000e+00> : vector<26x26xf32>
    %188 = tpu.matmul %187, %183, %cst_58 {dimension_numbers = #tpu.dot_dimension_numbers<[1], [1], [0], [0], [0, 0, 1, 0], [], []>} : vector<26x16xf32>, vector<26x16xf32>, vector<26x26xf32> -> vector<26x26xf32>
    %cst_59 = arith.constant 0.577350259 : f32
    %189 = vector.broadcast %cst_59 : f32 to vector<26x26xf32>
    %190 = arith.mulf %188, %189 : vector<26x26xf32>
    %191 = arith.addf %190, %22 : vector<26x26xf32>
    %cst_60 = arith.constant dense<0xFF800000> : vector<26xf32>
    %192 = vector.multi_reduction <maximumf>, %191, %cst_60 [1] : vector<26x26xf32> to vector<26xf32>
    %193 = vector.shape_cast %192 : vector<26xf32> to vector<26x1xf32>
    %194 = vector.broadcast %193 : vector<26x1xf32> to vector<26x26xf32>
    %195 = arith.subf %191, %194 : vector<26x26xf32>
    %196 = math.exp %195 : vector<26x26xf32>
    %cst_61 = arith.constant dense<0.000000e+00> : vector<26xf32>
    %197 = vector.multi_reduction <add>, %196, %cst_61 [1] : vector<26x26xf32> to vector<26xf32>
    %198 = vector.shape_cast %197 : vector<26xf32> to vector<26x1xf32>
    %199 = tpu.reciprocal %198 {approx = true} : vector<26x1xf32> -> vector<26x1xf32>
    %200 = vector.broadcast %199 : vector<26x1xf32> to vector<26x26xf32>
    %201 = arith.mulf %196, %200 : vector<26x26xf32>
    %202 = vector.broadcast %7 : vector<1x16xf32> to vector<26x16xf32>
    %203 = arith.mulf %184, %202 : vector<26x16xf32>
    %cst_62 = arith.constant dense<0.000000e+00> : vector<26x16xf32>
    %204 = tpu.matmul %201, %203, %cst_62 {dimension_numbers = #tpu.dot_dimension_numbers<[1], [0], [0], [1], [0, 0, 1, 1], [], []>} : vector<26x26xf32>, vector<26x16xf32>, vector<26x16xf32> -> vector<26x16xf32>
    %205 = arith.addf %185, %204 : vector<26x16xf32>
    %206 = vector.broadcast %14 : vector<1x16xf32> to vector<26x16xf32>
    %207 = arith.mulf %182, %206 : vector<26x16xf32>
    %cst_63 = arith.constant dense<0.000000e+00> : vector<26x26xf32>
    %208 = tpu.matmul %207, %183, %cst_63 {dimension_numbers = #tpu.dot_dimension_numbers<[1], [1], [0], [0], [0, 0, 1, 0], [], []>} : vector<26x16xf32>, vector<26x16xf32>, vector<26x26xf32> -> vector<26x26xf32>
    %cst_64 = arith.constant 0.577350259 : f32
    %209 = vector.broadcast %cst_64 : f32 to vector<26x26xf32>
    %210 = arith.mulf %208, %209 : vector<26x26xf32>
    %211 = arith.addf %210, %22 : vector<26x26xf32>
    %cst_65 = arith.constant dense<0xFF800000> : vector<26xf32>
    %212 = vector.multi_reduction <maximumf>, %211, %cst_65 [1] : vector<26x26xf32> to vector<26xf32>
    %213 = vector.shape_cast %212 : vector<26xf32> to vector<26x1xf32>
    %214 = vector.broadcast %213 : vector<26x1xf32> to vector<26x26xf32>
    %215 = arith.subf %211, %214 : vector<26x26xf32>
    %216 = math.exp %215 : vector<26x26xf32>
    %cst_66 = arith.constant dense<0.000000e+00> : vector<26xf32>
    %217 = vector.multi_reduction <add>, %216, %cst_66 [1] : vector<26x26xf32> to vector<26xf32>
    %218 = vector.shape_cast %217 : vector<26xf32> to vector<26x1xf32>
    %219 = tpu.reciprocal %218 {approx = true} : vector<26x1xf32> -> vector<26x1xf32>
    %220 = vector.broadcast %219 : vector<26x1xf32> to vector<26x26xf32>
    %221 = arith.mulf %216, %220 : vector<26x26xf32>
    %222 = vector.broadcast %14 : vector<1x16xf32> to vector<26x16xf32>
    %223 = arith.mulf %184, %222 : vector<26x16xf32>
    %cst_67 = arith.constant dense<0.000000e+00> : vector<26x16xf32>
    %224 = tpu.matmul %221, %223, %cst_67 {dimension_numbers = #tpu.dot_dimension_numbers<[1], [0], [0], [1], [0, 0, 1, 1], [], []>} : vector<26x26xf32>, vector<26x16xf32>, vector<26x16xf32> -> vector<26x16xf32>
    %225 = arith.addf %205, %224 : vector<26x16xf32>
    %226 = vector.broadcast %21 : vector<1x16xf32> to vector<26x16xf32>
    %227 = arith.mulf %182, %226 : vector<26x16xf32>
    %cst_68 = arith.constant dense<0.000000e+00> : vector<26x26xf32>
    %228 = tpu.matmul %227, %183, %cst_68 {dimension_numbers = #tpu.dot_dimension_numbers<[1], [1], [0], [0], [0, 0, 1, 0], [], []>} : vector<26x16xf32>, vector<26x16xf32>, vector<26x26xf32> -> vector<26x26xf32>
    %cst_69 = arith.constant 0.577350259 : f32
    %229 = vector.broadcast %cst_69 : f32 to vector<26x26xf32>
    %230 = arith.mulf %228, %229 : vector<26x26xf32>
    %231 = arith.addf %230, %22 : vector<26x26xf32>
    %cst_70 = arith.constant dense<0xFF800000> : vector<26xf32>
    %232 = vector.multi_reduction <maximumf>, %231, %cst_70 [1] : vector<26x26xf32> to vector<26xf32>
    %233 = vector.shape_cast %232 : vector<26xf32> to vector<26x1xf32>
    %234 = vector.broadcast %233 : vector<26x1xf32> to vector<26x26xf32>
    %235 = arith.subf %231, %234 : vector<26x26xf32>
    %236 = math.exp %235 : vector<26x26xf32>
    %cst_71 = arith.constant dense<0.000000e+00> : vector<26xf32>
    %237 = vector.multi_reduction <add>, %236, %cst_71 [1] : vector<26x26xf32> to vector<26xf32>
    %238 = vector.shape_cast %237 : vector<26xf32> to vector<26x1xf32>
    %239 = tpu.reciprocal %238 {approx = true} : vector<26x1xf32> -> vector<26x1xf32>
    %240 = vector.broadcast %239 : vector<26x1xf32> to vector<26x26xf32>
    %241 = arith.mulf %236, %240 : vector<26x26xf32>
    %242 = vector.broadcast %21 : vector<1x16xf32> to vector<26x16xf32>
    %243 = arith.mulf %184, %242 : vector<26x16xf32>
    %cst_72 = arith.constant dense<0.000000e+00> : vector<26x16xf32>
    %244 = tpu.matmul %241, %243, %cst_72 {dimension_numbers = #tpu.dot_dimension_numbers<[1], [0], [0], [1], [0, 0, 1, 1], [], []>} : vector<26x26xf32>, vector<26x16xf32>, vector<26x16xf32> -> vector<26x16xf32>
    %245 = arith.addf %225, %244 : vector<26x16xf32>
    %c56 = arith.constant 56 : index
    %c0_73 = arith.constant 0 : index
    %246 = vector.load %arg3[%c56, %c0_73] : memref<288x16xf32, #tpu.memory_space<vmem>>, vector<16x16xf32>
    %cst_74 = arith.constant dense<0.000000e+00> : vector<26x16xf32>
    %247 = tpu.matmul %245, %246, %cst_74 {dimension_numbers = #tpu.dot_dimension_numbers<[1], [0], [0], [1], [0, 0, 1, 1], [], []>} : vector<26x16xf32>, vector<16x16xf32>, vector<26x16xf32> -> vector<26x16xf32>
    %c104 = arith.constant 104 : index
    %c0_75 = arith.constant 0 : index
    %248 = vector.load %arg3[%c104, %c0_75] : memref<288x16xf32, #tpu.memory_space<vmem>>, vector<1x16xf32>
    %249 = vector.broadcast %248 : vector<1x16xf32> to vector<26x16xf32>
    %250 = arith.addf %247, %249 : vector<26x16xf32>
    %251 = arith.addf %176, %250 : vector<26x16xf32>
    %c105 = arith.constant 105 : index
    %c0_76 = arith.constant 0 : index
    %252 = vector.load %arg3[%c105, %c0_76] : memref<288x16xf32, #tpu.memory_space<vmem>>, vector<1x16xf32>
    %c106 = arith.constant 106 : index
    %c0_77 = arith.constant 0 : index
    %253 = vector.load %arg3[%c106, %c0_77] : memref<288x16xf32, #tpu.memory_space<vmem>>, vector<1x16xf32>
    %cst_78 = arith.constant dense<0.000000e+00> : vector<26xf32>
    %254 = vector.multi_reduction <add>, %251, %cst_78 [1] : vector<26x16xf32> to vector<26xf32>
    %255 = vector.shape_cast %254 : vector<26xf32> to vector<26x1xf32>
    %cst_79 = arith.constant 0.111111112 : f32
    %256 = vector.broadcast %cst_79 : f32 to vector<26x1xf32>
    %257 = arith.mulf %255, %256 : vector<26x1xf32>
    %258 = arith.mulf %251, %251 : vector<26x16xf32>
    %cst_80 = arith.constant dense<0.000000e+00> : vector<26xf32>
    %259 = vector.multi_reduction <add>, %258, %cst_80 [1] : vector<26x16xf32> to vector<26xf32>
    %260 = vector.shape_cast %259 : vector<26xf32> to vector<26x1xf32>
    %cst_81 = arith.constant 0.111111112 : f32
    %261 = vector.broadcast %cst_81 : f32 to vector<26x1xf32>
    %262 = arith.mulf %260, %261 : vector<26x1xf32>
    %263 = arith.mulf %257, %257 : vector<26x1xf32>
    %264 = arith.subf %262, %263 : vector<26x1xf32>
    %265 = vector.broadcast %257 : vector<26x1xf32> to vector<26x16xf32>
    %266 = arith.subf %251, %265 : vector<26x16xf32>
    %cst_82 = arith.constant 9.99999974E-6 : f32
    %267 = vector.broadcast %cst_82 : f32 to vector<26x1xf32>
    %268 = arith.addf %264, %267 : vector<26x1xf32>
    %269 = math.rsqrt %268 : vector<26x1xf32>
    %270 = vector.broadcast %269 : vector<26x1xf32> to vector<26x16xf32>
    %271 = arith.mulf %266, %270 : vector<26x16xf32>
    %272 = vector.broadcast %252 : vector<1x16xf32> to vector<26x16xf32>
    %273 = arith.mulf %271, %272 : vector<26x16xf32>
    %274 = vector.broadcast %253 : vector<1x16xf32> to vector<26x16xf32>
    %275 = arith.addf %273, %274 : vector<26x16xf32>
    %c72 = arith.constant 72 : index
    %c0_83 = arith.constant 0 : index
    %276 = vector.load %arg3[%c72, %c0_83] : memref<288x16xf32, #tpu.memory_space<vmem>>, vector<16x16xf32>
    %cst_84 = arith.constant dense<0.000000e+00> : vector<26x16xf32>
    %277 = tpu.matmul %275, %276, %cst_84 {dimension_numbers = #tpu.dot_dimension_numbers<[1], [0], [0], [1], [0, 0, 1, 1], [], []>} : vector<26x16xf32>, vector<16x16xf32>, vector<26x16xf32> -> vector<26x16xf32>
    %c107 = arith.constant 107 : index
    %c0_85 = arith.constant 0 : index
    %278 = vector.load %arg3[%c107, %c0_85] : memref<288x16xf32, #tpu.memory_space<vmem>>, vector<1x16xf32>
    %279 = vector.broadcast %278 : vector<1x16xf32> to vector<26x16xf32>
    %280 = arith.addf %277, %279 : vector<26x16xf32>
    %cst_86 = arith.constant 0.000000e+00 : f32
    %281 = vector.broadcast %cst_86 : f32 to vector<26x16xf32>
    %282 = arith.maximumf %280, %281 : vector<26x16xf32>
    %c88 = arith.constant 88 : index
    %c0_87 = arith.constant 0 : index
    %283 = vector.load %arg3[%c88, %c0_87] : memref<288x16xf32, #tpu.memory_space<vmem>>, vector<16x16xf32>
    %cst_88 = arith.constant dense<0.000000e+00> : vector<26x16xf32>
    %284 = tpu.matmul %282, %283, %cst_88 {dimension_numbers = #tpu.dot_dimension_numbers<[1], [0], [0], [1], [0, 0, 1, 1], [], []>} : vector<26x16xf32>, vector<16x16xf32>, vector<26x16xf32> -> vector<26x16xf32>
    %c108 = arith.constant 108 : index
    %c0_89 = arith.constant 0 : index
    %285 = vector.load %arg3[%c108, %c0_89] : memref<288x16xf32, #tpu.memory_space<vmem>>, vector<1x16xf32>
    %286 = vector.broadcast %285 : vector<1x16xf32> to vector<26x16xf32>
    %287 = arith.addf %284, %286 : vector<26x16xf32>
    %288 = arith.addf %275, %287 : vector<26x16xf32>
    %c109 = arith.constant 109 : index
    %c0_90 = arith.constant 0 : index
    %289 = vector.load %arg3[%c109, %c0_90] : memref<288x16xf32, #tpu.memory_space<vmem>>, vector<1x16xf32>
    %c110 = arith.constant 110 : index
    %c0_91 = arith.constant 0 : index
    %290 = vector.load %arg3[%c110, %c0_91] : memref<288x16xf32, #tpu.memory_space<vmem>>, vector<1x16xf32>
    %cst_92 = arith.constant dense<0.000000e+00> : vector<26xf32>
    %291 = vector.multi_reduction <add>, %288, %cst_92 [1] : vector<26x16xf32> to vector<26xf32>
    %292 = vector.shape_cast %291 : vector<26xf32> to vector<26x1xf32>
    %cst_93 = arith.constant 0.111111112 : f32
    %293 = vector.broadcast %cst_93 : f32 to vector<26x1xf32>
    %294 = arith.mulf %292, %293 : vector<26x1xf32>
    %295 = arith.mulf %288, %288 : vector<26x16xf32>
    %cst_94 = arith.constant dense<0.000000e+00> : vector<26xf32>
    %296 = vector.multi_reduction <add>, %295, %cst_94 [1] : vector<26x16xf32> to vector<26xf32>
    %297 = vector.shape_cast %296 : vector<26xf32> to vector<26x1xf32>
    %cst_95 = arith.constant 0.111111112 : f32
    %298 = vector.broadcast %cst_95 : f32 to vector<26x1xf32>
    %299 = arith.mulf %297, %298 : vector<26x1xf32>
    %300 = arith.mulf %294, %294 : vector<26x1xf32>
    %301 = arith.subf %299, %300 : vector<26x1xf32>
    %302 = vector.broadcast %294 : vector<26x1xf32> to vector<26x16xf32>
    %303 = arith.subf %288, %302 : vector<26x16xf32>
    %cst_96 = arith.constant 9.99999974E-6 : f32
    %304 = vector.broadcast %cst_96 : f32 to vector<26x1xf32>
    %305 = arith.addf %301, %304 : vector<26x1xf32>
    %306 = math.rsqrt %305 : vector<26x1xf32>
    %307 = vector.broadcast %306 : vector<26x1xf32> to vector<26x16xf32>
    %308 = arith.mulf %303, %307 : vector<26x16xf32>
    %309 = vector.broadcast %289 : vector<1x16xf32> to vector<26x16xf32>
    %310 = arith.mulf %308, %309 : vector<26x16xf32>
    %311 = vector.broadcast %290 : vector<1x16xf32> to vector<26x16xf32>
    %312 = arith.addf %310, %311 : vector<26x16xf32>
    %c48_97 = arith.constant 48 : index
    %c0_98 = arith.constant 0 : index
    %313 = vector.load %arg2[%c48_97, %c0_98] : memref<136x128xf32, #tpu.memory_space<vmem>>, vector<16x128xf32>
    %cst_99 = arith.constant dense<0.000000e+00> : vector<26x128xf32>
    %314 = tpu.matmul %312, %313, %cst_99 {dimension_numbers = #tpu.dot_dimension_numbers<[1], [0], [0], [1], [0, 0, 1, 1], [], []>} : vector<26x16xf32>, vector<16x128xf32>, vector<26x128xf32> -> vector<26x128xf32>
    %c64 = arith.constant 64 : index
    %c0_100 = arith.constant 0 : index
    %315 = vector.load %arg2[%c64, %c0_100] : memref<136x128xf32, #tpu.memory_space<vmem>>, vector<1x128xf32>
    %316 = vector.broadcast %315 : vector<1x128xf32> to vector<26x128xf32>
    %317 = arith.addf %314, %316 : vector<26x128xf32>
    %318 = vector.extract_strided_slice %317 {offsets = [0, 0], sizes = [26, 16], strides = [1, 1]} : vector<26x128xf32> to vector<26x16xf32>
    %319 = vector.extract_strided_slice %317 {offsets = [0, 16], sizes = [26, 16], strides = [1, 1]} : vector<26x128xf32> to vector<26x16xf32>
    %320 = vector.extract_strided_slice %317 {offsets = [0, 32], sizes = [26, 16], strides = [1, 1]} : vector<26x128xf32> to vector<26x16xf32>
    %cst_101 = arith.constant 0.000000e+00 : f32
    %321 = vector.broadcast %cst_101 : f32 to vector<26x16xf32>
    %322 = vector.broadcast %7 : vector<1x16xf32> to vector<26x16xf32>
    %323 = arith.mulf %318, %322 : vector<26x16xf32>
    %cst_102 = arith.constant dense<0.000000e+00> : vector<26x26xf32>
    %324 = tpu.matmul %323, %319, %cst_102 {dimension_numbers = #tpu.dot_dimension_numbers<[1], [1], [0], [0], [0, 0, 1, 0], [], []>} : vector<26x16xf32>, vector<26x16xf32>, vector<26x26xf32> -> vector<26x26xf32>
    %cst_103 = arith.constant 0.577350259 : f32
    %325 = vector.broadcast %cst_103 : f32 to vector<26x26xf32>
    %326 = arith.mulf %324, %325 : vector<26x26xf32>
    %327 = arith.addf %326, %22 : vector<26x26xf32>
    %cst_104 = arith.constant dense<0xFF800000> : vector<26xf32>
    %328 = vector.multi_reduction <maximumf>, %327, %cst_104 [1] : vector<26x26xf32> to vector<26xf32>
    %329 = vector.shape_cast %328 : vector<26xf32> to vector<26x1xf32>
    %330 = vector.broadcast %329 : vector<26x1xf32> to vector<26x26xf32>
    %331 = arith.subf %327, %330 : vector<26x26xf32>
    %332 = math.exp %331 : vector<26x26xf32>
    %cst_105 = arith.constant dense<0.000000e+00> : vector<26xf32>
    %333 = vector.multi_reduction <add>, %332, %cst_105 [1] : vector<26x26xf32> to vector<26xf32>
    %334 = vector.shape_cast %333 : vector<26xf32> to vector<26x1xf32>
    %335 = tpu.reciprocal %334 {approx = true} : vector<26x1xf32> -> vector<26x1xf32>
    %336 = vector.broadcast %335 : vector<26x1xf32> to vector<26x26xf32>
    %337 = arith.mulf %332, %336 : vector<26x26xf32>
    %338 = vector.broadcast %7 : vector<1x16xf32> to vector<26x16xf32>
    %339 = arith.mulf %320, %338 : vector<26x16xf32>
    %cst_106 = arith.constant dense<0.000000e+00> : vector<26x16xf32>
    %340 = tpu.matmul %337, %339, %cst_106 {dimension_numbers = #tpu.dot_dimension_numbers<[1], [0], [0], [1], [0, 0, 1, 1], [], []>} : vector<26x26xf32>, vector<26x16xf32>, vector<26x16xf32> -> vector<26x16xf32>
    %341 = arith.addf %321, %340 : vector<26x16xf32>
    %342 = vector.broadcast %14 : vector<1x16xf32> to vector<26x16xf32>
    %343 = arith.mulf %318, %342 : vector<26x16xf32>
    %cst_107 = arith.constant dense<0.000000e+00> : vector<26x26xf32>
    %344 = tpu.matmul %343, %319, %cst_107 {dimension_numbers = #tpu.dot_dimension_numbers<[1], [1], [0], [0], [0, 0, 1, 0], [], []>} : vector<26x16xf32>, vector<26x16xf32>, vector<26x26xf32> -> vector<26x26xf32>
    %cst_108 = arith.constant 0.577350259 : f32
    %345 = vector.broadcast %cst_108 : f32 to vector<26x26xf32>
    %346 = arith.mulf %344, %345 : vector<26x26xf32>
    %347 = arith.addf %346, %22 : vector<26x26xf32>
    %cst_109 = arith.constant dense<0xFF800000> : vector<26xf32>
    %348 = vector.multi_reduction <maximumf>, %347, %cst_109 [1] : vector<26x26xf32> to vector<26xf32>
    %349 = vector.shape_cast %348 : vector<26xf32> to vector<26x1xf32>
    %350 = vector.broadcast %349 : vector<26x1xf32> to vector<26x26xf32>
    %351 = arith.subf %347, %350 : vector<26x26xf32>
    %352 = math.exp %351 : vector<26x26xf32>
    %cst_110 = arith.constant dense<0.000000e+00> : vector<26xf32>
    %353 = vector.multi_reduction <add>, %352, %cst_110 [1] : vector<26x26xf32> to vector<26xf32>
    %354 = vector.shape_cast %353 : vector<26xf32> to vector<26x1xf32>
    %355 = tpu.reciprocal %354 {approx = true} : vector<26x1xf32> -> vector<26x1xf32>
    %356 = vector.broadcast %355 : vector<26x1xf32> to vector<26x26xf32>
    %357 = arith.mulf %352, %356 : vector<26x26xf32>
    %358 = vector.broadcast %14 : vector<1x16xf32> to vector<26x16xf32>
    %359 = arith.mulf %320, %358 : vector<26x16xf32>
    %cst_111 = arith.constant dense<0.000000e+00> : vector<26x16xf32>
    %360 = tpu.matmul %357, %359, %cst_111 {dimension_numbers = #tpu.dot_dimension_numbers<[1], [0], [0], [1], [0, 0, 1, 1], [], []>} : vector<26x26xf32>, vector<26x16xf32>, vector<26x16xf32> -> vector<26x16xf32>
    %361 = arith.addf %341, %360 : vector<26x16xf32>
    %362 = vector.broadcast %21 : vector<1x16xf32> to vector<26x16xf32>
    %363 = arith.mulf %318, %362 : vector<26x16xf32>
    %cst_112 = arith.constant dense<0.000000e+00> : vector<26x26xf32>
    %364 = tpu.matmul %363, %319, %cst_112 {dimension_numbers = #tpu.dot_dimension_numbers<[1], [1], [0], [0], [0, 0, 1, 0], [], []>} : vector<26x16xf32>, vector<26x16xf32>, vector<26x26xf32> -> vector<26x26xf32>
    %cst_113 = arith.constant 0.577350259 : f32
    %365 = vector.broadcast %cst_113 : f32 to vector<26x26xf32>
    %366 = arith.mulf %364, %365 : vector<26x26xf32>
    %367 = arith.addf %366, %22 : vector<26x26xf32>
    %cst_114 = arith.constant dense<0xFF800000> : vector<26xf32>
    %368 = vector.multi_reduction <maximumf>, %367, %cst_114 [1] : vector<26x26xf32> to vector<26xf32>
    %369 = vector.shape_cast %368 : vector<26xf32> to vector<26x1xf32>
    %370 = vector.broadcast %369 : vector<26x1xf32> to vector<26x26xf32>
    %371 = arith.subf %367, %370 : vector<26x26xf32>
    %372 = math.exp %371 : vector<26x26xf32>
    %cst_115 = arith.constant dense<0.000000e+00> : vector<26xf32>
    %373 = vector.multi_reduction <add>, %372, %cst_115 [1] : vector<26x26xf32> to vector<26xf32>
    %374 = vector.shape_cast %373 : vector<26xf32> to vector<26x1xf32>
    %375 = tpu.reciprocal %374 {approx = true} : vector<26x1xf32> -> vector<26x1xf32>
    %376 = vector.broadcast %375 : vector<26x1xf32> to vector<26x26xf32>
    %377 = arith.mulf %372, %376 : vector<26x26xf32>
    %378 = vector.broadcast %21 : vector<1x16xf32> to vector<26x16xf32>
    %379 = arith.mulf %320, %378 : vector<26x16xf32>
    %cst_116 = arith.constant dense<0.000000e+00> : vector<26x16xf32>
    %380 = tpu.matmul %377, %379, %cst_116 {dimension_numbers = #tpu.dot_dimension_numbers<[1], [0], [0], [1], [0, 0, 1, 1], [], []>} : vector<26x26xf32>, vector<26x16xf32>, vector<26x16xf32> -> vector<26x16xf32>
    %381 = arith.addf %361, %380 : vector<26x16xf32>
    %c112 = arith.constant 112 : index
    %c0_117 = arith.constant 0 : index
    %382 = vector.load %arg3[%c112, %c0_117] : memref<288x16xf32, #tpu.memory_space<vmem>>, vector<16x16xf32>
    %cst_118 = arith.constant dense<0.000000e+00> : vector<26x16xf32>
    %383 = tpu.matmul %381, %382, %cst_118 {dimension_numbers = #tpu.dot_dimension_numbers<[1], [0], [0], [1], [0, 0, 1, 1], [], []>} : vector<26x16xf32>, vector<16x16xf32>, vector<26x16xf32> -> vector<26x16xf32>
    %c160 = arith.constant 160 : index
    %c0_119 = arith.constant 0 : index
    %384 = vector.load %arg3[%c160, %c0_119] : memref<288x16xf32, #tpu.memory_space<vmem>>, vector<1x16xf32>
    %385 = vector.broadcast %384 : vector<1x16xf32> to vector<26x16xf32>
    %386 = arith.addf %383, %385 : vector<26x16xf32>
    %387 = arith.addf %312, %386 : vector<26x16xf32>
    %c161 = arith.constant 161 : index
    %c0_120 = arith.constant 0 : index
    %388 = vector.load %arg3[%c161, %c0_120] : memref<288x16xf32, #tpu.memory_space<vmem>>, vector<1x16xf32>
    %c162 = arith.constant 162 : index
    %c0_121 = arith.constant 0 : index
    %389 = vector.load %arg3[%c162, %c0_121] : memref<288x16xf32, #tpu.memory_space<vmem>>, vector<1x16xf32>
    %cst_122 = arith.constant dense<0.000000e+00> : vector<26xf32>
    %390 = vector.multi_reduction <add>, %387, %cst_122 [1] : vector<26x16xf32> to vector<26xf32>
    %391 = vector.shape_cast %390 : vector<26xf32> to vector<26x1xf32>
    %cst_123 = arith.constant 0.111111112 : f32
    %392 = vector.broadcast %cst_123 : f32 to vector<26x1xf32>
    %393 = arith.mulf %391, %392 : vector<26x1xf32>
    %394 = arith.mulf %387, %387 : vector<26x16xf32>
    %cst_124 = arith.constant dense<0.000000e+00> : vector<26xf32>
    %395 = vector.multi_reduction <add>, %394, %cst_124 [1] : vector<26x16xf32> to vector<26xf32>
    %396 = vector.shape_cast %395 : vector<26xf32> to vector<26x1xf32>
    %cst_125 = arith.constant 0.111111112 : f32
    %397 = vector.broadcast %cst_125 : f32 to vector<26x1xf32>
    %398 = arith.mulf %396, %397 : vector<26x1xf32>
    %399 = arith.mulf %393, %393 : vector<26x1xf32>
    %400 = arith.subf %398, %399 : vector<26x1xf32>
    %401 = vector.broadcast %393 : vector<26x1xf32> to vector<26x16xf32>
    %402 = arith.subf %387, %401 : vector<26x16xf32>
    %cst_126 = arith.constant 9.99999974E-6 : f32
    %403 = vector.broadcast %cst_126 : f32 to vector<26x1xf32>
    %404 = arith.addf %400, %403 : vector<26x1xf32>
    %405 = math.rsqrt %404 : vector<26x1xf32>
    %406 = vector.broadcast %405 : vector<26x1xf32> to vector<26x16xf32>
    %407 = arith.mulf %402, %406 : vector<26x16xf32>
    %408 = vector.broadcast %388 : vector<1x16xf32> to vector<26x16xf32>
    %409 = arith.mulf %407, %408 : vector<26x16xf32>
    %410 = vector.broadcast %389 : vector<1x16xf32> to vector<26x16xf32>
    %411 = arith.addf %409, %410 : vector<26x16xf32>
    %c128 = arith.constant 128 : index
    %c0_127 = arith.constant 0 : index
    %412 = vector.load %arg3[%c128, %c0_127] : memref<288x16xf32, #tpu.memory_space<vmem>>, vector<16x16xf32>
    %cst_128 = arith.constant dense<0.000000e+00> : vector<26x16xf32>
    %413 = tpu.matmul %411, %412, %cst_128 {dimension_numbers = #tpu.dot_dimension_numbers<[1], [0], [0], [1], [0, 0, 1, 1], [], []>} : vector<26x16xf32>, vector<16x16xf32>, vector<26x16xf32> -> vector<26x16xf32>
    %c163 = arith.constant 163 : index
    %c0_129 = arith.constant 0 : index
    %414 = vector.load %arg3[%c163, %c0_129] : memref<288x16xf32, #tpu.memory_space<vmem>>, vector<1x16xf32>
    %415 = vector.broadcast %414 : vector<1x16xf32> to vector<26x16xf32>
    %416 = arith.addf %413, %415 : vector<26x16xf32>
    %cst_130 = arith.constant 0.000000e+00 : f32
    %417 = vector.broadcast %cst_130 : f32 to vector<26x16xf32>
    %418 = arith.maximumf %416, %417 : vector<26x16xf32>
    %c144 = arith.constant 144 : index
    %c0_131 = arith.constant 0 : index
    %419 = vector.load %arg3[%c144, %c0_131] : memref<288x16xf32, #tpu.memory_space<vmem>>, vector<16x16xf32>
    %cst_132 = arith.constant dense<0.000000e+00> : vector<26x16xf32>
    %420 = tpu.matmul %418, %419, %cst_132 {dimension_numbers = #tpu.dot_dimension_numbers<[1], [0], [0], [1], [0, 0, 1, 1], [], []>} : vector<26x16xf32>, vector<16x16xf32>, vector<26x16xf32> -> vector<26x16xf32>
    %c164 = arith.constant 164 : index
    %c0_133 = arith.constant 0 : index
    %421 = vector.load %arg3[%c164, %c0_133] : memref<288x16xf32, #tpu.memory_space<vmem>>, vector<1x16xf32>
    %422 = vector.broadcast %421 : vector<1x16xf32> to vector<26x16xf32>
    %423 = arith.addf %420, %422 : vector<26x16xf32>
    %424 = arith.addf %411, %423 : vector<26x16xf32>
    %c165 = arith.constant 165 : index
    %c0_134 = arith.constant 0 : index
    %425 = vector.load %arg3[%c165, %c0_134] : memref<288x16xf32, #tpu.memory_space<vmem>>, vector<1x16xf32>
    %c166 = arith.constant 166 : index
    %c0_135 = arith.constant 0 : index
    %426 = vector.load %arg3[%c166, %c0_135] : memref<288x16xf32, #tpu.memory_space<vmem>>, vector<1x16xf32>
    %cst_136 = arith.constant dense<0.000000e+00> : vector<26xf32>
    %427 = vector.multi_reduction <add>, %424, %cst_136 [1] : vector<26x16xf32> to vector<26xf32>
    %428 = vector.shape_cast %427 : vector<26xf32> to vector<26x1xf32>
    %cst_137 = arith.constant 0.111111112 : f32
    %429 = vector.broadcast %cst_137 : f32 to vector<26x1xf32>
    %430 = arith.mulf %428, %429 : vector<26x1xf32>
    %431 = arith.mulf %424, %424 : vector<26x16xf32>
    %cst_138 = arith.constant dense<0.000000e+00> : vector<26xf32>
    %432 = vector.multi_reduction <add>, %431, %cst_138 [1] : vector<26x16xf32> to vector<26xf32>
    %433 = vector.shape_cast %432 : vector<26xf32> to vector<26x1xf32>
    %cst_139 = arith.constant 0.111111112 : f32
    %434 = vector.broadcast %cst_139 : f32 to vector<26x1xf32>
    %435 = arith.mulf %433, %434 : vector<26x1xf32>
    %436 = arith.mulf %430, %430 : vector<26x1xf32>
    %437 = arith.subf %435, %436 : vector<26x1xf32>
    %438 = vector.broadcast %430 : vector<26x1xf32> to vector<26x16xf32>
    %439 = arith.subf %424, %438 : vector<26x16xf32>
    %cst_140 = arith.constant 9.99999974E-6 : f32
    %440 = vector.broadcast %cst_140 : f32 to vector<26x1xf32>
    %441 = arith.addf %437, %440 : vector<26x1xf32>
    %442 = math.rsqrt %441 : vector<26x1xf32>
    %443 = vector.broadcast %442 : vector<26x1xf32> to vector<26x16xf32>
    %444 = arith.mulf %439, %443 : vector<26x16xf32>
    %445 = vector.broadcast %425 : vector<1x16xf32> to vector<26x16xf32>
    %446 = arith.mulf %444, %445 : vector<26x16xf32>
    %447 = vector.broadcast %426 : vector<1x16xf32> to vector<26x16xf32>
    %448 = arith.addf %446, %447 : vector<26x16xf32>
    %c128_141 = arith.constant 128 : index
    %c0_142 = arith.constant 0 : index
    %449 = vector.load %arg2[%c128_141, %c0_142] : memref<136x128xf32, #tpu.memory_space<vmem>>, vector<8x26xf32>
    %cst_143 = arith.constant dense<0.000000e+00> : vector<8x16xf32>
    %450 = tpu.matmul %449, %448, %cst_143 {dimension_numbers = #tpu.dot_dimension_numbers<[1], [0], [0], [1], [0, 0, 1, 1], [], []>} : vector<8x26xf32>, vector<26x16xf32>, vector<8x16xf32> -> vector<8x16xf32>
    %c168 = arith.constant 168 : index
    %c0_144 = arith.constant 0 : index
    %451 = vector.load %arg3[%c168, %c0_144] : memref<288x16xf32, #tpu.memory_space<vmem>>, vector<16x16xf32>
    %cst_145 = arith.constant dense<0.000000e+00> : vector<8x16xf32>
    %452 = tpu.matmul %450, %451, %cst_145 {dimension_numbers = #tpu.dot_dimension_numbers<[1], [0], [0], [1], [0, 0, 1, 1], [], []>} : vector<8x16xf32>, vector<16x16xf32>, vector<8x16xf32> -> vector<8x16xf32>
    %c184 = arith.constant 184 : index
    %c0_146 = arith.constant 0 : index
    %453 = vector.load %arg3[%c184, %c0_146] : memref<288x16xf32, #tpu.memory_space<vmem>>, vector<1x16xf32>
    %454 = vector.broadcast %453 : vector<1x16xf32> to vector<8x16xf32>
    %455 = arith.addf %452, %454 : vector<8x16xf32>
    %cst_147 = arith.constant 0.000000e+00 : f32
    %456 = vector.broadcast %cst_147 : f32 to vector<8x16xf32>
    %457 = arith.maximumf %455, %456 : vector<8x16xf32>
    %c72_148 = arith.constant 72 : index
    %c0_149 = arith.constant 0 : index
    %458 = vector.load %arg2[%c72_148, %c0_149] : memref<136x128xf32, #tpu.memory_space<vmem>>, vector<16x128xf32>
    %cst_150 = arith.constant dense<0.000000e+00> : vector<8x128xf32>
    %459 = tpu.matmul %457, %458, %cst_150 {dimension_numbers = #tpu.dot_dimension_numbers<[1], [0], [0], [1], [0, 0, 1, 1], [], []>} : vector<8x16xf32>, vector<16x128xf32>, vector<8x128xf32> -> vector<8x128xf32>
    %c88_151 = arith.constant 88 : index
    %c0_152 = arith.constant 0 : index
    %460 = vector.load %arg2[%c88_151, %c0_152] : memref<136x128xf32, #tpu.memory_space<vmem>>, vector<1x128xf32>
    %461 = vector.broadcast %460 : vector<1x128xf32> to vector<8x128xf32>
    %462 = arith.addf %459, %461 : vector<8x128xf32>
    %c0_153 = arith.constant 0 : index
    %c0_154 = arith.constant 0 : index
    %c0_155 = arith.constant 0 : index
    %463 = vector.load %arg4[%c0_153, %c0_154, %c0_155] : memref<1x8x128xf32, #tpu.memory_space<vmem>>, vector<1x8x128xf32>
    %464 = vector.shape_cast %463 : vector<1x8x128xf32> to vector<8x128xf32>
    %465 = vector.shape_cast %462 : vector<8x128xf32> to vector<1x8x128xf32>
    tpu.vector_store %arg4[%c0_153, %c0_154, %c0_155], %465 {strides = array<i32>} : memref<1x8x128xf32, #tpu.memory_space<vmem>>, vector<1x8x128xf32>,
    return
  }
  func.func @transform_0(%arg0: i32) -> (i32, i32, i32) {
    %c0_i32 = arith.constant 0 : i32
    %c0_i32_0 = arith.constant 0 : i32
    %c0_i32_1 = arith.constant 0 : i32
    return %arg0, %c0_i32, %c0_i32_0 : i32, i32, i32
  }
  func.func @transform_1(%arg0: i32) -> (i32, i32) {
    %c0_i32 = arith.constant 0 : i32
    %c0_i32_0 = arith.constant 0 : i32
    %c0_i32_1 = arith.constant 0 : i32
    return %c0_i32, %c0_i32_0 : i32, i32
  }
  func.func @transform_2(%arg0: i32) -> (i32, i32) {
    %c0_i32 = arith.constant 0 : i32
    %c0_i32_0 = arith.constant 0 : i32
    %c0_i32_1 = arith.constant 0 : i32
    return %c0_i32, %c0_i32_0 : i32, i32
  }
  func.func @transform_3(%arg0: i32) -> (i32, i32, i32) {
    %c0_i32 = arith.constant 0 : i32
    %c0_i32_0 = arith.constant 0 : i32
    %c0_i32_1 = arith.constant 0 : i32
    return %arg0, %c0_i32, %c0_i32_0 : i32, i32, i32
  }
}

</mosaic_0001>

<bundles_post_ra>
// kernel: transformer_forward.1
= control target key start
LH: loop header
LB: loop body
LE: loop exit
PB: predicated region body
PF: predicated region fallthrough
CT: control target
= control target key end

     0   :  { %v6100_v0 = vmov 1   ;;  %v6101_v1 = vmov 0   ;;  %v6102_v4 = vmov 2   ;;  %vm134_vm0 = vcmask 130048   ;;  %s6104_s22 = smov 112   ;;  %s6105_s23 = smov 32   ;;  %s7429_s0 = inlined_call_operand.vmem [shape: f32[1,26,3], index: 0, kind: input, shape index: {}]   ;;  %s7430_s1 = inlined_call_operand.vmem [shape: f32[136,128], index: 1, kind: input, shape index: {}]   ;;  %s7431_s2 = inlined_call_operand.vmem [shape: f32[288,16], index: 2, kind: input, shape index: {}]   ;;  %s7432_s3 = inlined_call_operand.vmem [shape: f32[1,8,128], index: 3, kind: output, shape index: {}]  }
   0x1   :  { %5765 = vset.pattern.permute.xlu0 %v6100_v0  ;;  %5766 = vset.pattern.permute.xlu1 %v6101_v1  ;;  %v36_v2 = vld [vmem:[%s7429_s0 + $0x8] sm:$0xff]  ;;  %v35_v3 = vld [vmem:[%s7429_s0] sm:$0xff]  ;;  %v38_v7 = vld [vmem:[%s7429_s0 + $0x18] sm:$0x3]  ;;  %v14_v54 = vlaneseq  ;;  %v6103_v60 = vmov 0.0   ;;  %vm361_vm9 = vcmask 211968  }
   0x2   :  { %50 = vperm.xlu1 %5766, %v36_v2   ;;  %76 = vperm.xlu0 %5765, %v35_v3   ;;  %v127_v5 = vld [vmem:[%s7430_s1] sm:$0xff]  ;;  %v128_v6 = vld [vmem:[%s7430_s1 + $0x8] sm:$0xff]  ;;  %v37_v9 = vld [vmem:[%s7429_s0 + $0x10] sm:$0xff]  ;;  %vm371_vm10 = vcmask 205824   ;;  %s6106_s4 = smov 96   ;;  %vm603_vm11 = vcmask 1041408  }
   0x3   :  { %v5472_v8 = vpack.c.bf16 %v128_v6, %v127_v5  ;;  %v72_v12 = vld [vmem:[%s7431_s2 + $0xe8] sm:$0xff]  ;;  %v71_v15 = vld [vmem:[%s7431_s2 + $0xe0] sm:$0xff]  ;;  %v74_v35 = vld [vmem:[%s7431_s2 + $0xf8] sm:$0x3]  ;;  %v15_v55 = vand.u32 127, %v14_v54  ;;  %vm6107_vm12 = vmmov 1  }
   0x4   :  { %v40_v16 = vld [vmem:[%s7431_s2 + $0xc8] sm:$0xff]  ;;  %v39_v18 = vld [vmem:[%s7431_s2 + $0xc0] sm:$0xff]  ;;  %v73_v36 = vld [vmem:[%s7431_s2 + $0xf0] sm:$0xff]  ;;  %vm1203_vm14 = vcmask 123904   ;;  %vm6109_vm15 = vmmov 0  }
   0x5   :  { %5473 = vmatprep.subr.bf16.mxu0 %v5472_v8  ;;  %v100_v20 = vld [vmem:[%s7431_s2 + $0x108] sm:$0xff]  ;;  %v99_v22 = vld [vmem:[%s7431_s2 + $0x100] sm:$0xff]  ;;  %v42_v37 = vld [vmem:[%s7431_s2 + $0xd8] sm:$0x3]  ;;  %vm21_vm1 = vcmp.ge.s32.totalorder %v15_v55, 3  ;;  %vm22_vm2 = vcmp.lt.s32.totalorder %v15_v55, 6 }
   0x6   :  { %5767 = vset.pattern.permute.xlu1 %v6100_v0  ;;  %5769 = vset.pattern.permute.xlu0 %v6102_v4  ;;  %v41_v39 = vld [vmem:[%s7431_s2 + $0xd0] sm:$0xff]  ;;  %v102_v42 = vld [vmem:[%s7431_s2 + $0x118] sm:$0x3]  ;;  %vm17_vm3 = vcmp.lt.s32.totalorder %v15_v55, 3  ;;  %vm23_vm4 = vmand %vm21_vm1, %vm22_vm2  ;;  %vm26_vm6 = vcmp.ge.s32.totalorder %v15_v55, 6  ;;  %vm27_vm7 = vcmp.lt.s32.totalorder %v15_v55, 9 }
   0x7   :  { %80 = vperm.xlu1 %5767, %v36_v2   ;;  %108 = vperm.xlu0 %5769, %v36_v2   ;;  %v101_v45 = vld [vmem:[%s7431_s2 + $0x110] sm:$0xff]  ;;  %v6206_v61 = vsel %vm17_vm3, 1.0, %v6103_v60  ;;  %v6209_v62 = vsel %vm23_vm4, 1.0, %v6103_v60  ;;  %vm6234_vm5 = vmpackc.low %vm134_vm0, %vm134_vm0  ;;  %v34_v54 = vld [vmem:[%s7430_s1 + $0x78] sm:$0x3] }
   0x8   :  { %5475 = vmatpush3.bf16.msra.mxu0 %v5472_v8  ;;  %v4653_v56 = vld [vmem:[%s7430_s1 + $0x10] ss:$0 sm:$0xff]  ;;  %v5785_v8 = vpack.i.bf16 %v6206_v61, %v6209_v62  ;;  %vm28_vm8 = vmand %vm26_vm6, %vm27_vm7 }
   0x9   :  { %vm6425_vm13 = vmpackc.low %vm603_vm11, %vm6107_vm12 }
   0xb   :  { %5768 = vset.pattern.permute.xlu1 %v6102_v4  ;;  %5770 = vset.pattern.permute.xlu0 %v6101_v1 }
   0xc   :  { %104 = vperm.xlu1 %5768, %v35_v3   ;;  %45 = vperm.xlu0 %5770, %v35_v3  }
  0x10   :  { %5771 = vset.pattern.permute.xlu1 %v6101_v1  ;;  %60 = vperm.xlu0 %5770, %v38_v7  }
  0x11   :  { %55 = vperm.xlu1 %5771, %v37_v9  }
  0x14   :  { %5774 = vset.pattern.permute.xlu0 %v6102_v4 }
  0x15   :  { %5772 = vset.pattern.permute.xlu1 %v6100_v0  ;;  %116 = vperm.xlu0 %5774, %v38_v7  }
  0x16   :  { %84 = vperm.xlu1 %5772, %v37_v9  }
  0x1a   :  { %88 = vperm.xlu1 %5772, %v38_v7  }
  0x1e   :  { %5773 = vset.pattern.permute.xlu1 %v6102_v4 }
  0x1f   :  { %112 = vperm.xlu1 %5773, %v37_v9  }
  0x81   :  { %v51_v10 = vpop.permute.xlu1 %50  ;;  %v77_v11 = vpop.permute.xlu0 %76 }
  0x82   :  { %v91_v19 = vmul.f32 %v77_v11, %v71_v15  ;;  %v64_v21 = vmul.f32 %v51_v10, %v40_v16 }
  0x86   :  { %v81_v13 = vpop.permute.xlu1 %80  ;;  %v109_v14 = vpop.permute.xlu0 %108 }
  0x87   :  { %v92_v17 = vmul.f32 %v81_v13, %v72_v12  ;;  %v120_v27 = vmul.f32 %v109_v14, %v100_v20 }
  0x89   :  { %v96_v26 = vadd.f32 %v92_v17, %v64_v21 }
  0x8b   :  { %v105_v23 = vpop.permute.xlu1 %104  ;;  %v46_v24 = vpop.permute.xlu0 %45  ;;  %v6168_v32 = vadd.f32 %v120_v27, %v96_v26 }
  0x8c   :  { %v63_v25 = vmul.f32 %v46_v24, %v39_v18  ;;  %v119_v28 = vmul.f32 %v105_v23, %v99_v22  ;;  %v6267_v22 = vsel %vm28_vm8, 1.0, %v6103_v60 }
  0x8e   :  { %v95_v29 = vadd.f32 %v91_v19, %v63_v25 }
  0x8f   :  { %v61_v34 = vpop.permute.xlu0 %60 }
  0x90   :  { %v56_v30 = vpop.permute.xlu1 %55  ;;  %v6166_v31 = vadd.f32 %v119_v28, %v95_v29  ;;  %v66_v44 = vmul.f32 %v61_v34, %v42_v37 }
  0x91   :  { %v65_v46 = vmul.f32 %v56_v30, %v41_v39 }
  0x92   :  { %5079 = vmatprep.mubr.msk.f32.mxu0 %vm134_vm0, %v6166_v31 }
  0x93   :  { %5080 = vmatmul.mubr.msk.f32.vlgmr.msra.gmra.mrb[0].mxu0 %vm134_vm0, %v6168_v32 }
  0x94   :  { %v117_v43 = vpop.permute.xlu0 %116 }
  0x95   :  { %v85_v33 = vpop.permute.xlu1 %84  ;;  %v122_v48 = vmul.f32 %v117_v43, %v102_v42 }
  0x96   :  { %v93_v41 = vmul.f32 %v85_v33, %v73_v36  ;;  %v32_v33 = vld [vmem:[%s7430_s1 + $0x68] sm:$0xff] }
  0x98   :  { %v97_v50 = vadd.f32 %v93_v41, %v65_v46 }
  0x99   :  { %v89_v38 = vpop.permute.xlu1 %88 }
  0x9a   :  { %v94_v40 = vmul.f32 %v89_v38, %v74_v35 }
  0x9c   :  { %v98_v47 = vadd.f32 %v94_v40, %v66_v44  ;;  %v31_v40 = vld [vmem:[%s7430_s1 + $0x60] sm:$0xff] }
  0x9e   :  { %v113_v49 = vpop.permute.xlu1 %112  ;;  %v6194_v53 = vadd.f32 %v122_v48, %v98_v47 }
  0x9f   :  { %v121_v51 = vmul.f32 %v113_v49, %v101_v45 }
  0xa1   :  { %v6192_v52 = vadd.f32 %v121_v51, %v97_v50 }
  0xa3   :  { %5082 = vmatprep.mubr.msk.f32.mxu0 %vm134_vm0, %v6192_v52 }
  0xa4   :  { %5083 = vmatmul.mubr.msk.f32.gmra.mrb[2].mxu0 %vm134_vm0, %v6194_v53 }
 0x166   :  { %v5081_v57 = vpop.f32.mrb[0].mxu0 }
 0x167   :  { %v6203_v58 = vadd.f32 %v5081_v57, %v4653_v56  ;;  %v213_v59 = vpop.f32.mrb[1].mxu0 }
 0x168   :  { %v6211_v63 = vadd.f32 %v4653_v56, %v213_v59 }
 0x169   :  { %v233_v18 = vmul.f32 %v6206_v61, %v6203_v58  ;;  %v416_v19 = vmul.f32 %v6209_v62, %v6203_v58  ;;  %v806_v26 = vmul.f32 %v6267_v22, %v6203_v58 }
 0x16a   :  { %v5775_v0 = vpack.i.bf16 %v6203_v58, %v6211_v63  ;;  %v232_v1 = vmul.f32 %v6206_v61, %v6211_v63  ;;  %v415_v2 = vmul.f32 %v6209_v62, %v6211_v63  ;;  %v805_v25 = vmul.f32 %v6267_v22, %v6211_v63 }
 0x16c   :  { %5776 = vrot.lane.b32.xlu1 %v5775_v0, %s6104_s22  ;;  %5093 = vmatprep.mubr.msk.f32.mxu1 %vm134_vm0, %v232_v1 }
 0x16d   :  { %5107 = vmatprep.mubr.msk.f32.mxu0 %vm134_vm0, %v415_v2 }
 0x177   :  { %v5084_v3 = vpop.f32.mrb[2].mxu0 }
 0x178   :  { %v6222_v4 = vadd.f32 %v5084_v3, %v4653_v56  ;;  %v223_v5 = vpop.f32.mrb[3].mxu0 }
 0x179   :  { %v6224_v6 = vadd.f32 %v4653_v56, %v223_v5  ;;  %v33_v5 = vld [vmem:[%s7430_s1 + $0x70] sm:$0xff] }
 0x17a   :  { %v235_v23 = vmul.f32 %v6206_v61, %v6222_v4  ;;  %v418_v24 = vmul.f32 %v6209_v62, %v6222_v4  ;;  %v808_v28 = vmul.f32 %v6267_v22, %v6222_v4 }
 0x17b   :  { %v5780_v7 = vpack.i.bf16 %v6222_v4, %v6224_v6  ;;  %v234_v20 = vmul.f32 %v6206_v61, %v6224_v6  ;;  %v417_v21 = vmul.f32 %v6209_v62, %v6224_v6  ;;  %v807_v27 = vmul.f32 %v6267_v22, %v6224_v6 }
 0x17d   :  { %5781 = vrot.lane.b32.xlu1 %v5780_v7, %s6104_s22 }
 0x181   :  { %5786 = vrot.lane.b32.xlu1 %v5785_v8, %s6105_s23 }
 0x1de   :  { %v5777_v9 = vpop.permute.xlu1 %5776 }
 0x1df   :  { %v5779_v10 = vunpack.i.h.bf16 %v5777_v9  ;;  %v5778_v11 = vunpack.i.l.bf16 %v5777_v9 }
 0x1e1   :  { %v5476_v13 = vpack.c.bf16 %v5779_v10, %v5778_v11 }
 0x1e3   :  { %5478 = vmatprep.subr.msk.bf16.mxu1 %vm6234_vm5, %v5476_v13  ;;  %5490 = vmatprep.subr.msk.bf16.mxu0 %vm6234_vm5, %v5476_v13 }
 0x1e4   :  { %5481 = vmatpush3.bf16.xpose.msk.msra.mxu1 %vm6234_vm5, %v5476_v13  ;;  %5493 = vmatpush3.bf16.xpose.msk.msra.mxu0 %vm6234_vm5, %v5476_v13 }
 0x1ef   :  { %v5782_v14 = vpop.permute.xlu1 %5781 }
 0x1f0   :  { %v5784_v15 = vunpack.i.h.bf16 %v5782_v14  ;;  %v5783_v16 = vunpack.i.l.bf16 %v5782_v14 }
 0x1f2   :  { %v5482_v17 = vpack.c.bf16 %v5784_v15, %v5783_v16 }
 0x1f3   :  { %v5787_v3 = vpop.permute.xlu1 %5786 }
 0x1f4   :  { %5484 = vmatprep.subr.msk.bf16.mxu1 %vm6234_vm5, %v5482_v17  ;;  %5496 = vmatprep.subr.msk.bf16.mxu0 %vm6234_vm5, %v5482_v17  ;;  %v6329_v8 = vunpack.i.l.bf16 %v5787_v3 }
 0x1f5   :  { %5487 = vmatpush3.bf16.xpose.msk.msra.mxu1 %vm6234_vm5, %v5482_v17  ;;  %5499 = vmatpush3.bf16.xpose.msk.msra.mxu0 %vm6234_vm5, %v5482_v17 }
 0x1f6   :  { %5522 = vmatprep.subr.msk.bf16.mxu0 %vm6234_vm5, %v5476_v13  ;;  %v572_v16 = vmul.f32 %v6329_v8, %v6211_v63 }
 0x1fc   :  { %5094 = vmatmul.mubr.msk.f32.vlgmr.msra.gmra.mrb[0].mxu1 %vm134_vm0, %v233_v18  ;;  %5108 = vmatmul.mubr.msk.f32.vlgmr.msra.gmra.mrb[4].mxu0 %vm134_vm0, %v416_v19 }
 0x1fd   :  { %5096 = vmatprep.mubr.msk.f32.mxu1 %vm134_vm0, %v234_v20  ;;  %5110 = vmatprep.mubr.msk.f32.mxu0 %vm134_vm0, %v417_v21 }
 0x1fe   :  { %5525 = vmatpush3.bf16.xpose.msk.msra.mxu0 %vm6234_vm5, %v5476_v13 }
 0x1ff   :  { %5528 = vmatprep.subr.msk.bf16.mxu0 %vm6234_vm5, %v5482_v17 }
 0x200   :  { %5097 = vmatmul.mubr.msk.f32.gmra.mrb[2].mxu1 %vm134_vm0, %v235_v23  ;;  %5111 = vmatmul.mubr.msk.f32.gmra.mrb[6].mxu0 %vm134_vm0, %v418_v24 }
 0x201   :  { %5149 = vmatprep.mubr.msk.f32.mxu0 %vm134_vm0, %v805_v25 }
 0x206   :  { %5531 = vmatpush3.bf16.xpose.msk.msra.mxu0 %vm6234_vm5, %v5482_v17  ;;  %v573_v17 = vmul.f32 %v6329_v8, %v6203_v58 }
 0x208   :  { %v5790_v18 = vpack.i.bf16 %v573_v17, %v572_v16 }
 0x20d   :  { %5150 = vmatmul.mubr.msk.f32.vlgmr.msra.gmra.mrb[8].mxu0 %vm134_vm0, %v806_v26 }
 0x20e   :  { %5152 = vmatprep.mubr.msk.f32.mxu0 %vm134_vm0, %v807_v27 }
 0x211   :  { %5153 = vmatmul.mubr.msk.f32.gmra.mrb[10].mxu0 %vm134_vm0, %v808_v28 }
 0x2cf   :  { %v5095_v29 = vpop.f32.mrb[0].mxu1  ;;  %v5109_v30 = vpop.f32.mrb[4].mxu0 }
 0x2d0   :  { %v354_v34 = vmul.f32 0.57735026, %v5095_v29  ;;  %v517_v35 = vmul.f32 0.57735026, %v5109_v30  ;;  %v334_v36 = vpop.f32.mrb[1].mxu1  ;;  %v497_v37 = vpop.f32.mrb[5].mxu0  ;;  %v6354_v29 = vunpack.i.h.bf16 %v5787_v3 }
 0x2d1   :  { %v353_v38 = vmul.f32 0.57735026, %v334_v36  ;;  %v516_v39 = vmul.f32 0.57735026, %v497_v37 }
 0x2d2   :  { %v6301_v41 = vadd.f32 %v517_v35, %v32_v33  ;;  %v6303_v42 = vadd.f32 %v354_v34, %v32_v33  ;;  %v411_v36 = vmul.f32 %v6354_v29, %v6211_v63  ;;  %v412_v37 = vmul.f32 %v6354_v29, %v6203_v58 }
 0x2d3   :  { %v5098_v43 = vpop.f32.mrb[2].mxu1  ;;  %v5112_v44 = vpop.f32.mrb[6].mxu0  ;;  %v6305_v47 = vadd.f32 %v516_v39, %v31_v40  ;;  %v6311_v51 = vadd.f32 %v353_v38, %v31_v40  ;;  %v574_v38 = vmul.f32 %v6329_v8, %v6224_v6  ;;  %v575_v39 = vmul.f32 %v6329_v8, %v6222_v4 }
 0x2d4   :  { %v344_v45 = vpop.f32.mrb[3].mxu1  ;;  %v507_v46 = vpop.f32.mrb[7].mxu0  ;;  %v519_v48 = vmul.f32 0.57735026, %v5112_v44  ;;  %v527_v49 = vsel %vm361_vm9, %v6301_v41, -inf  ;;  %v365_v50 = vsel %vm361_vm9, %v6303_v42, -inf }
 0x2d5   :  { %528 = vmax.xlane.f32.xlu1 %v527_v49  ;;  %366 = vmax.xlane.f32.xlu0 %v365_v50  ;;  %v356_v55 = vmul.f32 0.57735026, %v5098_v43  ;;  %v524_v56 = vsel %vm361_vm9, %v6305_v47, -inf  ;;  %v362_v57 = vsel %vm361_vm9, %v6311_v51, -inf  ;;  %v518_v0 = vmul.f32 0.57735026, %v507_v46 }
 0x2d6   :  { %v6320_v59 = vadd.f32 %v519_v48, %v34_v54  ;;  %v355_v19 = vmul.f32 0.57735026, %v344_v45 }
 0x2d7   :  { %v6324_v2 = vadd.f32 %v356_v55, %v34_v54  ;;  %v6333_v11 = vadd.f32 %v518_v0, %v33_v5 }
 0x2d8   :  { %v533_v1 = vsel %vm371_vm10, %v6320_v59, -inf  ;;  %v6344_v21 = vadd.f32 %v355_v19, %v33_v5 }
 0x2d9   :  { %525 = vmax.xlane.f32.xlu0 %v524_v56  ;;  %363 = vmax.xlane.f32.xlu1 %v362_v57  ;;  %v372_v10 = vsel %vm371_vm10, %v6324_v2, -inf  ;;  %v530_v15 = vsel %vm361_vm9, %v6333_v11, -inf }
 0x2da   :  { %v368_v23 = vsel %vm361_vm9, %v6344_v21, -inf }
 0x2dd   :  { %534 = vmax.xlane.f32.xlu0 %v533_v1 }
 0x2e0   :  { %v5151_v7 = vpop.f32.mrb[8].mxu0 }
 0x2e1   :  { %v887_v9 = vpop.f32.mrb[9].mxu0  ;;  %373 = vmax.xlane.f32.xlu0 %v372_v10  ;;  %v907_v25 = vmul.f32 0.57735026, %v5151_v7 }
 0x2e2   :  { %v906_v20 = vmul.f32 0.57735026, %v887_v9 }
 0x2e3   :  { %v6352_v28 = vadd.f32 %v907_v25, %v32_v33  ;;  %v5800_v33 = vpack.i.bf16 %v412_v37, %v411_v36 }
 0x2e4   :  { %v5154_v13 = vpop.f32.mrb[10].mxu0  ;;  %v6348_v24 = vadd.f32 %v906_v20, %v31_v40  ;;  %v5795_v40 = vpack.i.bf16 %v575_v39, %v574_v38 }
 0x2e5   :  { %v897_v14 = vpop.f32.mrb[11].mxu0  ;;  %531 = vmax.xlane.f32.xlu0 %v530_v15  ;;  %v909_v27 = vmul.f32 0.57735026, %v5154_v13  ;;  %v917_v30 = vsel %vm361_vm9, %v6352_v28, -inf }
 0x2e6   :  { %v914_v26 = vsel %vm361_vm9, %v6348_v24, -inf  ;;  %v908_v43 = vmul.f32 0.57735026, %v897_v14 }
 0x2e7   :  { %v6358_v34 = vadd.f32 %v909_v27, %v34_v54 }
 0x2e8   :  { %v6372_v44 = vadd.f32 %v908_v43, %v33_v5 }
 0x2e9   :  { %v923_v35 = vsel %vm371_vm10, %v6358_v34, -inf }
 0x2ea   :  { %5791 = vrot.lane.b32.xlu1 %v5790_v18, %s6106_s4  ;;  %v920_v45 = vsel %vm361_vm9, %v6372_v44, -inf }
 0x2fb   :  { %959 = vrot.lane.b32.xlu0 %v6267_v22, %s6105_s23 }
 0x30e   :  { %369 = vmax.xlane.f32.xlu1 %v368_v23 }
 0x312   :  { %915 = vmax.xlane.f32.xlu1 %v914_v26 }
 0x31a   :  { %918 = vmax.xlane.f32.xlu0 %v917_v30 }
 0x31e   :  { %924 = vmax.xlane.f32.xlu0 %v923_v35 }
 0x323   :  { %5801 = vrot.lane.b32.xlu1 %v5800_v33, %s6106_s4 }
 0x334   :  { %5796 = vrot.lane.b32.xlu0 %v5795_v40, %s6106_s4 }
 0x347   :  { %921 = vmax.xlane.f32.xlu1 %v920_v45 }
 0x362   :  { %v529_v46 = vpop.xlane.xlu1 %528  ;;  %v367_v48 = vpop.xlane.xlu0 %366 }
 0x363   :  { %v537_v49 = vsub.f32 %v6301_v41, %v529_v46  ;;  %v376_v50 = vsub.f32 %v6303_v42, %v367_v48 }
 0x365   :  { %v542_v54 = vmul.f32 1.442695, %v537_v49  ;;  %v381_v55 = vmul.f32 1.442695, %v376_v50 }
 0x366   :  { %v526_v56 = vpop.xlane.xlu0 %525  ;;  %v364_v57 = vpop.xlane.xlu1 %363 }
 0x367   :  { %5900 = vpow2.f32 %v542_v54  ;;  %v536_v0 = vsub.f32 %v6305_v47, %v526_v56  ;;  %v375_v1 = vsub.f32 %v6311_v51, %v364_v57 }
 0x368   :  { %5902 = vpow2.f32 %v381_v55 }
 0x369   :  { %v540_v3 = vmul.f32 1.442695, %v536_v0  ;;  %v379_v5 = vmul.f32 1.442695, %v375_v1 }
 0x36a   :  { %v5792_v7 = vpop.permute.xlu1 %5791  ;;  %v535_v9 = vpop.xlane.xlu0 %534 }
 0x36b   :  { %5904 = vpow2.f32 %v540_v3  ;;  %v5794_v10 = vunpack.i.h.bf16 %v5792_v7  ;;  %v5793_v13 = vunpack.i.l.bf16 %v5792_v7  ;;  %v539_v41 = vsub.f32 %v6320_v59, %v535_v9 }
 0x36c   :  { %5906 = vpow2.f32 %v379_v5 }
 0x36d   :  { %v546_v42 = vmul.f32 1.442695, %v539_v41  ;;  %v5500_v14 = vpack.c.bf16 %v5794_v10, %v5793_v13  ;;  %v4565_v13 = vld [vmem:[%s7430_s1 + $0x48] sm:$0xff] }
 0x36e   :  { %v374_v15 = vpop.xlane.xlu0 %373 }
 0x36f   :  { %5908 = vpow2.f32 %v546_v42  ;;  %v378_v16 = vsub.f32 %v6324_v2, %v374_v15  ;;  %5501 = vmatprep.subr.bf16.mxu1 %v5500_v14 }
 0x370   :  { %5503 = vmatpush3.bf16.msra.mxu1 %v5500_v14 }
 0x371   :  { %v6382_v47 = vpop.eup %5900  ;;  %v385_v51 = vmul.f32 1.442695, %v378_v16 }
 0x372   :  { %v532_v17 = vpop.xlane.xlu0 %531  ;;  %v551_v18 = vsel %vm361_vm9, %v6382_v47, 0.0  ;;  %v6386_v19 = vpop.eup %5902 }
 0x373   :  { %5910 = vpow2.f32 %v385_v51  ;;  %v538_v59 = vsub.f32 %v6333_v11, %v532_v17  ;;  %552 = vadd.xlane.f32.xlu0 %v551_v18  ;;  %v390_v2 = vsel %vm361_vm9, %v6386_v19, 0.0 }
 0x375   :  { %v6389_v20 = vpop.eup %5904  ;;  %v544_v23 = vmul.f32 1.442695, %v538_v59  ;;  %v413_v59 = vmul.f32 %v6354_v29, %v6224_v6 }
 0x376   :  { %v548_v25 = vsel %vm361_vm9, %v6389_v20, 0.0  ;;  %v6395_v26 = vpop.eup %5906  ;;  %v6413_v48 = vpop.permute.xlu0 %959 }
 0x377   :  { %5912 = vpow2.f32 %v544_v23  ;;  %391 = vadd.xlane.f32.xlu0 %v390_v2  ;;  %549 = vadd.xlane.f32.xlu1 %v548_v25  ;;  %v387_v30 = vsel %vm361_vm9, %v6395_v26, 0.0  ;;  %v962_v51 = vmul.f32 %v6413_v48, %v6211_v63  ;;  %v963_v17 = vmul.f32 %v6413_v48, %v6203_v58 }
 0x378   :  { %v414_v23 = vmul.f32 %v6354_v29, %v6222_v4 }
 0x379   :  { %v6397_v27 = vpop.eup %5908  ;;  %v5810_v18 = vpack.i.bf16 %v963_v17, %v962_v51 }
 0x37a   :  { %v557_v11 = vsel %vm371_vm10, %v6397_v27, 0.0  ;;  %v5805_v2 = vpack.i.bf16 %v414_v23, %v413_v59 }
 0x37b   :  { %558 = vadd.xlane.f32.xlu0 %v557_v11  ;;  %388 = vadd.xlane.f32.xlu1 %v387_v30 }
 0x37d   :  { %v6403_v35 = vpop.eup %5910 }
 0x37e   :  { %v396_v36 = vsel %vm371_vm10, %v6403_v35, 0.0 }
 0x37f   :  { %397 = vadd.xlane.f32.xlu0 %v396_v36  ;;  %v964_v36 = vmul.f32 %v6413_v48, %v6224_v6 }
 0x381   :  { %v6407_v37 = vpop.eup %5912 }
 0x382   :  { %v554_v33 = vsel %vm361_vm9, %v6407_v37, 0.0 }
 0x383   :  { %555 = vadd.xlane.f32.xlu1 %v554_v33  ;;  %v965_v33 = vmul.f32 %v6413_v48, %v6222_v4 }
 0x39b   :  { %v370_v38 = vpop.xlane.xlu1 %369 }
 0x39c   :  { %v377_v39 = vsub.f32 %v6344_v21, %v370_v38  ;;  %v5815_v38 = vpack.i.bf16 %v965_v33, %v964_v36 }
 0x39e   :  { %v383_v40 = vmul.f32 1.442695, %v377_v39 }
 0x39f   :  { %v916_v43 = vpop.xlane.xlu1 %915 }
 0x3a0   :  { %5914 = vpow2.f32 %v383_v40  ;;  %v926_v45 = vsub.f32 %v6348_v24, %v916_v43  ;;  %v1085_v40 = vld [vmem:[%s7431_s2 + $0x8] sm:$0xff] }
 0x3a2   :  { %v930_v46 = vmul.f32 1.442695, %v926_v45 }
 0x3a3   :  { %v5802_v21 = vpop.permute.xlu1 %5801 }
 0x3a4   :  { %5916 = vpow2.f32 %v930_v46  ;;  %v5804_v3 = vunpack.i.h.bf16 %v5802_v21  ;;  %v5803_v7 = vunpack.i.l.bf16 %v5802_v21 }
 0x3a6   :  { %v5510_v41 = vpack.c.bf16 %v5804_v3, %v5803_v7 }
 0x3a7   :  { %v919_v49 = vpop.xlane.xlu0 %918 }
 0x3a8   :  { %v927_v50 = vsub.f32 %v6352_v28, %v919_v49 }
 0x3aa   :  { %v6416_v54 = vpop.eup %5914  ;;  %v932_v55 = vmul.f32 1.442695, %v927_v50 }
 0x3ab   :  { %v925_v56 = vpop.xlane.xlu0 %924  ;;  %v393_v57 = vsel %vm361_vm9, %v6416_v54, 0.0 }
 0x3ac   :  { %5918 = vpow2.f32 %v932_v55  ;;  %v929_v0 = vsub.f32 %v6358_v34, %v925_v56  ;;  %394 = vadd.xlane.f32.xlu1 %v393_v57 }
 0x3ae   :  { %v6421_v24 = vpop.eup %5916  ;;  %v936_v1 = vmul.f32 1.442695, %v929_v0 }
 0x3af   :  { %v5797_v5 = vpop.permute.xlu0 %5796  ;;  %v938_v28 = vsel %vm361_vm9, %v6421_v24, 0.0 }
 0x3b0   :  { %5920 = vpow2.f32 %v936_v1  ;;  %v5799_v9 = vunpack.i.h.bf16 %v5797_v5  ;;  %v5798_v10 = vunpack.i.l.bf16 %v5797_v5  ;;  %939 = vadd.xlane.f32.xlu1 %v938_v28 }
 0x3b2   :  { %v5504_v34 = vpack.c.bf16 %v5799_v9, %v5798_v10 }
 0x3b4   :  { %5506 = vmatprep.subr.msk.bf16.mxu1 %vm6425_vm13, %v5504_v34 }
 0x3b5   :  { %5509 = vmatpush3.bf16.msk.msra.mxu1 %vm6425_vm13, %v5504_v34 }
 0x3b6   :  { %v6433_v42 = vpop.eup %5918  ;;  %5511 = vmatprep.subr.bf16.mxu1 %v5510_v41 }
 0x3b7   :  { %v941_v14 = vsel %vm361_vm9, %v6433_v42, 0.0 }
 0x3b8   :  { %942 = vadd.xlane.f32.xlu0 %v941_v14 }
 0x3ba   :  { %v6437_v15 = vpop.eup %5920 }
 0x3bb   :  { %v947_v16 = vsel %vm371_vm10, %v6437_v15, 0.0 }
 0x3bc   :  { %948 = vadd.xlane.f32.xlu0 %v947_v16 }
 0x3c1   :  { %5811 = vrot.lane.b32.xlu1 %v5810_v18, %s6106_s4 }
 0x3d2   :  { %5806 = vrot.lane.b32.xlu0 %v5805_v2, %s6106_s4 }
 0x3d4   :  { %v922_v25 = vpop.xlane.xlu1 %921 }
 0x3d5   :  { %v928_v11 = vsub.f32 %v6372_v44, %v922_v25  ;;  %v1084_v44 = vld [vmem:[%s7431_s2] sm:$0xff] }
 0x3d6   :  { %v5542_v45 = vpack.c.bf16 %v1085_v40, %v1084_v44 }
 0x3d7   :  { %v934_v63 = vmul.f32 1.442695, %v928_v11 }
 0x3d8   :  { %5543 = vmatprep.subr.bf16.mxu0 %v5542_v45 }
 0x3d9   :  { %5922 = vpow2.f32 %v934_v63  ;;  %5545 = vmatpush3.bf16.msra.mxu0 %v5542_v45 }
 0x3e3   :  { %v6452_v30 = vpop.eup %5922 }
 0x3e4   :  { %v944_v58 = vsel %vm361_vm9, %v6452_v30, 0.0 }
 0x3e5   :  { %945 = vadd.xlane.f32.xlu1 %v944_v58 }
 0x3f6   :  { %5816 = vrot.lane.b32.xlu1 %v5815_v38, %s6106_s4 }
 0x400   :  { %v553_v39 = vpop.xlane.xlu0 %552 }
 0x401   :  { %5924 = vrcp.f32 %v553_v39 }
 0x404   :  { %v550_v43 = vpop.xlane.xlu1 %549  ;;  %v392_v46 = vpop.xlane.xlu0 %391 }
 0x405   :  { %5926 = vrcp.f32 %v550_v43 }
 0x408   :  { %v559_v4 = vpop.xlane.xlu0 %558  ;;  %v389_v6 = vpop.xlane.xlu1 %388 }
 0x409   :  { %5928 = vrcp.f32 %v559_v4 }
 0x40a   :  { %5930 = vrcp.f32 %v389_v6 }
 0x40b   :  { %v5925_v49 = vpop.eup %5924 }
 0x40c   :  { %v565_v57 = vmul.f32 %v5925_v49, %v6382_v47 }
 0x40f   :  { %v5927_v50 = vpop.eup %5926 }
 0x410   :  { %v556_v55 = vpop.xlane.xlu1 %555  ;;  %v564_v56 = vmul.f32 %v5927_v50, %v6389_v20  ;;  %v398_v20 = vpop.xlane.xlu0 %397 }
 0x411   :  { %5932 = vrcp.f32 %v556_v55 }
 0x412   :  { %5121 = vmatprep.mubr.msk.f32.mxu1 %vm361_vm9, %v564_v56  ;;  %5934 = vrcp.f32 %v392_v46 }
 0x413   :  { %5122 = vmatmul.mubr.msk.f32.vlgmr.msra.gmra.mrb[4].mxu1 %vm361_vm9, %v565_v57  ;;  %v5929_v21 = vpop.eup %5928 }
 0x414   :  { %5513 = vmatpush3.bf16.msra.mxu1 %v5510_v41  ;;  %v5931_v0 = vpop.eup %5930  ;;  %v567_v5 = vmul.f32 %v5929_v21, %v6397_v27 }
 0x415   :  { %v403_v28 = vmul.f32 %v5931_v0, %v6395_v26 }
 0x41b   :  { %v5933_v1 = vpop.eup %5932 }
 0x41c   :  { %v566_v3 = vmul.f32 %v5933_v1, %v6407_v37  ;;  %v5935_v51 = vpop.eup %5934 }
 0x41d   :  { %v404_v59 = vmul.f32 %v5935_v51, %v6386_v19 }
 0x41e   :  { %5124 = vmatprep.mubr.msk.f32.mxu1 %vm361_vm9, %v566_v3 }
 0x41f   :  { %5125 = vmatmul.mubr.msk.f32.gmra.mrb[6].mxu1 %vm361_vm9, %v567_v5 }
 0x420   :  { %5135 = vmatprep.mubr.msk.f32.mxu1 %vm361_vm9, %v403_v28 }
 0x439   :  { %v395_v47 = vpop.xlane.xlu1 %394 }
 0x43a   :  { %5936 = vrcp.f32 %v395_v47 }
 0x43b   :  { %5938 = vrcp.f32 %v398_v20 }
 0x43d   :  { %v940_v7 = vpop.xlane.xlu1 %939 }
 0x43e   :  { %5940 = vrcp.f32 %v940_v7 }
 0x441   :  { %v5812_v34 = vpop.permute.xlu1 %5811 }
 0x442   :  { %v5814_v27 = vunpack.i.h.bf16 %v5812_v34  ;;  %v5813_v41 = vunpack.i.l.bf16 %v5812_v34 }
 0x444   :  { %v5937_v17 = vpop.eup %5936  ;;  %v5532_v18 = vpack.c.bf16 %v5814_v27, %v5813_v41  ;;  %v1272_v27 = vld [vmem:[%s7431_s2 + $0x18] sm:$0xff] }
 0x445   :  { %v943_v9 = vpop.xlane.xlu0 %942  ;;  %v5939_v23 = vpop.eup %5938  ;;  %v405_v2 = vmul.f32 %v5937_v17, %v6416_v54 }
 0x446   :  { %v406_v11 = vmul.f32 %v5939_v23, %v6403_v35  ;;  %5942 = vrcp.f32 %v943_v9 }
 0x448   :  { %v5941_v25 = vpop.eup %5940 }
 0x449   :  { %v949_v10 = vpop.xlane.xlu0 %948  ;;  %v954_v63 = vmul.f32 %v5941_v25, %v6421_v24 }
 0x44d   :  { %v5807_v37 = vpop.permute.xlu0 %5806 }
 0x44e   :  { %v5809_v14 = vunpack.i.h.bf16 %v5807_v37  ;;  %v5808_v16 = vunpack.i.l.bf16 %v5807_v37 }
 0x450   :  { %v5514_v26 = vpack.c.bf16 %v5809_v14, %v5808_v16  ;;  %v5943_v38 = vpop.eup %5942  ;;  %v1379_v14 = vld [vmem:[%s7431_s2 + $0x20] sm:$0xff]  ;;  %v1380_v16 = vld [vmem:[%s7431_s2 + $0x28] sm:$0xff] }
 0x451   :  { %v955_v24 = vmul.f32 %v5943_v38, %v6433_v42  ;;  %v4697_v42 = vld [vmem:[%s7431_s2 + $0x30] ss:$0 sm:$0xff] }
 0x452   :  { %5516 = vmatprep.subr.msk.bf16.mxu1 %vm6425_vm13, %v5514_v26 }
 0x453   :  { %5519 = vmatpush3.bf16.msk.msra.mxu1 %vm6425_vm13, %v5514_v26  ;;  %v5550_v26 = vpack.c.bf16 %v1380_v16, %v1379_v14 }
 0x454   :  { %5533 = vmatprep.subr.bf16.mxu1 %v5532_v18 }
 0x455   :  { %5551 = vmatprep.subr.bf16.mxu0 %v5550_v26 }
 0x456   :  { %5136 = vmatmul.mubr.msk.f32.vlgmr.msra.gmra.mrb[4].mxu1 %vm361_vm9, %v404_v59 }
 0x457   :  { %5138 = vmatprep.mubr.msk.f32.mxu1 %vm361_vm9, %v405_v2  ;;  %5535 = vmatpush3.bf16.msra.mxu1 %v5532_v18 }
 0x45a   :  { %5139 = vmatmul.mubr.msk.f32.gmra.mrb[6].mxu1 %vm361_vm9, %v406_v11 }
 0x45b   :  { %5163 = vmatprep.mubr.msk.f32.mxu1 %vm361_vm9, %v954_v63 }
 0x472   :  { %v946_v19 = vpop.xlane.xlu1 %945 }
 0x473   :  { %5944 = vrcp.f32 %v946_v19 }
 0x474   :  { %5946 = vrcp.f32 %v949_v10 }
 0x476   :  { %v5817_v58 = vpop.permute.xlu1 %5816 }
 0x477   :  { %v5819_v54 = vunpack.i.h.bf16 %v5817_v58  ;;  %v5818_v36 = vunpack.i.l.bf16 %v5817_v58 }
 0x479   :  { %v5536_v33 = vpack.c.bf16 %v5819_v54, %v5818_v36 }
 0x47b   :  { %5538 = vmatprep.subr.msk.bf16.mxu1 %vm6425_vm13, %v5536_v33 }
 0x47c   :  { %5541 = vmatpush3.bf16.msk.msra.mxu1 %vm6425_vm13, %v5536_v33 }
 0x47d   :  { %v5945_v35 = vpop.eup %5944 }
 0x47e   :  { %v5947_v39 = vpop.eup %5946  ;;  %v956_v44 = vmul.f32 %v5945_v35, %v6452_v30 }
 0x47f   :  { %5164 = vmatmul.mubr.msk.f32.vlgmr.msra.gmra.mrb[4].mxu1 %vm361_vm9, %v955_v24  ;;  %v957_v40 = vmul.f32 %v5947_v39, %v6437_v15 }
 0x480   :  { %5166 = vmatprep.mubr.msk.f32.mxu1 %vm361_vm9, %v956_v44 }
 0x483   :  { %5167 = vmatmul.mubr.msk.f32.gmra.mrb[6].mxu1 %vm361_vm9, %v957_v40 }
 0x552   :  { %v5165_v43 = vpop.f32.mrb[4].mxu1 }
 0x553   :  { %v1061_v45 = vpop.f32.mrb[5].mxu1 }
 0x554   :  { %5173 = vmatprep.mubr.msk.f32.mxu0 %vm134_vm0, %v1061_v45 }
 0x555   :  { %5174 = vmatmul.mubr.msk.f32.vlgmr.msra.gmra.mrb[12].mxu0 %vm134_vm0, %v5165_v43 }
 0x556   :  { %v5168_v46 = vpop.f32.mrb[6].mxu1  ;;  %5553 = vmatpush3.bf16.msra.mxu0 %v5550_v26 }
 0x557   :  { %v1071_v4 = vpop.f32.mrb[7].mxu1 }
 0x558   :  { %5176 = vmatprep.mubr.msk.f32.mxu0 %vm134_vm0, %v1071_v4 }
 0x559   :  { %5177 = vmatmul.mubr.msk.f32.gmra.mrb[14].mxu0 %vm134_vm0, %v5168_v46 }
 0x628   :  { %v5175_v30 = vpop.f32.mrb[12].mxu0 }
 0x629   :  { %v1175_v15 = vadd.f32 %v5175_v30, %v4697_v42  ;;  %v1169_v6 = vpop.f32.mrb[13].mxu0 }
 0x62a   :  { %v1170_v49 = vadd.f32 %v4697_v42, %v1169_v6 }
 0x62b   :  { %v6507_v50 = vadd.f32 %v1175_v15, %v6168_v32 }
 0x62c   :  { %v6510_v55 = vadd.f32 %v1170_v49, %v6166_v31  ;;  %v5178_v56 = vpop.f32.mrb[14].mxu0 }
 0x62d   :  { %v1179_v57 = vpop.f32.mrb[15].mxu0  ;;  %v1197_v21 = vsel %vm134_vm0, %v6507_v50, 0.0  ;;  %v1185_v5 = vadd.f32 %v5178_v56, %v4697_v42  ;;  %v1212_v47 = vmul.f32 %v6507_v50, %v6507_v50 }
 0x62e   :  { %v1180_v0 = vadd.f32 %v4697_v42, %v1179_v57  ;;  %1198 = vadd.xlane.f32.xlu1 %v1197_v21  ;;  %v1194_v1 = vsel %vm134_vm0, %v6510_v55, 0.0  ;;  %v1211_v3 = vmul.f32 %v6510_v55, %v6510_v55  ;;  %v4702_v57 = vld [vmem:[%s7431_s2 + $0x31] ss:$0 sm:$0xff] }
 0x62f   :  { %1195 = vadd.xlane.f32.xlu0 %v1194_v1  ;;  %v6529_v7 = vadd.f32 %v1185_v5, %v6194_v53  ;;  %v1271_v53 = vld [vmem:[%s7431_s2 + $0x10] sm:$0xff] }
 0x630   :  { %v6519_v32 = vadd.f32 %v1180_v0, %v6192_v52  ;;  %v1215_v31 = vsel %vm134_vm0, %v1211_v3, 0.0  ;;  %v1218_v52 = vsel %vm134_vm0, %v1212_v47, 0.0  ;;  %v5546_v41 = vpack.c.bf16 %v1272_v27, %v1271_v53  ;;  %v4703_v0 = vld [vmem:[%s7431_s2 + $0x32] ss:$0 sm:$0xff] }
 0x631   :  { %v1204_v10 = vsel %vm1203_vm14, %v6529_v7, 0.0  ;;  %v1214_v34 = vmul.f32 %v6529_v7, %v6529_v7 }
 0x632   :  { %v1200_v28 = vsel %vm134_vm0, %v6519_v32, 0.0  ;;  %v1213_v20 = vmul.f32 %v6519_v32, %v6519_v32  ;;  %5547 = vmatprep.subr.bf16.mxu1 %v5546_v41 }
 0x633   :  { %1216 = vadd.xlane.f32.xlu0 %v1215_v31  ;;  %1201 = vadd.xlane.f32.xlu1 %v1200_v28  ;;  %v1224_v37 = vsel %vm1203_vm14, %v1214_v34, 0.0 }
 0x634   :  { %v1221_v9 = vsel %vm134_vm0, %v1213_v20, 0.0  ;;  %5549 = vmatpush3.bf16.msra.mxu1 %v5546_v41  ;;  %v4704_v41 = vld [vmem:[%s7431_s2 + $0x33] ss:$0 sm:$0xff] }
 0x637   :  { %1219 = vadd.xlane.f32.xlu0 %v1218_v52  ;;  %1222 = vadd.xlane.f32.xlu1 %v1221_v9 }
 0x63b   :  { %1205 = vadd.xlane.f32.xlu0 %v1204_v10 }
 0x63f   :  { %1225 = vadd.xlane.f32.xlu0 %v1224_v37 }
 0x6bb   :  { %v1199_v51 = vpop.xlane.xlu1 %1198 }
 0x6bc   :  { %v1196_v17 = vpop.xlane.xlu0 %1195  ;;  %v1208_v59 = vmul.f32 0.11111111, %v1199_v51 }
 0x6bd   :  { %v1207_v18 = vmul.f32 0.11111111, %v1196_v17 }
 0x6be   :  { %v1232_v58 = vmul.f32 %v1208_v59, %v1208_v59  ;;  %v1240_v1 = vsub.f32 %v6507_v50, %v1208_v59 }
 0x6bf   :  { %v1231_v25 = vmul.f32 %v1207_v18, %v1207_v18  ;;  %v1239_v6 = vsub.f32 %v6510_v55, %v1207_v18 }
 0x6c0   :  { %v1217_v23 = vpop.xlane.xlu0 %1216  ;;  %v1202_v2 = vpop.xlane.xlu1 %1201 }
 0x6c1   :  { %v1227_v11 = vmul.f32 0.11111111, %v1217_v23  ;;  %v1209_v63 = vmul.f32 0.11111111, %v1202_v2 }
 0x6c3   :  { %v1235_v19 = vsub.f32 %v1227_v11, %v1231_v25  ;;  %v1233_v38 = vmul.f32 %v1209_v63, %v1209_v63  ;;  %v1241_v31 = vsub.f32 %v6519_v32, %v1209_v63  ;;  %v4709_v63 = vld [vmem:[%s7431_s2 + $0x34] ss:$0 sm:$0xff] }
 0x6c4   :  { %v1220_v54 = vpop.xlane.xlu0 %1219  ;;  %v1223_v36 = vpop.xlane.xlu1 %1222 }
 0x6c5   :  { %v1243_v33 = vadd.f32 1e-05, %v1235_v19  ;;  %v1228_v35 = vmul.f32 0.11111111, %v1220_v54  ;;  %v1229_v24 = vmul.f32 0.11111111, %v1223_v36 }
 0x6c7   :  { %5948 = vrsqrt.f32 %v1243_v33  ;;  %v1236_v39 = vsub.f32 %v1228_v35, %v1232_v58  ;;  %v1237_v44 = vsub.f32 %v1229_v24, %v1233_v38 }
 0x6c8   :  { %v1206_v40 = vpop.xlane.xlu0 %1205 }
 0x6c9   :  { %v1244_v43 = vadd.f32 1e-05, %v1236_v39  ;;  %v1245_v45 = vadd.f32 1e-05, %v1237_v44  ;;  %v1210_v46 = vmul.f32 0.11111111, %v1206_v40 }
 0x6cb   :  { %5950 = vrsqrt.f32 %v1244_v43  ;;  %v1234_v42 = vmul.f32 %v1210_v46, %v1210_v46  ;;  %v1242_v37 = vsub.f32 %v6529_v7, %v1210_v46 }
 0x6cc   :  { %5952 = vrsqrt.f32 %v1245_v45  ;;  %v1226_v4 = vpop.xlane.xlu0 %1225 }
 0x6cd   :  { %v1230_v30 = vmul.f32 0.11111111, %v1226_v4 }
 0x6cf   :  { %v1238_v15 = vsub.f32 %v1230_v30, %v1234_v42 }
 0x6d1   :  { %v5949_v49 = vpop.eup %5948  ;;  %v1246_v56 = vadd.f32 1e-05, %v1238_v15 }
 0x6d2   :  { %v1251_v21 = vmul.f32 %v5949_v49, %v1239_v6 }
 0x6d3   :  { %5954 = vrsqrt.f32 %v1246_v56 }
 0x6d4   :  { %v1259_v3 = vmul.f32 %v4702_v57, %v1251_v21 }
 0x6d5   :  { %v5951_v5 = vpop.eup %5950 }
 0x6d6   :  { %v5953_v28 = vpop.eup %5952  ;;  %v1252_v55 = vmul.f32 %v5951_v5, %v1240_v1  ;;  %v1267_v47 = vadd.f32 %v4703_v0, %v1259_v3  ;;  %v1565_v1 = vld [vmem:[%s7430_s1 + $0x18] sm:$0xff]  ;;  %v1566_v3 = vld [vmem:[%s7430_s1 + $0x20] sm:$0xff] }
 0x6d7   :  { %v1253_v20 = vmul.f32 %v5953_v28, %v1241_v31  ;;  %v5554_v5 = vpack.c.bf16 %v1566_v3, %v1565_v1 }
 0x6d8   :  { %v1260_v52 = vmul.f32 %v4702_v57, %v1252_v55  ;;  %5183 = vmatprep.mubr.msk.f32.mxu1 %vm134_vm0, %v1267_v47 }
 0x6d9   :  { %v1261_v9 = vmul.f32 %v4702_v57, %v1253_v20  ;;  %5555 = vmatprep.subr.bf16.mxu1 %v5554_v5 }
 0x6da   :  { %v1268_v10 = vadd.f32 %v4703_v0, %v1260_v52 }
 0x6db   :  { %v1269_v34 = vadd.f32 %v4703_v0, %v1261_v9 }
 0x6dc   :  { %5184 = vmatmul.mubr.msk.f32.vlgmr.msra.gmra.mrb[8].mxu1 %vm134_vm0, %v1268_v10 }
 0x6dd   :  { %v5955_v53 = vpop.eup %5954  ;;  %5186 = vmatprep.mubr.msk.f32.mxu1 %vm134_vm0, %v1269_v34  ;;  %5557 = vmatpush3.bf16.msra.mxu1 %v5554_v5 }
 0x6de   :  { %v1254_v50 = vmul.f32 %v5955_v53, %v1242_v37 }
 0x6e0   :  { %v1262_v27 = vmul.f32 %v4702_v57, %v1254_v50 }
 0x6e2   :  { %v1270_v32 = vadd.f32 %v4703_v0, %v1262_v27 }
 0x6e4   :  { %5187 = vmatmul.mubr.msk.f32.gmra.mrb[10].mxu1 %vm134_vm0, %v1270_v32 }
 0x7af   :  { %v5185_v14 = vpop.f32.mrb[8].mxu1 }
 0x7b0   :  { %v1362_v16 = vadd.f32 %v5185_v14, %v4704_v41  ;;  %v1356_v26 = vpop.f32.mrb[9].mxu1 }
 0x7b1   :  { %v1357_v51 = vadd.f32 %v4704_v41, %v1356_v26 }
 0x7b2   :  { %v1376_v7 = vmax.f32 %v1362_v16, 0.0 }
 0x7b3   :  { %v1375_v17 = vmax.f32 %v1357_v51, 0.0 }
 0x7b5   :  { %5193 = vmatprep.mubr.msk.f32.mxu0 %vm134_vm0, %v1375_v17 }
 0x7b6   :  { %5194 = vmatmul.mubr.msk.f32.vlgmr.msra.gmra.mrb[16].mxu0 %vm134_vm0, %v1376_v7 }
 0x7b7   :  { %v5188_v18 = vpop.f32.mrb[10].mxu1 }
 0x7b8   :  { %v1372_v59 = vadd.f32 %v5188_v18, %v4704_v41  ;;  %v1366_v23 = vpop.f32.mrb[11].mxu1 }
 0x7b9   :  { %v1367_v2 = vadd.f32 %v4704_v41, %v1366_v23 }
 0x7ba   :  { %v1378_v11 = vmax.f32 %v1372_v59, 0.0 }
 0x7bb   :  { %v1377_v25 = vmax.f32 %v1367_v2, 0.0 }
 0x7bd   :  { %5196 = vmatprep.mubr.msk.f32.mxu0 %vm134_vm0, %v1377_v25 }
 0x7be   :  { %5197 = vmatmul.mubr.msk.f32.gmra.mrb[18].mxu0 %vm134_vm0, %v1378_v11 }
 0x889   :  { %v5195_v19 = vpop.f32.mrb[16].mxu0 }
 0x88a   :  { %v1470_v58 = vadd.f32 %v5195_v19, %v4709_v63  ;;  %v1464_v54 = vpop.f32.mrb[17].mxu0 }
 0x88b   :  { %v1465_v36 = vadd.f32 %v4709_v63, %v1464_v54 }
 0x88c   :  { %v6574_v33 = vadd.f32 %v1470_v58, %v1268_v10 }
 0x88d   :  { %v6576_v38 = vadd.f32 %v1465_v36, %v1267_v47  ;;  %v4714_v36 = vld [vmem:[%s7431_s2 + $0x35] ss:$0 sm:$0xff] }
 0x88e   :  { %v1492_v35 = vsel %vm134_vm0, %v6574_v33, 0.0  ;;  %v1506_v24 = vmul.f32 %v6574_v33, %v6574_v33 }
 0x88f   :  { %1493 = vadd.xlane.f32.xlu0 %v1492_v35  ;;  %v1489_v39 = vsel %vm134_vm0, %v6576_v38, 0.0  ;;  %v1505_v44 = vmul.f32 %v6576_v38, %v6576_v38 }
 0x890   :  { %1490 = vadd.xlane.f32.xlu1 %v1489_v39  ;;  %v1512_v46 = vsel %vm134_vm0, %v1506_v24, 0.0 }
 0x891   :  { %v5198_v40 = vpop.f32.mrb[18].mxu0  ;;  %v1509_v42 = vsel %vm134_vm0, %v1505_v44, 0.0  ;;  %v4715_v44 = vld [vmem:[%s7431_s2 + $0x36] ss:$0 sm:$0xff] }
 0x892   :  { %v1480_v43 = vadd.f32 %v5198_v40, %v4709_v63  ;;  %v1474_v45 = vpop.f32.mrb[19].mxu0 }
 0x893   :  { %v1475_v4 = vadd.f32 %v4709_v63, %v1474_v45  ;;  %1513 = vadd.xlane.f32.xlu0 %v1512_v46 }
 0x894   :  { %v6588_v30 = vadd.f32 %v1480_v43, %v1270_v32  ;;  %1510 = vadd.xlane.f32.xlu1 %v1509_v42 }
 0x895   :  { %v6590_v15 = vadd.f32 %v1475_v4, %v1269_v34 }
 0x896   :  { %v1498_v6 = vsel %vm1203_vm14, %v6588_v30, 0.0  ;;  %v1508_v49 = vmul.f32 %v6588_v30, %v6588_v30 }
 0x897   :  { %1499 = vadd.xlane.f32.xlu0 %v1498_v6  ;;  %v1495_v56 = vsel %vm134_vm0, %v6590_v15, 0.0  ;;  %v1507_v57 = vmul.f32 %v6590_v15, %v6590_v15 }
 0x898   :  { %1496 = vadd.xlane.f32.xlu1 %v1495_v56  ;;  %v1518_v21 = vsel %vm1203_vm14, %v1508_v49, 0.0 }
 0x899   :  { %v1515_v0 = vsel %vm134_vm0, %v1507_v57, 0.0 }
 0x89b   :  { %1519 = vadd.xlane.f32.xlu0 %v1518_v21 }
 0x89c   :  { %1516 = vadd.xlane.f32.xlu1 %v1515_v0 }
 0x91c   :  { %v1494_v31 = vpop.xlane.xlu0 %1493 }
 0x91d   :  { %v1502_v28 = vmul.f32 0.11111111, %v1494_v31  ;;  %v1491_v55 = vpop.xlane.xlu1 %1490 }
 0x91e   :  { %v1501_v47 = vmul.f32 0.11111111, %v1491_v55 }
 0x91f   :  { %v1526_v52 = vmul.f32 %v1502_v28, %v1502_v28  ;;  %v1534_v19 = vsub.f32 %v6574_v33, %v1502_v28 }
 0x920   :  { %v1514_v20 = vpop.xlane.xlu0 %1513  ;;  %v1525_v34 = vmul.f32 %v1501_v47, %v1501_v47  ;;  %v1533_v54 = vsub.f32 %v6576_v38, %v1501_v47 }
 0x921   :  { %v1522_v9 = vmul.f32 0.11111111, %v1514_v20  ;;  %v1511_v10 = vpop.xlane.xlu1 %1510 }
 0x922   :  { %v1521_v37 = vmul.f32 0.11111111, %v1511_v10 }
 0x923   :  { %v1530_v53 = vsub.f32 %v1522_v9, %v1526_v52 }
 0x924   :  { %v1529_v50 = vsub.f32 %v1521_v37, %v1525_v34  ;;  %v1500_v27 = vpop.xlane.xlu0 %1499 }
 0x925   :  { %v1538_v32 = vadd.f32 1e-05, %v1530_v53  ;;  %v1504_v41 = vmul.f32 0.11111111, %v1500_v27  ;;  %v1497_v14 = vpop.xlane.xlu1 %1496 }
 0x926   :  { %v1537_v16 = vadd.f32 1e-05, %v1529_v50  ;;  %v1503_v26 = vmul.f32 0.11111111, %v1497_v14 }
 0x927   :  { %5956 = vrsqrt.f32 %v1538_v32  ;;  %v1528_v17 = vmul.f32 %v1504_v41, %v1504_v41  ;;  %v1536_v33 = vsub.f32 %v6588_v30, %v1504_v41  ;;  %v4716_v30 = vld [vmem:[%s7430_s1 + $0x28] ss:$0 sm:$0xff] }
 0x928   :  { %5958 = vrsqrt.f32 %v1537_v16  ;;  %v1520_v51 = vpop.xlane.xlu0 %1519  ;;  %v1527_v59 = vmul.f32 %v1503_v26, %v1503_v26  ;;  %v1535_v4 = vsub.f32 %v6590_v15, %v1503_v26 }
 0x929   :  { %v1524_v7 = vmul.f32 0.11111111, %v1520_v51  ;;  %v1517_v18 = vpop.xlane.xlu1 %1516 }
 0x92a   :  { %v1523_v23 = vmul.f32 0.11111111, %v1517_v18 }
 0x92b   :  { %v1532_v2 = vsub.f32 %v1524_v7, %v1528_v17 }
 0x92c   :  { %v1531_v25 = vsub.f32 %v1523_v23, %v1527_v59 }
 0x92d   :  { %v1540_v11 = vadd.f32 1e-05, %v1532_v2 }
 0x92e   :  { %v1539_v63 = vadd.f32 1e-05, %v1531_v25 }
 0x92f   :  { %5960 = vrsqrt.f32 %v1540_v11 }
 0x930   :  { %5962 = vrsqrt.f32 %v1539_v63 }
 0x931   :  { %v5957_v58 = vpop.eup %5956 }
 0x932   :  { %v5959_v35 = vpop.eup %5958  ;;  %v1546_v24 = vmul.f32 %v5957_v58, %v1534_v19 }
 0x933   :  { %v1545_v39 = vmul.f32 %v5959_v35, %v1533_v54 }
 0x934   :  { %v1554_v40 = vmul.f32 %v4714_v36, %v1546_v24 }
 0x935   :  { %v1553_v43 = vmul.f32 %v4714_v36, %v1545_v39 }
 0x936   :  { %v6619_v46 = vadd.f32 %v4715_v44, %v1554_v40 }
 0x937   :  { %v6616_v45 = vadd.f32 %v4715_v44, %v1553_v43 }
 0x939   :  { %v5961_v38 = vpop.eup %5960  ;;  %5203 = vmatprep.mubr.msk.f32.mxu1 %vm134_vm0, %v6616_v45 }
 0x93a   :  { %v5963_v42 = vpop.eup %5962  ;;  %5204 = vmatmul.mubr.msk.f32.vlgmr.msra.gmra.mrb[12].mxu1 %vm134_vm0, %v6619_v46  ;;  %v1548_v6 = vmul.f32 %v5961_v38, %v1536_v33 }
 0x93b   :  { %v1547_v49 = vmul.f32 %v5963_v42, %v1535_v4 }
 0x93c   :  { %v1556_v56 = vmul.f32 %v4714_v36, %v1548_v6 }
 0x93d   :  { %v1555_v57 = vmul.f32 %v4714_v36, %v1547_v49 }
 0x93e   :  { %v6628_v0 = vadd.f32 %v4715_v44, %v1556_v56 }
 0x93f   :  { %v6626_v21 = vadd.f32 %v4715_v44, %v1555_v57 }
 0x941   :  { %5206 = vmatprep.mubr.msk.f32.mxu1 %vm134_vm0, %v6626_v21 }
 0x942   :  { %5207 = vmatmul.mubr.msk.f32.gmra.mrb[14].mxu1 %vm134_vm0, %v6628_v0 }
 0xa0d   :  { %v5205_v15 = vpop.f32.mrb[12].mxu1 }
 0xa0e   :  { %v6637_v1 = vadd.f32 %v5205_v15, %v4716_v30  ;;  %v1650_v3 = vpop.f32.mrb[13].mxu1 }
 0xa0f   :  { %v6639_v5 = vadd.f32 %v4716_v30, %v1650_v3 }
 0xa10   :  { %v2000_v31 = vmul.f32 %v6329_v8, %v6637_v1  ;;  %v6657_v9 = vmul.f32 %v6354_v29, %v6637_v1  ;;  %v6667_v37 = vmul.f32 %v6637_v1, %v6413_v48  ;;  %v1670_v33 = vmul.f32 %v6206_v61, %v6637_v1 }
 0xa11   :  { %v5820_v28 = vpack.i.bf16 %v6637_v1, %v6639_v5  ;;  %v1669_v55 = vmul.f32 %v6206_v61, %v6639_v5  ;;  %v1846_v47 = vmul.f32 %v6209_v62, %v6639_v5  ;;  %v1999_v20 = vmul.f32 %v6329_v8, %v6639_v5 }
 0xa12   :  { %v6653_v52 = vmul.f32 %v6354_v29, %v6639_v5  ;;  %v6661_v10 = vmul.f32 %v6639_v5, %v6413_v48  ;;  %v1847_v38 = vmul.f32 %v6209_v62, %v6637_v1  ;;  %v2231_v56 = vmul.f32 %v6267_v22, %v6639_v5 }
 0xa13   :  { %5821 = vrot.lane.b32.xlu1 %v5820_v28, %s6104_s22  ;;  %5217 = vmatprep.mubr.msk.f32.mxu0 %vm134_vm0, %v1669_v55  ;;  %v5830_v34 = vpack.i.bf16 %v2000_v31, %v1999_v20  ;;  %v2232_v57 = vmul.f32 %v6267_v22, %v6637_v1  ;;  %v6092_v1 = vld [vmem:[%s7430_s1 + $0x68] sm:$0xff] }
 0xa14   :  { %5231 = vmatprep.mubr.msk.f32.mxu1 %vm134_vm0, %v1846_v47  ;;  %v5840_v53 = vpack.i.bf16 %v6657_v9, %v6653_v52  ;;  %v5850_v27 = vpack.i.bf16 %v6667_v37, %v6661_v10  ;;  %v2506_v10 = vld [vmem:[%s7431_s2 + $0x38] sm:$0xff]  ;;  %v2507_v37 = vld [vmem:[%s7431_s2 + $0x40] sm:$0xff] }
 0xa15   :  { %v5208_v50 = vpop.f32.mrb[14].mxu1 }
 0xa16   :  { %v1666_v32 = vadd.f32 %v5208_v50, %v4716_v30  ;;  %v1660_v41 = vpop.f32.mrb[15].mxu1 }
 0xa17   :  { %v1661_v14 = vadd.f32 %v4716_v30, %v1660_v41  ;;  %5831 = vrot.lane.b32.xlu1 %v5830_v34, %s6106_s4 }
 0xa18   :  { %v6676_v16 = vmul.f32 %v6329_v8, %v1666_v32  ;;  %v6685_v7 = vmul.f32 %v6354_v29, %v1666_v32  ;;  %v6692_v59 = vmul.f32 %v1666_v32, %v6413_v48  ;;  %v1672_v6 = vmul.f32 %v6206_v61, %v1666_v32 }
 0xa19   :  { %v5825_v26 = vpack.i.bf16 %v1666_v32, %v1661_v14  ;;  %v6679_v51 = vmul.f32 %v6329_v8, %v1661_v14  ;;  %v6682_v17 = vmul.f32 %v6354_v29, %v1661_v14  ;;  %v6688_v18 = vmul.f32 %v1661_v14, %v6413_v48 }
 0xa1a   :  { %v1671_v4 = vmul.f32 %v6206_v61, %v1661_v14  ;;  %v1848_v42 = vmul.f32 %v6209_v62, %v1661_v14  ;;  %v1849_v49 = vmul.f32 %v6209_v62, %v1666_v32  ;;  %v2233_v30 = vmul.f32 %v6267_v22, %v1661_v14 }
 0xa1b   :  { %5826 = vrot.lane.b32.xlu0 %v5825_v26, %s6104_s22  ;;  %v5835_v23 = vpack.i.bf16 %v6676_v16, %v6679_v51  ;;  %v5845_v2 = vpack.i.bf16 %v6685_v7, %v6682_v17  ;;  %v5855_v25 = vpack.i.bf16 %v6692_v59, %v6688_v18  ;;  %v2234_v15 = vmul.f32 %v6267_v22, %v1666_v32  ;;  %v6093_v32 = vld [vmem:[%s7430_s1 + $0x60] sm:$0xff] }
 0xa85   :  { %v5822_v11 = vpop.permute.xlu1 %5821 }
 0xa86   :  { %v5824_v63 = vunpack.i.h.bf16 %v5822_v11  ;;  %v5823_v19 = vunpack.i.l.bf16 %v5822_v11 }
 0xa88   :  { %v5558_v58 = vpack.c.bf16 %v5824_v63, %v5823_v19 }
 0xa89   :  { %v5832_v54 = vpop.permute.xlu1 %5831 }
 0xa8a   :  { %5560 = vmatprep.subr.msk.bf16.mxu0 %vm6234_vm5, %v5558_v58  ;;  %5572 = vmatprep.subr.msk.bf16.mxu1 %vm6234_vm5, %v5558_v58  ;;  %v5834_v35 = vunpack.i.h.bf16 %v5832_v54  ;;  %v5833_v24 = vunpack.i.l.bf16 %v5832_v54 }
 0xa8b   :  { %5563 = vmatpush3.bf16.xpose.msk.msra.mxu0 %vm6234_vm5, %v5558_v58  ;;  %5575 = vmatpush3.bf16.xpose.msk.msra.mxu1 %vm6234_vm5, %v5558_v58 }
 0xa8c   :  { %v5582_v43 = vpack.c.bf16 %v5834_v35, %v5833_v24 }
 0xa8d   :  { %v5827_v36 = vpop.permute.xlu0 %5826 }
 0xa8e   :  { %v5829_v39 = vunpack.i.h.bf16 %v5827_v36  ;;  %v5828_v44 = vunpack.i.l.bf16 %v5827_v36 }
 0xa90   :  { %v5564_v40 = vpack.c.bf16 %v5829_v39, %v5828_v44 }
 0xa92   :  { %5566 = vmatprep.subr.msk.bf16.mxu0 %vm6234_vm5, %v5564_v40  ;;  %5578 = vmatprep.subr.msk.bf16.mxu1 %vm6234_vm5, %v5564_v40 }
 0xa93   :  { %5569 = vmatpush3.bf16.xpose.msk.msra.mxu0 %vm6234_vm5, %v5564_v40  ;;  %5581 = vmatpush3.bf16.xpose.msk.msra.mxu1 %vm6234_vm5, %v5564_v40 }
 0xa94   :  { %5583 = vmatprep.subr.bf16.mxu0 %v5582_v43  ;;  %5604 = vmatprep.subr.msk.bf16.mxu1 %vm6234_vm5, %v5558_v58 }
 0xa9a   :  { %5218 = vmatmul.mubr.msk.f32.vlgmr.msra.gmra.mrb[20].mxu0 %vm134_vm0, %v1670_v33  ;;  %5232 = vmatmul.mubr.msk.f32.vlgmr.msra.gmra.mrb[16].mxu1 %vm134_vm0, %v1847_v38  ;;  %v6094_v33 = vld [vmem:[%s7430_s1 + $0x78] sm:$0x3] }
 0xa9b   :  { %5220 = vmatprep.mubr.msk.f32.mxu0 %vm134_vm0, %v1671_v4  ;;  %5234 = vmatprep.mubr.msk.f32.mxu1 %vm134_vm0, %v1848_v42  ;;  %v6095_v4 = vld [vmem:[%s7430_s1 + $0x70] sm:$0xff] }
 0xa9c   :  { %5585 = vmatpush3.bf16.msra.mxu0 %v5582_v43  ;;  %5607 = vmatpush3.bf16.xpose.msk.msra.mxu1 %vm6234_vm5, %v5558_v58 }
 0xa9d   :  { %5610 = vmatprep.subr.msk.bf16.mxu1 %vm6234_vm5, %v5564_v40 }
 0xa9e   :  { %5221 = vmatmul.mubr.msk.f32.gmra.mrb[22].mxu0 %vm134_vm0, %v1672_v6  ;;  %5235 = vmatmul.mubr.msk.f32.gmra.mrb[18].mxu1 %vm134_vm0, %v1849_v49 }
 0xa9f   :  { %5273 = vmatprep.mubr.msk.f32.mxu1 %vm134_vm0, %v2231_v56 }
 0xaa4   :  { %5613 = vmatpush3.bf16.xpose.msk.msra.mxu1 %vm6234_vm5, %v5564_v40 }
 0xaab   :  { %5274 = vmatmul.mubr.msk.f32.vlgmr.msra.gmra.mrb[20].mxu1 %vm134_vm0, %v2232_v57 }
 0xaac   :  { %5276 = vmatprep.mubr.msk.f32.mxu1 %vm134_vm0, %v2233_v30 }
 0xaaf   :  { %5277 = vmatmul.mubr.msk.f32.gmra.mrb[22].mxu1 %vm134_vm0, %v2234_v15 }
 0xb6d   :  { %v5219_v3 = vpop.f32.mrb[20].mxu0  ;;  %v5233_v5 = vpop.f32.mrb[16].mxu1 }
 0xb6e   :  { %v1791_v31 = vmul.f32 0.57735026, %v5219_v3  ;;  %v1948_v28 = vmul.f32 0.57735026, %v5233_v5  ;;  %v1771_v55 = vpop.f32.mrb[21].mxu0  ;;  %v1928_v47 = vpop.f32.mrb[17].mxu1 }
 0xb6f   :  { %v1790_v20 = vmul.f32 0.57735026, %v1771_v55  ;;  %v1947_v34 = vmul.f32 0.57735026, %v1928_v47 }
 0xb70   :  { %v1952_v50 = vadd.f32 %v6092_v1, %v1948_v28  ;;  %v1795_v19 = vadd.f32 %v6092_v1, %v1791_v31 }
 0xb71   :  { %v5222_v41 = vpop.f32.mrb[22].mxu0  ;;  %v5236_v14 = vpop.f32.mrb[18].mxu1  ;;  %v1951_v26 = vadd.f32 %v6093_v32, %v1947_v34  ;;  %v1794_v58 = vadd.f32 %v6093_v32, %v1790_v20 }
 0xb72   :  { %v1781_v11 = vpop.f32.mrb[23].mxu0  ;;  %v1938_v63 = vpop.f32.mrb[19].mxu1  ;;  %v1950_v54 = vmul.f32 0.57735026, %v5236_v14  ;;  %v1958_v35 = vsel %vm361_vm9, %v1952_v50, -inf  ;;  %v1801_v40 = vsel %vm361_vm9, %v1795_v19, -inf }
 0xb73   :  { %v1949_v36 = vmul.f32 0.57735026, %v1938_v63  ;;  %v1955_v24 = vsel %vm361_vm9, %v1951_v26, -inf  ;;  %1959 = vmax.xlane.f32.xlu0 %v1958_v35  ;;  %v1793_v39 = vmul.f32 0.57735026, %v5222_v41  ;;  %v1798_v43 = vsel %vm361_vm9, %v1794_v58, -inf }
 0xb74   :  { %1956 = vmax.xlane.f32.xlu1 %v1955_v24  ;;  %v1792_v44 = vmul.f32 0.57735026, %v1781_v11  ;;  %v1954_v38 = vadd.f32 %v6094_v33, %v1950_v54 }
 0xb75   :  { %v1953_v42 = vadd.f32 %v6095_v4, %v1949_v36  ;;  %v1797_v56 = vadd.f32 %v6094_v33, %v1793_v39 }
 0xb76   :  { %v1964_v6 = vsel %vm371_vm10, %v1954_v38, -inf  ;;  %v1796_v57 = vadd.f32 %v6095_v4, %v1792_v44 }
 0xb77   :  { %1802 = vmax.xlane.f32.xlu0 %v1801_v40  ;;  %v1961_v49 = vsel %vm361_vm9, %v1953_v42, -inf  ;;  %v1807_v5 = vsel %vm371_vm10, %v1797_v56, -inf }
 0xb78   :  { %1799 = vmax.xlane.f32.xlu1 %v1798_v43  ;;  %v1804_v31 = vsel %vm361_vm9, %v1796_v57, -inf }
 0xb7b   :  { %1965 = vmax.xlane.f32.xlu0 %v1964_v6 }
 0xb7c   :  { %1962 = vmax.xlane.f32.xlu1 %v1961_v49 }
 0xb7e   :  { %v5275_v30 = vpop.f32.mrb[20].mxu1 }
 0xb7f   :  { %v2333_v15 = vmul.f32 0.57735026, %v5275_v30  ;;  %v2313_v3 = vpop.f32.mrb[21].mxu1  ;;  %1808 = vmax.xlane.f32.xlu0 %v1807_v5 }
 0xb80   :  { %v2332_v28 = vmul.f32 0.57735026, %v2313_v3  ;;  %1805 = vmax.xlane.f32.xlu1 %v1804_v31 }
 0xb81   :  { %v2337_v55 = vadd.f32 %v6092_v1, %v2333_v15 }
 0xb82   :  { %v5278_v47 = vpop.f32.mrb[22].mxu1  ;;  %v2336_v20 = vadd.f32 %v6093_v32, %v2332_v28 }
 0xb83   :  { %v2335_v34 = vmul.f32 0.57735026, %v5278_v47  ;;  %v2323_v41 = vpop.f32.mrb[23].mxu1  ;;  %v2343_v14 = vsel %vm361_vm9, %v2337_v55, -inf }
 0xb84   :  { %2344 = vmax.xlane.f32.xlu0 %v2343_v14  ;;  %v2340_v11 = vsel %vm361_vm9, %v2336_v20, -inf  ;;  %v2334_v1 = vmul.f32 0.57735026, %v2323_v41 }
 0xb85   :  { %2341 = vmax.xlane.f32.xlu1 %v2340_v11  ;;  %v6770_v63 = vadd.f32 %v6094_v33, %v2335_v34 }
 0xb86   :  { %v6782_v32 = vadd.f32 %v6095_v4, %v2334_v1 }
 0xb87   :  { %v2349_v54 = vsel %vm371_vm10, %v6770_v63, -inf }
 0xb88   :  { %2350 = vmax.xlane.f32.xlu0 %v2349_v54  ;;  %v2346_v36 = vsel %vm361_vm9, %v6782_v32, -inf }
 0xb96   :  { %5841 = vrot.lane.b32.xlu1 %v5840_v53, %s6106_s4 }
 0xb9e   :  { %5836 = vrot.lane.b32.xlu0 %v5835_v23, %s6106_s4 }
 0xbba   :  { %2347 = vmax.xlane.f32.xlu1 %v2346_v36 }
 0xc00   :  { %v1960_v35 = vpop.xlane.xlu0 %1959 }
 0xc01   :  { %v1957_v24 = vpop.xlane.xlu1 %1956  ;;  %v1968_v39 = vsub.f32 %v1952_v50, %v1960_v35 }
 0xc02   :  { %v1967_v44 = vsub.f32 %v1951_v26, %v1957_v24 }
 0xc03   :  { %v1973_v40 = vmul.f32 1.442695, %v1968_v39 }
 0xc04   :  { %v1971_v43 = vmul.f32 1.442695, %v1967_v44  ;;  %v1803_v52 = vpop.xlane.xlu0 %1802 }
 0xc05   :  { %v1800_v9 = vpop.xlane.xlu1 %1799  ;;  %5964 = vpow2.f32 %v1973_v40  ;;  %v1811_v53 = vsub.f32 %v1795_v19, %v1803_v52 }
 0xc06   :  { %v1810_v33 = vsub.f32 %v1794_v58, %v1800_v9  ;;  %5966 = vpow2.f32 %v1971_v43 }
 0xc07   :  { %v1816_v16 = vmul.f32 1.442695, %v1811_v53 }
 0xc08   :  { %v1814_v51 = vmul.f32 1.442695, %v1810_v33  ;;  %v1966_v23 = vpop.xlane.xlu0 %1965 }
 0xc09   :  { %v1963_v4 = vpop.xlane.xlu1 %1962  ;;  %5968 = vpow2.f32 %v1816_v16  ;;  %v1970_v6 = vsub.f32 %v1954_v38, %v1966_v23 }
 0xc0a   :  { %v1969_v49 = vsub.f32 %v1953_v42, %v1963_v4  ;;  %5970 = vpow2.f32 %v1814_v51 }
 0xc0b   :  { %v1977_v30 = vmul.f32 1.442695, %v1970_v6 }
 0xc0c   :  { %v1975_v15 = vmul.f32 1.442695, %v1969_v49  ;;  %v1809_v50 = vpop.xlane.xlu0 %1808 }
 0xc0d   :  { %v1806_v26 = vpop.xlane.xlu1 %1805  ;;  %5972 = vpow2.f32 %v1977_v30  ;;  %v1813_v3 = vsub.f32 %v1797_v56, %v1809_v50 }
 0xc0e   :  { %v1812_v5 = vsub.f32 %v1796_v57, %v1806_v26  ;;  %5974 = vpow2.f32 %v1975_v15 }
 0xc0f   :  { %v6786_v31 = vpop.eup %5964  ;;  %v1820_v19 = vmul.f32 1.442695, %v1813_v3 }
 0xc10   :  { %v1818_v58 = vmul.f32 1.442695, %v1812_v5  ;;  %v6788_v28 = vpop.eup %5966  ;;  %v1982_v38 = vsel %vm361_vm9, %v6786_v31, 0.0 }
 0xc11   :  { %v2345_v47 = vpop.xlane.xlu0 %2344  ;;  %5976 = vpow2.f32 %v1820_v19  ;;  %1983 = vadd.xlane.f32.xlu0 %v1982_v38  ;;  %v1979_v41 = vsel %vm361_vm9, %v6788_v28, 0.0 }
 0xc12   :  { %v2353_v42 = vsub.f32 %v2337_v55, %v2345_v47  ;;  %v2342_v34 = vpop.xlane.xlu1 %2341  ;;  %5978 = vpow2.f32 %v1818_v58  ;;  %1980 = vadd.xlane.f32.xlu1 %v1979_v41 }
 0xc13   :  { %v2352_v56 = vsub.f32 %v2336_v20, %v2342_v34  ;;  %v6794_v57 = vpop.eup %5968 }
 0xc14   :  { %v2358_v14 = vmul.f32 1.442695, %v2353_v42  ;;  %v6796_v11 = vpop.eup %5970  ;;  %v1825_v36 = vsel %vm361_vm9, %v6794_v57, 0.0 }
 0xc15   :  { %v2356_v54 = vmul.f32 1.442695, %v2352_v56  ;;  %v2351_v1 = vpop.xlane.xlu0 %2350  ;;  %1826 = vadd.xlane.f32.xlu0 %v1825_v36  ;;  %v1822_v24 = vsel %vm361_vm9, %v6796_v11, 0.0 }
 0xc16   :  { %5980 = vpow2.f32 %v2358_v14  ;;  %v2355_v55 = vsub.f32 %v6770_v63, %v2351_v1  ;;  %v5842_v35 = vpop.permute.xlu1 %5841  ;;  %1823 = vadd.xlane.f32.xlu1 %v1822_v24 }
 0xc17   :  { %5982 = vpow2.f32 %v2356_v54  ;;  %v6803_v20 = vpop.eup %5972  ;;  %v5844_v40 = vunpack.i.h.bf16 %v5842_v35  ;;  %v5843_v43 = vunpack.i.l.bf16 %v5842_v35 }
 0xc18   :  { %v2362_v39 = vmul.f32 1.442695, %v2355_v55  ;;  %v6805_v44 = vpop.eup %5974  ;;  %v1988_v9 = vsel %vm371_vm10, %v6803_v20, 0.0 }
 0xc19   :  { %v5837_v52 = vpop.permute.xlu0 %5836  ;;  %1989 = vadd.xlane.f32.xlu0 %v1988_v9  ;;  %v1985_v33 = vsel %vm361_vm9, %v6805_v44, 0.0  ;;  %v5592_v6 = vpack.c.bf16 %v5844_v40, %v5843_v43 }
 0xc1a   :  { %5984 = vpow2.f32 %v2362_v39  ;;  %v5839_v63 = vunpack.i.h.bf16 %v5837_v52  ;;  %v5838_v53 = vunpack.i.l.bf16 %v5837_v52  ;;  %1986 = vadd.xlane.f32.xlu1 %v1985_v33 }
 0xc1b   :  { %v6811_v16 = vpop.eup %5976 }
 0xc1c   :  { %v5586_v51 = vpack.c.bf16 %v5839_v63, %v5838_v53  ;;  %v6813_v23 = vpop.eup %5978  ;;  %v1831_v4 = vsel %vm371_vm10, %v6811_v16, 0.0 }
 0xc1d   :  { %1832 = vadd.xlane.f32.xlu0 %v1831_v4  ;;  %v1828_v49 = vsel %vm361_vm9, %v6813_v23, 0.0 }
 0xc1e   :  { %5588 = vmatprep.subr.msk.bf16.mxu0 %vm6425_vm13, %v5586_v51  ;;  %1829 = vadd.xlane.f32.xlu1 %v1828_v49 }
 0xc1f   :  { %5591 = vmatpush3.bf16.msk.msra.mxu0 %vm6425_vm13, %v5586_v51 }
 0xc20   :  { %v6823_v30 = vpop.eup %5980  ;;  %5593 = vmatprep.subr.bf16.mxu0 %v5592_v6 }
 0xc21   :  { %v6825_v15 = vpop.eup %5982  ;;  %v2367_v50 = vsel %vm361_vm9, %v6823_v30, 0.0 }
 0xc22   :  { %2368 = vadd.xlane.f32.xlu0 %v2367_v50  ;;  %v2364_v26 = vsel %vm361_vm9, %v6825_v15, 0.0 }
 0xc23   :  { %2365 = vadd.xlane.f32.xlu1 %v2364_v26 }
 0xc24   :  { %v6831_v3 = vpop.eup %5984 }
 0xc25   :  { %v2373_v5 = vsel %vm371_vm10, %v6831_v3, 0.0 }
 0xc26   :  { %2374 = vadd.xlane.f32.xlu0 %v2373_v5 }
 0xc34   :  { %5851 = vrot.lane.b32.xlu1 %v5850_v27, %s6106_s4  ;;  %v5624_v27 = vpack.c.bf16 %v2507_v37, %v2506_v10 }
 0xc36   :  { %5625 = vmatprep.subr.bf16.mxu1 %v5624_v27 }
 0xc37   :  { %5627 = vmatpush3.bf16.msra.mxu1 %v5624_v27 }
 0xc3c   :  { %5846 = vrot.lane.b32.xlu0 %v5845_v2, %s6106_s4 }
 0xc47   :  { %v2348_v19 = vpop.xlane.xlu1 %2347 }
 0xc48   :  { %v2354_v58 = vsub.f32 %v6782_v32, %v2348_v19 }
 0xc4a   :  { %v2360_v47 = vmul.f32 1.442695, %v2354_v58 }
 0xc4c   :  { %5986 = vpow2.f32 %v2360_v47 }
 0xc56   :  { %v6844_v38 = vpop.eup %5986 }
 0xc57   :  { %v2370_v42 = vsel %vm361_vm9, %v6844_v38, 0.0 }
 0xc58   :  { %2371 = vadd.xlane.f32.xlu1 %v2370_v42 }
 0xc69   :  { %5856 = vrot.lane.b32.xlu1 %v5855_v25, %s6106_s4 }
 0xc9e   :  { %v1984_v17 = vpop.xlane.xlu0 %1983 }
 0xc9f   :  { %5988 = vrcp.f32 %v1984_v17  ;;  %v1981_v7 = vpop.xlane.xlu1 %1980 }
 0xca0   :  { %5990 = vrcp.f32 %v1981_v7 }
 0xca2   :  { %v1827_v2 = vpop.xlane.xlu0 %1826 }
 0xca3   :  { %v1824_v32 = vpop.xlane.xlu1 %1823 }
 0xca4   :  { %5992 = vrcp.f32 %v1824_v32 }
 0xca6   :  { %v1990_v18 = vpop.xlane.xlu0 %1989 }
 0xca7   :  { %5994 = vrcp.f32 %v1990_v18  ;;  %v1987_v59 = vpop.xlane.xlu1 %1986 }
 0xca8   :  { %5996 = vrcp.f32 %v1987_v59 }
 0xca9   :  { %v5989_v25 = vpop.eup %5988  ;;  %5998 = vrcp.f32 %v1827_v2 }
 0xcaa   :  { %v5991_v34 = vpop.eup %5990  ;;  %v1833_v41 = vpop.xlane.xlu0 %1832  ;;  %v1996_v54 = vmul.f32 %v5989_v25, %v6786_v31 }
 0xcab   :  { %v1830_v56 = vpop.xlane.xlu1 %1829  ;;  %v1995_v14 = vmul.f32 %v5991_v34, %v6788_v28 }
 0xcac   :  { %6000 = vrcp.f32 %v1830_v56 }
 0xcad   :  { %5245 = vmatprep.mubr.msk.f32.mxu0 %vm361_vm9, %v1995_v14  ;;  %6002 = vrcp.f32 %v1833_v41 }
 0xcae   :  { %5246 = vmatmul.mubr.msk.f32.vlgmr.msra.gmra.mrb[24].mxu0 %vm361_vm9, %v1996_v54  ;;  %v5993_v55 = vpop.eup %5992 }
 0xcaf   :  { %v2369_v1 = vpop.xlane.xlu0 %2368  ;;  %5595 = vmatpush3.bf16.msra.mxu0 %v5592_v6  ;;  %v1838_v31 = vmul.f32 %v5993_v55, %v6796_v11 }
 0xcb0   :  { %v2366_v36 = vpop.xlane.xlu1 %2365 }
 0xcb1   :  { %v5995_v35 = vpop.eup %5994  ;;  %6004 = vrcp.f32 %v2366_v36 }
 0xcb2   :  { %v5997_v24 = vpop.eup %5996  ;;  %v1998_v28 = vmul.f32 %v5995_v35, %v6803_v20  ;;  %6006 = vrcp.f32 %v2369_v1 }
 0xcb3   :  { %v2375_v39 = vpop.xlane.xlu0 %2374  ;;  %v1997_v40 = vmul.f32 %v5997_v24, %v6805_v44  ;;  %v5999_v44 = vpop.eup %5998 }
 0xcb4   :  { %v5852_v43 = vpop.permute.xlu1 %5851  ;;  %v1839_v11 = vmul.f32 %v5999_v44, %v6794_v57 }
 0xcb5   :  { %5248 = vmatprep.mubr.msk.f32.mxu0 %vm361_vm9, %v1997_v40  ;;  %v5854_v9 = vunpack.i.h.bf16 %v5852_v43  ;;  %v5853_v63 = vunpack.i.l.bf16 %v5852_v43 }
 0xcb6   :  { %5249 = vmatmul.mubr.msk.f32.gmra.mrb[26].mxu0 %vm361_vm9, %v1998_v28  ;;  %v6001_v4 = vpop.eup %6000 }
 0xcb7   :  { %v5847_v52 = vpop.permute.xlu0 %5846  ;;  %5259 = vmatprep.mubr.msk.f32.mxu0 %vm361_vm9, %v1838_v31  ;;  %v5614_v6 = vpack.c.bf16 %v5854_v9, %v5853_v63  ;;  %v6003_v20 = vpop.eup %6002  ;;  %v1840_v49 = vmul.f32 %v6001_v4, %v6813_v23  ;;  %v2693_v9 = vld [vmem:[%s7431_s2 + $0x50] sm:$0xff] }
 0xcb8   :  { %v5849_v53 = vunpack.i.h.bf16 %v5847_v52  ;;  %v5848_v33 = vunpack.i.l.bf16 %v5847_v52  ;;  %v1841_v26 = vmul.f32 %v6003_v20, %v6811_v16 }
 0xcba   :  { %v5596_v51 = vpack.c.bf16 %v5849_v53, %v5848_v33  ;;  %v2800_v53 = vld [vmem:[%s7431_s2 + $0x58] sm:$0xff]  ;;  %v2801_v33 = vld [vmem:[%s7431_s2 + $0x60] sm:$0xff] }
 0xcbb   :  { %v6005_v50 = vpop.eup %6004 }
 0xcbc   :  { %5598 = vmatprep.subr.msk.bf16.mxu0 %vm6425_vm13, %v5596_v51  ;;  %v2380_v5 = vmul.f32 %v6005_v50, %v6825_v15  ;;  %v6007_v42 = vpop.eup %6006 }
 0xcbd   :  { %5601 = vmatpush3.bf16.msk.msra.mxu0 %vm6425_vm13, %v5596_v51  ;;  %v2381_v15 = vmul.f32 %v6007_v42, %v6823_v30  ;;  %v4760_v30 = vld [vmem:[%s7431_s2 + $0x68] ss:$0 sm:$0xff]  ;;  %v5632_v51 = vpack.c.bf16 %v2801_v33, %v2800_v53 }
 0xcbe   :  { %5615 = vmatprep.subr.bf16.mxu0 %v5614_v6 }
 0xcbf   :  { %5633 = vmatprep.subr.bf16.mxu1 %v5632_v51 }
 0xcc0   :  { %5260 = vmatmul.mubr.msk.f32.vlgmr.msra.gmra.mrb[24].mxu0 %vm361_vm9, %v1839_v11 }
 0xcc1   :  { %5262 = vmatprep.mubr.msk.f32.mxu0 %vm361_vm9, %v1840_v49  ;;  %5617 = vmatpush3.bf16.msra.mxu0 %v5614_v6 }
 0xcc4   :  { %5263 = vmatmul.mubr.msk.f32.gmra.mrb[26].mxu0 %vm361_vm9, %v1841_v26 }
 0xcc5   :  { %5287 = vmatprep.mubr.msk.f32.mxu0 %vm361_vm9, %v2380_v5 }
 0xce5   :  { %v2372_v57 = vpop.xlane.xlu1 %2371 }
 0xce6   :  { %6008 = vrcp.f32 %v2372_v57 }
 0xce7   :  { %6010 = vrcp.f32 %v2375_v39 }
 0xce9   :  { %v5857_v19 = vpop.permute.xlu1 %5856 }
 0xcea   :  { %v5859_v23 = vunpack.i.h.bf16 %v5857_v19  ;;  %v5858_v58 = vunpack.i.l.bf16 %v5857_v19 }
 0xcec   :  { %v5618_v47 = vpack.c.bf16 %v5859_v23, %v5858_v58 }
 0xcee   :  { %5620 = vmatprep.subr.msk.bf16.mxu0 %vm6425_vm13, %v5618_v47 }
 0xcef   :  { %5623 = vmatpush3.bf16.msk.msra.mxu0 %vm6425_vm13, %v5618_v47 }
 0xcf0   :  { %v6009_v16 = vpop.eup %6008 }
 0xcf1   :  { %v6011_v10 = vpop.eup %6010  ;;  %v2382_v37 = vmul.f32 %v6009_v16, %v6844_v38 }
 0xcf2   :  { %5288 = vmatmul.mubr.msk.f32.vlgmr.msra.gmra.mrb[24].mxu0 %vm361_vm9, %v2381_v15  ;;  %v2383_v27 = vmul.f32 %v6011_v10, %v6831_v3 }
 0xcf3   :  { %5290 = vmatprep.mubr.msk.f32.mxu0 %vm361_vm9, %v2382_v37 }
 0xcf6   :  { %5291 = vmatmul.mubr.msk.f32.gmra.mrb[26].mxu0 %vm361_vm9, %v2383_v27 }
 0xdc5   :  { %v5289_v17 = vpop.f32.mrb[24].mxu0 }
 0xdc6   :  { %v2483_v7 = vpop.f32.mrb[25].mxu0 }
 0xdc7   :  { %5297 = vmatprep.mubr.msk.f32.mxu1 %vm134_vm0, %v2483_v7 }
 0xdc8   :  { %5298 = vmatmul.mubr.msk.f32.vlgmr.msra.gmra.mrb[24].mxu1 %vm134_vm0, %v5289_v17 }
 0xdc9   :  { %v5292_v2 = vpop.f32.mrb[26].mxu0  ;;  %5635 = vmatpush3.bf16.msra.mxu1 %v5632_v51 }
 0xdca   :  { %v2493_v32 = vpop.f32.mrb[27].mxu0 }
 0xdcb   :  { %5300 = vmatprep.mubr.msk.f32.mxu1 %vm134_vm0, %v2493_v32 }
 0xdcc   :  { %5301 = vmatmul.mubr.msk.f32.gmra.mrb[26].mxu1 %vm134_vm0, %v5292_v2 }
 0xe9b   :  { %v5299_v38 = vpop.f32.mrb[24].mxu1 }
 0xe9c   :  { %v2597_v3 = vadd.f32 %v5299_v38, %v4760_v30  ;;  %v2591_v18 = vpop.f32.mrb[25].mxu1 }
 0xe9d   :  { %v2592_v59 = vadd.f32 %v4760_v30, %v2591_v18 }
 0xe9e   :  { %v6898_v25 = vadd.f32 %v2597_v3, %v6619_v46 }
 0xe9f   :  { %v6901_v34 = vadd.f32 %v2592_v59, %v6616_v45  ;;  %v5302_v41 = vpop.f32.mrb[26].mxu1 }
 0xea0   :  { %v2601_v56 = vpop.f32.mrb[27].mxu1  ;;  %v2619_v14 = vsel %vm134_vm0, %v6898_v25, 0.0  ;;  %v2607_v55 = vadd.f32 %v5302_v41, %v4760_v30  ;;  %v2633_v24 = vmul.f32 %v6898_v25, %v6898_v25 }
 0xea1   :  { %v2602_v54 = vadd.f32 %v4760_v30, %v2601_v56  ;;  %2620 = vadd.xlane.f32.xlu1 %v2619_v14  ;;  %v2616_v1 = vsel %vm134_vm0, %v6901_v34, 0.0  ;;  %v2632_v36 = vmul.f32 %v6901_v34, %v6901_v34  ;;  %v4765_v56 = vld [vmem:[%s7431_s2 + $0x69] ss:$0 sm:$0xff] }
 0xea2   :  { %2617 = vadd.xlane.f32.xlu0 %v2616_v1  ;;  %v6920_v40 = vadd.f32 %v2607_v55, %v6628_v0  ;;  %v2692_v0 = vld [vmem:[%s7431_s2 + $0x48] sm:$0xff] }
 0xea3   :  { %v6910_v46 = vadd.f32 %v2602_v54, %v6626_v21  ;;  %v2636_v45 = vsel %vm134_vm0, %v2632_v36, 0.0  ;;  %v2639_v21 = vsel %vm134_vm0, %v2633_v24, 0.0  ;;  %v5628_v63 = vpack.c.bf16 %v2693_v9, %v2692_v0  ;;  %v4766_v54 = vld [vmem:[%s7431_s2 + $0x6a] ss:$0 sm:$0xff] }
 0xea4   :  { %v2625_v28 = vsel %vm1203_vm14, %v6920_v40, 0.0  ;;  %v2635_v31 = vmul.f32 %v6920_v40, %v6920_v40 }
 0xea5   :  { %v2622_v35 = vsel %vm134_vm0, %v6910_v46, 0.0  ;;  %v2634_v39 = vmul.f32 %v6910_v46, %v6910_v46  ;;  %5629 = vmatprep.subr.bf16.mxu0 %v5628_v63 }
 0xea6   :  { %2637 = vadd.xlane.f32.xlu0 %v2636_v45  ;;  %2623 = vadd.xlane.f32.xlu1 %v2622_v35  ;;  %v2645_v52 = vsel %vm1203_vm14, %v2635_v31, 0.0 }
 0xea7   :  { %v2642_v43 = vsel %vm134_vm0, %v2634_v39, 0.0  ;;  %5631 = vmatpush3.bf16.msra.mxu0 %v5628_v63  ;;  %v4767_v63 = vld [vmem:[%s7431_s2 + $0x6b] ss:$0 sm:$0xff] }
 0xeaa   :  { %2640 = vadd.xlane.f32.xlu0 %v2639_v21  ;;  %2643 = vadd.xlane.f32.xlu1 %v2642_v43 }
 0xeae   :  { %2626 = vadd.xlane.f32.xlu0 %v2625_v28 }
 0xeb2   :  { %2646 = vadd.xlane.f32.xlu0 %v2645_v52 }
 0xf2e   :  { %v2621_v44 = vpop.xlane.xlu1 %2620 }
 0xf2f   :  { %v2618_v4 = vpop.xlane.xlu0 %2617  ;;  %v2629_v11 = vmul.f32 0.11111111, %v2621_v44 }
 0xf30   :  { %v2628_v6 = vmul.f32 0.11111111, %v2618_v4 }
 0xf31   :  { %v2653_v19 = vmul.f32 %v2629_v11, %v2629_v11  ;;  %v2661_v1 = vsub.f32 %v6898_v25, %v2629_v11 }
 0xf32   :  { %v2652_v50 = vmul.f32 %v2628_v6, %v2628_v6  ;;  %v2660_v18 = vsub.f32 %v6901_v34, %v2628_v6 }
 0xf33   :  { %v2638_v20 = vpop.xlane.xlu0 %2637  ;;  %v2624_v49 = vpop.xlane.xlu1 %2623 }
 0xf34   :  { %v2648_v26 = vmul.f32 0.11111111, %v2638_v20  ;;  %v2630_v5 = vmul.f32 0.11111111, %v2624_v49 }
 0xf36   :  { %v2656_v57 = vsub.f32 %v2648_v26, %v2652_v50  ;;  %v2654_v42 = vmul.f32 %v2630_v5, %v2630_v5  ;;  %v2662_v45 = vsub.f32 %v6910_v46, %v2630_v5  ;;  %v4772_v5 = vld [vmem:[%s7431_s2 + $0x6c] ss:$0 sm:$0xff] }
 0xf37   :  { %v2641_v23 = vpop.xlane.xlu0 %2640  ;;  %v2644_v58 = vpop.xlane.xlu1 %2643 }
 0xf38   :  { %v2664_v47 = vadd.f32 1e-05, %v2656_v57  ;;  %v2649_v16 = vmul.f32 0.11111111, %v2641_v23  ;;  %v2650_v15 = vmul.f32 0.11111111, %v2644_v58 }
 0xf3a   :  { %6012 = vrsqrt.f32 %v2664_v47  ;;  %v2657_v10 = vsub.f32 %v2649_v16, %v2653_v19  ;;  %v2658_v37 = vsub.f32 %v2650_v15, %v2654_v42 }
 0xf3b   :  { %v2627_v27 = vpop.xlane.xlu0 %2626 }
 0xf3c   :  { %v2665_v17 = vadd.f32 1e-05, %v2657_v10  ;;  %v2666_v7 = vadd.f32 1e-05, %v2658_v37  ;;  %v2631_v2 = vmul.f32 0.11111111, %v2627_v27 }
 0xf3e   :  { %6014 = vrsqrt.f32 %v2665_v17  ;;  %v2655_v30 = vmul.f32 %v2631_v2, %v2631_v2  ;;  %v2663_v52 = vsub.f32 %v6920_v40, %v2631_v2 }
 0xf3f   :  { %6016 = vrsqrt.f32 %v2666_v7  ;;  %v2647_v32 = vpop.xlane.xlu0 %2646 }
 0xf40   :  { %v2651_v38 = vmul.f32 0.11111111, %v2647_v32 }
 0xf42   :  { %v2659_v3 = vsub.f32 %v2651_v38, %v2655_v30 }
 0xf44   :  { %v6013_v59 = vpop.eup %6012  ;;  %v2667_v41 = vadd.f32 1e-05, %v2659_v3 }
 0xf45   :  { %v2672_v14 = vmul.f32 %v6013_v59, %v2660_v18 }
 0xf46   :  { %6018 = vrsqrt.f32 %v2667_v41 }
 0xf47   :  { %v2680_v36 = vmul.f32 %v4765_v56, %v2672_v14 }
 0xf48   :  { %v6015_v55 = vpop.eup %6014 }
 0xf49   :  { %v6017_v35 = vpop.eup %6016  ;;  %v2673_v34 = vmul.f32 %v6015_v55, %v2661_v1  ;;  %v2688_v24 = vadd.f32 %v4766_v54, %v2680_v36  ;;  %v2986_v1 = vld [vmem:[%s7430_s1 + $0x30] sm:$0xff]  ;;  %v2987_v36 = vld [vmem:[%s7430_s1 + $0x38] sm:$0xff] }
 0xf4a   :  { %v2674_v39 = vmul.f32 %v6017_v35, %v2662_v45  ;;  %v5636_v55 = vpack.c.bf16 %v2987_v36, %v2986_v1 }
 0xf4b   :  { %v2681_v21 = vmul.f32 %v4765_v56, %v2673_v34  ;;  %5307 = vmatprep.mubr.msk.f32.mxu0 %vm134_vm0, %v2688_v24 }
 0xf4c   :  { %v2682_v43 = vmul.f32 %v4765_v56, %v2674_v39  ;;  %5637 = vmatprep.subr.bf16.mxu0 %v5636_v55 }
 0xf4d   :  { %v2689_v28 = vadd.f32 %v4766_v54, %v2681_v21 }
 0xf4e   :  { %v2690_v31 = vadd.f32 %v4766_v54, %v2682_v43 }
 0xf4f   :  { %5308 = vmatmul.mubr.msk.f32.vlgmr.msra.gmra.mrb[28].mxu0 %vm134_vm0, %v2689_v28 }
 0xf50   :  { %v6019_v0 = vpop.eup %6018  ;;  %5310 = vmatprep.mubr.msk.f32.mxu0 %vm134_vm0, %v2690_v31  ;;  %5639 = vmatpush3.bf16.msra.mxu0 %v5636_v55 }
 0xf51   :  { %v2675_v25 = vmul.f32 %v6019_v0, %v2663_v52 }
 0xf53   :  { %v2683_v9 = vmul.f32 %v4765_v56, %v2675_v25 }
 0xf55   :  { %v2691_v46 = vadd.f32 %v4766_v54, %v2683_v9 }
 0xf57   :  { %5311 = vmatmul.mubr.msk.f32.gmra.mrb[30].mxu0 %vm134_vm0, %v2691_v46 }
0x1022   :  { %v5309_v53 = vpop.f32.mrb[28].mxu0 }
0x1023   :  { %v2783_v33 = vadd.f32 %v5309_v53, %v4767_v63  ;;  %v2777_v51 = vpop.f32.mrb[29].mxu0 }
0x1024   :  { %v2778_v44 = vadd.f32 %v4767_v63, %v2777_v51 }
0x1025   :  { %v2797_v40 = vmax.f32 %v2783_v33, 0.0 }
0x1026   :  { %v2796_v4 = vmax.f32 %v2778_v44, 0.0 }
0x1028   :  { %5317 = vmatprep.mubr.msk.f32.mxu1 %vm134_vm0, %v2796_v4 }
0x1029   :  { %5318 = vmatmul.mubr.msk.f32.vlgmr.msra.gmra.mrb[28].mxu1 %vm134_vm0, %v2797_v40 }
0x102a   :  { %v5312_v6 = vpop.f32.mrb[30].mxu0 }
0x102b   :  { %v2793_v11 = vadd.f32 %v5312_v6, %v4767_v63  ;;  %v2787_v20 = vpop.f32.mrb[31].mxu0 }
0x102c   :  { %v2788_v49 = vadd.f32 %v4767_v63, %v2787_v20 }
0x102d   :  { %v2799_v26 = vmax.f32 %v2793_v11, 0.0 }
0x102e   :  { %v2798_v50 = vmax.f32 %v2788_v49, 0.0 }
0x1030   :  { %5320 = vmatprep.mubr.msk.f32.mxu1 %vm134_vm0, %v2798_v50 }
0x1031   :  { %5321 = vmatmul.mubr.msk.f32.gmra.mrb[30].mxu1 %vm134_vm0, %v2799_v26 }
0x10fc   :  { %v5319_v57 = vpop.f32.mrb[28].mxu1 }
0x10fd   :  { %v2891_v19 = vadd.f32 %v5319_v57, %v4772_v5  ;;  %v2885_v23 = vpop.f32.mrb[29].mxu1 }
0x10fe   :  { %v2886_v58 = vadd.f32 %v4772_v5, %v2885_v23 }
0x10ff   :  { %v6965_v47 = vadd.f32 %v2891_v19, %v2689_v28 }
0x1100   :  { %v6967_v42 = vadd.f32 %v2886_v58, %v2688_v24  ;;  %v4777_v58 = vld [vmem:[%s7431_s2 + $0x6d] ss:$0 sm:$0xff] }
0x1101   :  { %v2913_v16 = vsel %vm134_vm0, %v6965_v47, 0.0  ;;  %v2927_v15 = vmul.f32 %v6965_v47, %v6965_v47 }
0x1102   :  { %2914 = vadd.xlane.f32.xlu0 %v2913_v16  ;;  %v2910_v10 = vsel %vm134_vm0, %v6967_v42, 0.0  ;;  %v2926_v37 = vmul.f32 %v6967_v42, %v6967_v42 }
0x1103   :  { %2911 = vadd.xlane.f32.xlu1 %v2910_v10  ;;  %v2933_v2 = vsel %vm134_vm0, %v2927_v15, 0.0 }
0x1104   :  { %v5322_v27 = vpop.f32.mrb[30].mxu1  ;;  %v2930_v30 = vsel %vm134_vm0, %v2926_v37, 0.0  ;;  %v4778_v37 = vld [vmem:[%s7431_s2 + $0x6e] ss:$0 sm:$0xff] }
0x1105   :  { %v2901_v17 = vadd.f32 %v5322_v27, %v4772_v5  ;;  %v2895_v7 = vpop.f32.mrb[31].mxu1 }
0x1106   :  { %v2896_v32 = vadd.f32 %v4772_v5, %v2895_v7  ;;  %2934 = vadd.xlane.f32.xlu0 %v2933_v2 }
0x1107   :  { %v6979_v38 = vadd.f32 %v2901_v17, %v2691_v46  ;;  %2931 = vadd.xlane.f32.xlu1 %v2930_v30 }
0x1108   :  { %v6981_v3 = vadd.f32 %v2896_v32, %v2690_v31 }
0x1109   :  { %v2919_v18 = vsel %vm1203_vm14, %v6979_v38, 0.0  ;;  %v2929_v59 = vmul.f32 %v6979_v38, %v6979_v38 }
0x110a   :  { %2920 = vadd.xlane.f32.xlu0 %v2919_v18  ;;  %v2916_v41 = vsel %vm134_vm0, %v6981_v3, 0.0  ;;  %v2928_v56 = vmul.f32 %v6981_v3, %v6981_v3 }
0x110b   :  { %2917 = vadd.xlane.f32.xlu1 %v2916_v41  ;;  %v2939_v14 = vsel %vm1203_vm14, %v2929_v59, 0.0 }
0x110c   :  { %v2936_v54 = vsel %vm134_vm0, %v2928_v56, 0.0 }
0x110e   :  { %2940 = vadd.xlane.f32.xlu0 %v2939_v14 }
0x110f   :  { %2937 = vadd.xlane.f32.xlu1 %v2936_v54 }
0x118f   :  { %v2915_v45 = vpop.xlane.xlu0 %2914 }
0x1190   :  { %v2923_v35 = vmul.f32 0.11111111, %v2915_v45  ;;  %v2912_v34 = vpop.xlane.xlu1 %2911 }
0x1191   :  { %v2922_v24 = vmul.f32 0.11111111, %v2912_v34 }
0x1192   :  { %v2947_v21 = vmul.f32 %v2923_v35, %v2923_v35  ;;  %v2955_v57 = vsub.f32 %v6965_v47, %v2923_v35 }
0x1193   :  { %v2935_v39 = vpop.xlane.xlu0 %2934  ;;  %v2946_v31 = vmul.f32 %v2922_v24, %v2922_v24  ;;  %v2954_v23 = vsub.f32 %v6967_v42, %v2922_v24 }
0x1194   :  { %v2943_v43 = vmul.f32 0.11111111, %v2935_v39  ;;  %v2932_v28 = vpop.xlane.xlu1 %2931 }
0x1195   :  { %v2942_v52 = vmul.f32 0.11111111, %v2932_v28 }
0x1196   :  { %v2951_v0 = vsub.f32 %v2943_v43, %v2947_v21 }
0x1197   :  { %v2950_v25 = vsub.f32 %v2942_v52, %v2946_v31  ;;  %v2921_v9 = vpop.xlane.xlu0 %2920 }
0x1198   :  { %v2959_v46 = vadd.f32 1e-05, %v2951_v0  ;;  %v2925_v63 = vmul.f32 0.11111111, %v2921_v9  ;;  %v2918_v53 = vpop.xlane.xlu1 %2917 }
0x1199   :  { %v2958_v33 = vadd.f32 1e-05, %v2950_v25  ;;  %v2924_v51 = vmul.f32 0.11111111, %v2918_v53 }
0x119a   :  { %6020 = vrsqrt.f32 %v2959_v46  ;;  %v2949_v4 = vmul.f32 %v2925_v63, %v2925_v63  ;;  %v2957_v47 = vsub.f32 %v6979_v38, %v2925_v63  ;;  %v4779_v38 = vld [vmem:[%s7430_s1 + $0x40] ss:$0 sm:$0xff] }
0x119b   :  { %6022 = vrsqrt.f32 %v2958_v33  ;;  %v2941_v44 = vpop.xlane.xlu0 %2940  ;;  %v2948_v11 = vmul.f32 %v2924_v51, %v2924_v51  ;;  %v2956_v32 = vsub.f32 %v6981_v3, %v2924_v51 }
0x119c   :  { %v2945_v40 = vmul.f32 0.11111111, %v2941_v44  ;;  %v2938_v6 = vpop.xlane.xlu1 %2937 }
0x119d   :  { %v2944_v20 = vmul.f32 0.11111111, %v2938_v6 }
0x119e   :  { %v2953_v49 = vsub.f32 %v2945_v40, %v2949_v4 }
0x119f   :  { %v2952_v50 = vsub.f32 %v2944_v20, %v2948_v11 }
0x11a0   :  { %v2961_v26 = vadd.f32 1e-05, %v2953_v49 }
0x11a1   :  { %v2960_v5 = vadd.f32 1e-05, %v2952_v50 }
0x11a2   :  { %6024 = vrsqrt.f32 %v2961_v26 }
0x11a3   :  { %6026 = vrsqrt.f32 %v2960_v5 }
0x11a4   :  { %v6021_v19 = vpop.eup %6020 }
0x11a5   :  { %v6023_v16 = vpop.eup %6022  ;;  %v2967_v15 = vmul.f32 %v6021_v19, %v2955_v57 }
0x11a6   :  { %v2966_v10 = vmul.f32 %v6023_v16, %v2954_v23 }
0x11a7   :  { %v2975_v27 = vmul.f32 %v4777_v58, %v2967_v15 }
0x11a8   :  { %v2974_v17 = vmul.f32 %v4777_v58, %v2966_v10 }
0x11a9   :  { %v7010_v2 = vadd.f32 %v4778_v37, %v2975_v27 }
0x11aa   :  { %v7007_v7 = vadd.f32 %v4778_v37, %v2974_v17 }
0x11ac   :  { %v6025_v42 = vpop.eup %6024  ;;  %5327 = vmatprep.mubr.msk.f32.mxu0 %vm134_vm0, %v7007_v7 }
0x11ad   :  { %v6027_v30 = vpop.eup %6026  ;;  %5328 = vmatmul.mubr.msk.f32.vlgmr.msra.gmra.mrb[32].mxu0 %vm134_vm0, %v7010_v2  ;;  %v2969_v18 = vmul.f32 %v6025_v42, %v2957_v47 }
0x11ae   :  { %v2968_v59 = vmul.f32 %v6027_v30, %v2956_v32 }
0x11af   :  { %v2977_v41 = vmul.f32 %v4777_v58, %v2969_v18 }
0x11b0   :  { %v2976_v56 = vmul.f32 %v4777_v58, %v2968_v59 }
0x11b1   :  { %v7019_v54 = vadd.f32 %v4778_v37, %v2977_v41 }
0x11b2   :  { %v7017_v14 = vadd.f32 %v4778_v37, %v2976_v56  ;;  %v6096_v56 = vld [vmem:[%s7430_s1 + $0x68] sm:$0xff] }
0x11b4   :  { %5330 = vmatprep.mubr.msk.f32.mxu0 %vm134_vm0, %v7017_v14 }
0x11b5   :  { %5331 = vmatmul.mubr.msk.f32.gmra.mrb[34].mxu0 %vm134_vm0, %v7019_v54 }
0x1280   :  { %v5329_v3 = vpop.f32.mrb[32].mxu0 }
0x1281   :  { %v7028_v1 = vadd.f32 %v5329_v3, %v4779_v38  ;;  %v3071_v36 = vpop.f32.mrb[33].mxu0  ;;  %v6097_v3 = vld [vmem:[%s7430_s1 + $0x60] sm:$0xff] }
0x1282   :  { %v3072_v55 = vadd.f32 %v4779_v38, %v3071_v36 }
0x1283   :  { %v7032_v45 = vmul.f32 %v6329_v8, %v7028_v1  ;;  %v7045_v43 = vmul.f32 %v6354_v29, %v7028_v1  ;;  %v7054_v31 = vmul.f32 %v7028_v1, %v6413_v48  ;;  %v3091_v58 = vmul.f32 %v6206_v61, %v7028_v1 }
0x1284   :  { %v5860_v35 = vpack.i.bf16 %v7028_v1, %v3072_v55  ;;  %v3090_v34 = vmul.f32 %v6206_v61, %v3072_v55  ;;  %v3267_v24 = vmul.f32 %v6209_v62, %v3072_v55  ;;  %v7038_v39 = vmul.f32 %v6329_v8, %v3072_v55 }
0x1285   :  { %v7041_v21 = vmul.f32 %v6354_v29, %v3072_v55  ;;  %v7048_v28 = vmul.f32 %v3072_v55, %v6413_v48  ;;  %v3268_v16 = vmul.f32 %v6209_v62, %v7028_v1  ;;  %v3652_v17 = vmul.f32 %v6267_v22, %v3072_v55 }
0x1286   :  { %5861 = vrot.lane.b32.xlu1 %v5860_v35, %s6104_s22  ;;  %5341 = vmatprep.mubr.msk.f32.mxu1 %vm134_vm0, %v3090_v34  ;;  %v5870_v52 = vpack.i.bf16 %v7032_v45, %v7038_v39  ;;  %v3653_v47 = vmul.f32 %v6267_v22, %v7028_v1 }
0x1287   :  { %5355 = vmatprep.mubr.msk.f32.mxu0 %vm134_vm0, %v3267_v24  ;;  %v5880_v0 = vpack.i.bf16 %v7045_v43, %v7041_v21  ;;  %v5890_v9 = vpack.i.bf16 %v7054_v31, %v7048_v28  ;;  %v3927_v21 = vld [vmem:[%s7431_s2 + $0x70] sm:$0xff]  ;;  %v3928_v43 = vld [vmem:[%s7431_s2 + $0x78] sm:$0xff] }
0x1288   :  { %v5332_v25 = vpop.f32.mrb[34].mxu0  ;;  %v5706_v28 = vpack.c.bf16 %v3928_v43, %v3927_v21 }
0x1289   :  { %v3087_v46 = vadd.f32 %v5332_v25, %v4779_v38  ;;  %v3081_v63 = vpop.f32.mrb[35].mxu0 }
0x128a   :  { %v3082_v53 = vadd.f32 %v4779_v38, %v3081_v63 }
0x128b   :  { %v7064_v33 = vmul.f32 %v6354_v29, %v3087_v46  ;;  %v7073_v40 = vmul.f32 %v3087_v46, %v6413_v48  ;;  %v7080_v11 = vmul.f32 %v6329_v8, %v3087_v46  ;;  %v3093_v37 = vmul.f32 %v6206_v61, %v3087_v46 }
0x128c   :  { %v5865_v51 = vpack.i.bf16 %v3087_v46, %v3082_v53  ;;  %v7067_v44 = vmul.f32 %v6354_v29, %v3082_v53  ;;  %v7070_v4 = vmul.f32 %v3082_v53, %v6413_v48  ;;  %v7076_v6 = vmul.f32 %v6329_v8, %v3082_v53 }
0x128d   :  { %v3092_v15 = vmul.f32 %v6206_v61, %v3082_v53  ;;  %v3269_v10 = vmul.f32 %v6209_v62, %v3082_v53  ;;  %v3270_v27 = vmul.f32 %v6209_v62, %v3087_v46  ;;  %v3654_v61 = vmul.f32 %v6267_v22, %v3082_v53 }
0x128e   :  { %5866 = vrot.lane.b32.xlu0 %v5865_v51, %s6104_s22  ;;  %v5885_v20 = vpack.i.bf16 %v7064_v33, %v7067_v44  ;;  %v5895_v29 = vpack.i.bf16 %v7073_v40, %v7070_v4  ;;  %v5875_v49 = vpack.i.bf16 %v7080_v11, %v7076_v6  ;;  %v3655_v62 = vmul.f32 %v6267_v22, %v3087_v46  ;;  %v6098_v51 = vld [vmem:[%s7430_s1 + $0x78] sm:$0x3] }
0x12f8   :  { %v5862_v50 = vpop.permute.xlu1 %5861 }
0x12f9   :  { %v5864_v48 = vunpack.i.h.bf16 %v5862_v50  ;;  %v5863_v26 = vunpack.i.l.bf16 %v5862_v50 }
0x12fb   :  { %v5640_v5 = vpack.c.bf16 %v5864_v48, %v5863_v26 }
0x12fd   :  { %5642 = vmatprep.subr.msk.bf16.mxu1 %vm6234_vm5, %v5640_v5  ;;  %5654 = vmatprep.subr.msk.bf16.mxu0 %vm6234_vm5, %v5640_v5 }
0x12fe   :  { %5645 = vmatpush3.bf16.xpose.msk.msra.mxu1 %vm6234_vm5, %v5640_v5  ;;  %5657 = vmatpush3.bf16.xpose.msk.msra.mxu0 %vm6234_vm5, %v5640_v5 }
0x1300   :  { %v5867_v8 = vpop.permute.xlu0 %5866 }
0x1301   :  { %v5869_v57 = vunpack.i.h.bf16 %v5867_v8  ;;  %v5868_v19 = vunpack.i.l.bf16 %v5867_v8 }
0x1303   :  { %v5646_v23 = vpack.c.bf16 %v5869_v57, %v5868_v19  ;;  %v6099_v57 = vld [vmem:[%s7430_s1 + $0x70] sm:$0xff] }
0x1305   :  { %5648 = vmatprep.subr.msk.bf16.mxu1 %vm6234_vm5, %v5646_v23  ;;  %5660 = vmatprep.subr.msk.bf16.mxu0 %vm6234_vm5, %v5646_v23 }
0x1306   :  { %5651 = vmatpush3.bf16.xpose.msk.msra.mxu1 %vm6234_vm5, %v5646_v23  ;;  %5663 = vmatpush3.bf16.xpose.msk.msra.mxu0 %vm6234_vm5, %v5646_v23 }
0x1307   :  { %5686 = vmatprep.subr.msk.bf16.mxu0 %vm6234_vm5, %v5640_v5 }
0x130d   :  { %5342 = vmatmul.mubr.msk.f32.vlgmr.msra.gmra.mrb[32].mxu1 %vm134_vm0, %v3091_v58  ;;  %5356 = vmatmul.mubr.msk.f32.vlgmr.msra.gmra.mrb[36].mxu0 %vm134_vm0, %v3268_v16 }
0x130e   :  { %5344 = vmatprep.mubr.msk.f32.mxu1 %vm134_vm0, %v3092_v15  ;;  %5358 = vmatprep.mubr.msk.f32.mxu0 %vm134_vm0, %v3269_v10 }
0x130f   :  { %5689 = vmatpush3.bf16.xpose.msk.msra.mxu0 %vm6234_vm5, %v5640_v5 }
0x1310   :  { %5692 = vmatprep.subr.msk.bf16.mxu0 %vm6234_vm5, %v5646_v23 }
0x1311   :  { %5345 = vmatmul.mubr.msk.f32.gmra.mrb[34].mxu1 %vm134_vm0, %v3093_v37  ;;  %5359 = vmatmul.mubr.msk.f32.gmra.mrb[38].mxu0 %vm134_vm0, %v3270_v27 }
0x1312   :  { %5397 = vmatprep.mubr.msk.f32.mxu0 %vm134_vm0, %v3652_v17 }
0x1317   :  { %5695 = vmatpush3.bf16.xpose.msk.msra.mxu0 %vm6234_vm5, %v5646_v23 }
0x1318   :  { %5707 = vmatprep.subr.bf16.mxu0 %v5706_v28 }
0x131e   :  { %5398 = vmatmul.mubr.msk.f32.vlgmr.msra.gmra.mrb[40].mxu0 %vm134_vm0, %v3653_v47 }
0x131f   :  { %5400 = vmatprep.mubr.msk.f32.mxu0 %vm134_vm0, %v3654_v61  ;;  %5709 = vmatpush3.bf16.msra.mxu0 %v5706_v28 }
0x1322   :  { %5401 = vmatmul.mubr.msk.f32.gmra.mrb[42].mxu0 %vm134_vm0, %v3655_v62 }
0x13e0   :  { %v5343_v42 = vpop.f32.mrb[32].mxu1  ;;  %v5357_v32 = vpop.f32.mrb[36].mxu0 }
0x13e1   :  { %v3369_v30 = vmul.f32 0.57735026, %v5357_v32  ;;  %v3192_v18 = vpop.f32.mrb[33].mxu1  ;;  %v3349_v59 = vpop.f32.mrb[37].mxu0  ;;  %v3212_v55 = vmul.f32 0.57735026, %v5343_v42 }
0x13e2   :  { %v3211_v12 = vmul.f32 0.57735026, %v3192_v18  ;;  %v3368_v41 = vmul.f32 0.57735026, %v3349_v59 }
0x13e3   :  { %v3373_v38 = vadd.f32 %v6096_v56, %v3369_v30  ;;  %v3216_v48 = vadd.f32 %v6096_v56, %v3212_v55 }
0x13e4   :  { %v3372_v1 = vadd.f32 %v6097_v3, %v3368_v41  ;;  %v5346_v22 = vpop.f32.mrb[34].mxu1  ;;  %v5360_v36 = vpop.f32.mrb[38].mxu0  ;;  %v3215_v25 = vadd.f32 %v6097_v3, %v3211_v12 }
0x13e5   :  { %v3371_v35 = vmul.f32 0.57735026, %v5360_v36  ;;  %v3202_v34 = vpop.f32.mrb[35].mxu1  ;;  %v3359_v24 = vpop.f32.mrb[39].mxu0  ;;  %v3379_v63 = vsel %vm361_vm9, %v3373_v38, -inf  ;;  %v3222_v15 = vsel %vm361_vm9, %v3216_v48, -inf }
0x13e6   :  { %v3370_v46 = vmul.f32 0.57735026, %v3359_v24  ;;  %v3376_v53 = vsel %vm361_vm9, %v3372_v1, -inf  ;;  %3380 = vmax.xlane.f32.xlu0 %v3379_v63  ;;  %v3214_v5 = vmul.f32 0.57735026, %v5346_v22  ;;  %v3219_v23 = vsel %vm361_vm9, %v3215_v25, -inf }
0x13e7   :  { %v3375_v50 = vadd.f32 %v6098_v51, %v3371_v35  ;;  %3377 = vmax.xlane.f32.xlu1 %v3376_v53  ;;  %v3213_v8 = vmul.f32 0.57735026, %v3202_v34 }
0x13e8   :  { %v3374_v19 = vadd.f32 %v6099_v57, %v3370_v46  ;;  %v3218_v58 = vadd.f32 %v6098_v51, %v3214_v5 }
0x13e9   :  { %v3385_v26 = vsel %vm371_vm10, %v3375_v50, -inf  ;;  %v3217_v16 = vadd.f32 %v6099_v57, %v3213_v8 }
0x13ea   :  { %3386 = vmax.xlane.f32.xlu0 %v3385_v26  ;;  %v3382_v10 = vsel %vm361_vm9, %v3374_v19, -inf  ;;  %v3228_v47 = vsel %vm371_vm10, %v3218_v58, -inf }
0x13eb   :  { %3220 = vmax.xlane.f32.xlu1 %v3219_v23  ;;  %v3225_v61 = vsel %vm361_vm9, %v3217_v16, -inf }
0x13ee   :  { %3223 = vmax.xlane.f32.xlu0 %v3222_v15 }
0x13ef   :  { %3383 = vmax.xlane.f32.xlu1 %v3382_v10 }
0x13f1   :  { %v5399_v37 = vpop.f32.mrb[40].mxu0 }
0x13f2   :  { %v3754_v27 = vmul.f32 0.57735026, %v5399_v37  ;;  %v3734_v17 = vpop.f32.mrb[41].mxu0  ;;  %3229 = vmax.xlane.f32.xlu0 %v3228_v47 }
0x13f3   :  { %v3753_v62 = vmul.f32 0.57735026, %v3734_v17  ;;  %3226 = vmax.xlane.f32.xlu1 %v3225_v61 }
0x13f4   :  { %v3758_v42 = vadd.f32 %v6096_v56, %v3754_v27 }
0x13f5   :  { %v3757_v32 = vadd.f32 %v6097_v3, %v3753_v62  ;;  %v5402_v30 = vpop.f32.mrb[42].mxu0 }
0x13f6   :  { %v3756_v18 = vmul.f32 0.57735026, %v5402_v30  ;;  %v3744_v59 = vpop.f32.mrb[43].mxu0  ;;  %v3764_v12 = vsel %vm361_vm9, %v3758_v42, -inf }
0x13f7   :  { %v3755_v41 = vmul.f32 0.57735026, %v3744_v59  ;;  %3765 = vmax.xlane.f32.xlu0 %v3764_v12  ;;  %v3761_v22 = vsel %vm361_vm9, %v3757_v32, -inf }
0x13f8   :  { %v3760_v36 = vadd.f32 %v6098_v51, %v3756_v18  ;;  %3762 = vmax.xlane.f32.xlu1 %v3761_v22 }
0x13f9   :  { %v7157_v55 = vadd.f32 %v6099_v57, %v3755_v41 }
0x13fa   :  { %v3770_v35 = vsel %vm371_vm10, %v3760_v36, -inf }
0x13fb   :  { %3771 = vmax.xlane.f32.xlu0 %v3770_v35  ;;  %v3767_v56 = vsel %vm361_vm9, %v7157_v55, -inf }
0x13fc   :  { %3768 = vmax.xlane.f32.xlu1 %v3767_v56 }
0x140d   :  { %5871 = vrot.lane.b32.xlu1 %v5870_v52, %s6106_s4 }
0x1473   :  { %v3381_v3 = vpop.xlane.xlu0 %3380 }
0x1474   :  { %v3378_v34 = vpop.xlane.xlu1 %3377  ;;  %v3389_v24 = vsub.f32 %v3373_v38, %v3381_v3 }
0x1475   :  { %v3388_v46 = vsub.f32 %v3372_v1, %v3378_v34 }
0x1476   :  { %v3394_v63 = vmul.f32 1.442695, %v3389_v24 }
0x1477   :  { %v3392_v53 = vmul.f32 1.442695, %v3388_v46  ;;  %v3387_v51 = vpop.xlane.xlu0 %3386 }
0x1478   :  { %v3221_v26 = vpop.xlane.xlu1 %3220  ;;  %6028 = vpow2.f32 %v3394_v63  ;;  %v3391_v8 = vsub.f32 %v3375_v50, %v3387_v51 }
0x1479   :  { %v3231_v5 = vsub.f32 %v3215_v25, %v3221_v26  ;;  %6030 = vpow2.f32 %v3392_v53 }
0x147a   :  { %v3398_v45 = vmul.f32 1.442695, %v3391_v8 }
0x147b   :  { %v3235_v57 = vmul.f32 1.442695, %v3231_v5  ;;  %v3224_v23 = vpop.xlane.xlu0 %3223 }
0x147c   :  { %v3384_v15 = vpop.xlane.xlu1 %3383  ;;  %v3232_v10 = vsub.f32 %v3216_v48, %v3224_v23 }
0x147d   :  { %v3390_v37 = vsub.f32 %v3374_v19, %v3384_v15  ;;  %6032 = vpow2.f32 %v3235_v57 }
0x147e   :  { %v3237_v39 = vmul.f32 1.442695, %v3232_v10 }
0x147f   :  { %v3396_v52 = vmul.f32 1.442695, %v3390_v37  ;;  %v3230_v27 = vpop.xlane.xlu0 %3229 }
0x1480   :  { %v3227_v38 = vpop.xlane.xlu1 %3226  ;;  %6034 = vpow2.f32 %v3237_v39  ;;  %v3234_v1 = vsub.f32 %v3218_v58, %v3230_v27 }
0x1481   :  { %v3233_v17 = vsub.f32 %v3217_v16, %v3227_v38  ;;  %6036 = vpow2.f32 %v3396_v52 }
0x1482   :  { %v7166_v47 = vpop.eup %6028  ;;  %6038 = vpow2.f32 %v3398_v45  ;;  %v3241_v25 = vmul.f32 1.442695, %v3234_v1 }
0x1483   :  { %v3239_v50 = vmul.f32 1.442695, %v3233_v17  ;;  %v7168_v61 = vpop.eup %6030  ;;  %v3403_v48 = vsel %vm361_vm9, %v7166_v47, 0.0 }
0x1484   :  { %v3766_v62 = vpop.xlane.xlu0 %3765  ;;  %3404 = vadd.xlane.f32.xlu0 %v3403_v48  ;;  %v3400_v18 = vsel %vm361_vm9, %v7168_v61, 0.0 }
0x1485   :  { %v3774_v19 = vsub.f32 %v3758_v42, %v3766_v62  ;;  %v3763_v30 = vpop.xlane.xlu1 %3762  ;;  %6040 = vpow2.f32 %v3239_v50  ;;  %3401 = vadd.xlane.f32.xlu1 %v3400_v18 }
0x1486   :  { %v3773_v58 = vsub.f32 %v3757_v32, %v3763_v30  ;;  %6042 = vpow2.f32 %v3241_v25 }
0x1487   :  { %v3779_v16 = vmul.f32 1.442695, %v3774_v19  ;;  %v7174_v59 = vpop.eup %6032 }
0x1488   :  { %v3777_v12 = vmul.f32 1.442695, %v3773_v58  ;;  %v3772_v41 = vpop.xlane.xlu0 %3771  ;;  %v3243_v56 = vsel %vm361_vm9, %v7174_v59, 0.0 }
0x1489   :  { %v3776_v22 = vsub.f32 %v3760_v36, %v3772_v41  ;;  %v3769_v35 = vpop.xlane.xlu1 %3768  ;;  %3244 = vadd.xlane.f32.xlu1 %v3243_v56 }
0x148a   :  { %6044 = vpow2.f32 %v3777_v12  ;;  %v7178_v42 = vpop.eup %6034  ;;  %v3775_v32 = vsub.f32 %v7157_v55, %v3769_v35 }
0x148b   :  { %6046 = vpow2.f32 %v3779_v16  ;;  %v3783_v3 = vmul.f32 1.442695, %v3776_v22  ;;  %v7181_v34 = vpop.eup %6036  ;;  %v3246_v24 = vsel %vm361_vm9, %v7178_v42, 0.0 }
0x148c   :  { %v7185_v46 = vpop.eup %6038  ;;  %3247 = vadd.xlane.f32.xlu0 %v3246_v24  ;;  %v3406_v63 = vsel %vm361_vm9, %v7181_v34, 0.0  ;;  %v3781_v26 = vmul.f32 1.442695, %v3775_v32 }
0x148d   :  { %v5872_v36 = vpop.permute.xlu1 %5871  ;;  %3407 = vadd.xlane.f32.xlu1 %v3406_v63  ;;  %6048 = vpow2.f32 %v3783_v3  ;;  %v3409_v8 = vsel %vm371_vm10, %v7185_v46, 0.0 }
0x148e   :  { %v5874_v53 = vunpack.i.h.bf16 %v5872_v36  ;;  %v5873_v51 = vunpack.i.l.bf16 %v5872_v36  ;;  %6050 = vpow2.f32 %v3781_v26 }
0x148f   :  { %v7189_v5 = vpop.eup %6040 }
0x1490   :  { %v5664_v55 = vpack.c.bf16 %v5874_v53, %v5873_v51  ;;  %v7193_v57 = vpop.eup %6042  ;;  %3410 = vadd.xlane.f32.xlu0 %v3409_v8  ;;  %v3249_v23 = vsel %vm361_vm9, %v7189_v5, 0.0 }
0x1491   :  { %3250 = vadd.xlane.f32.xlu1 %v3249_v23  ;;  %v3252_v10 = vsel %vm371_vm10, %v7193_v57, 0.0 }
0x1492   :  { %5665 = vmatprep.subr.bf16.mxu1 %v5664_v55 }
0x1493   :  { %5667 = vmatpush3.bf16.msra.mxu1 %v5664_v55 }
0x1494   :  { %v7197_v15 = vpop.eup %6044  ;;  %3253 = vadd.xlane.f32.xlu0 %v3252_v10 }
0x1495   :  { %v7201_v37 = vpop.eup %6046  ;;  %v3785_v45 = vsel %vm361_vm9, %v7197_v15, 0.0 }
0x1496   :  { %3786 = vadd.xlane.f32.xlu1 %v3785_v45  ;;  %v3788_v39 = vsel %vm361_vm9, %v7201_v37, 0.0 }
0x1497   :  { %v7207_v52 = vpop.eup %6048 }
0x1498   :  { %3789 = vadd.xlane.f32.xlu0 %v3788_v39  ;;  %v3794_v27 = vsel %vm371_vm10, %v7207_v52, 0.0  ;;  %v7211_v38 = vpop.eup %6050 }
0x1499   :  { %v3791_v1 = vsel %vm361_vm9, %v7211_v38, 0.0 }
0x149c   :  { %3795 = vadd.xlane.f32.xlu0 %v3794_v27 }
0x14a0   :  { %3792 = vadd.xlane.f32.xlu0 %v3791_v1 }
0x14a7   :  { %5881 = vrot.lane.b32.xlu1 %v5880_v0, %s6106_s4 }
0x14ab   :  { %5886 = vrot.lane.b32.xlu1 %v5885_v20, %s6106_s4 }
0x14af   :  { %5891 = vrot.lane.b32.xlu1 %v5890_v9, %s6106_s4 }
0x14b3   :  { %5896 = vrot.lane.b32.xlu1 %v5895_v29, %s6106_s4 }
0x14b6   :  { %5876 = vrot.lane.b32.xlu0 %v5875_v49, %s6106_s4 }
0x1511   :  { %v3405_v0 = vpop.xlane.xlu0 %3404 }
0x1512   :  { %v3402_v31 = vpop.xlane.xlu1 %3401 }
0x1513   :  { %6052 = vrcp.f32 %v3402_v31 }
0x1514   :  { %6054 = vrcp.f32 %v3405_v0 }
0x1516   :  { %v3245_v9 = vpop.xlane.xlu1 %3244 }
0x1519   :  { %v3248_v33 = vpop.xlane.xlu0 %3247 }
0x151a   :  { %v3408_v44 = vpop.xlane.xlu1 %3407 }
0x151b   :  { %6056 = vrcp.f32 %v3408_v44 }
0x151d   :  { %v6053_v4 = vpop.eup %6052  ;;  %v3411_v40 = vpop.xlane.xlu0 %3410 }
0x151e   :  { %v3251_v6 = vpop.xlane.xlu1 %3250  ;;  %v3416_v11 = vmul.f32 %v6053_v4, %v7168_v61  ;;  %6058 = vrcp.f32 %v3411_v40  ;;  %v6055_v16 = vpop.eup %6054 }
0x151f   :  { %6060 = vrcp.f32 %v3245_v9  ;;  %v3417_v3 = vmul.f32 %v6055_v16, %v7166_v47 }
0x1520   :  { %5369 = vmatprep.mubr.msk.f32.mxu1 %vm361_vm9, %v3416_v11  ;;  %6062 = vrcp.f32 %v3248_v33 }
0x1521   :  { %v3254_v20 = vpop.xlane.xlu0 %3253  ;;  %6064 = vrcp.f32 %v3251_v6 }
0x1522   :  { %6066 = vrcp.f32 %v3254_v20 }
0x1523   :  { %v3787_v29 = vpop.xlane.xlu1 %3786 }
0x1524   :  { %6068 = vrcp.f32 %v3787_v29 }
0x1525   :  { %v3790_v49 = vpop.xlane.xlu0 %3789  ;;  %v6057_v41 = vpop.eup %6056 }
0x1526   :  { %v3418_v24 = vmul.f32 %v6057_v41, %v7181_v34  ;;  %6070 = vrcp.f32 %v3790_v49  ;;  %v4114_v41 = vld [vmem:[%s7431_s2 + $0x88] sm:$0xff] }
0x1527   :  { %v5882_v17 = vpop.permute.xlu1 %5881 }
0x1528   :  { %v5884_v19 = vunpack.i.h.bf16 %v5882_v17  ;;  %v5883_v30 = vunpack.i.l.bf16 %v5882_v17  ;;  %v6059_v32 = vpop.eup %6058 }
0x1529   :  { %v3796_v25 = vpop.xlane.xlu0 %3795  ;;  %v6061_v36 = vpop.eup %6060  ;;  %v3419_v47 = vmul.f32 %v6059_v32, %v7185_v46 }
0x152a   :  { %v5674_v22 = vpack.c.bf16 %v5884_v19, %v5883_v30  ;;  %v6063_v55 = vpop.eup %6062  ;;  %v3259_v34 = vmul.f32 %v6061_v36, %v7174_v59 }
0x152b   :  { %v5887_v62 = vpop.permute.xlu1 %5886  ;;  %v6065_v8 = vpop.eup %6064  ;;  %v3260_v39 = vmul.f32 %v6063_v55, %v7178_v42 }
0x152c   :  { %v5889_v35 = vunpack.i.h.bf16 %v5887_v62  ;;  %v5888_v56 = vunpack.i.l.bf16 %v5887_v62  ;;  %v6067_v27 = vpop.eup %6066  ;;  %v3261_v46 = vmul.f32 %v6065_v8, %v7189_v5 }
0x152d   :  { %v3793_v50 = vpop.xlane.xlu0 %3792  ;;  %v3262_v21 = vmul.f32 %v6067_v27, %v7193_v57 }
0x152e   :  { %v5678_v63 = vpack.c.bf16 %v5889_v35, %v5888_v56  ;;  %6072 = vrcp.f32 %v3793_v50  ;;  %v6069_v1 = vpop.eup %6068  ;;  %v4221_v35 = vld [vmem:[%s7431_s2 + $0x90] sm:$0xff]  ;;  %v4222_v56 = vld [vmem:[%s7431_s2 + $0x98] sm:$0xff] }
0x152f   :  { %v5892_v12 = vpop.permute.xlu1 %5891  ;;  %6074 = vrcp.f32 %v3796_v25  ;;  %v3801_v28 = vmul.f32 %v6069_v1, %v7197_v15 }
0x1530   :  { %v5894_v53 = vunpack.i.h.bf16 %v5892_v12  ;;  %v5893_v51 = vunpack.i.l.bf16 %v5892_v12  ;;  %v6071_v43 = vpop.eup %6070 }
0x1531   :  { %v5877_v48 = vpop.permute.xlu0 %5876  ;;  %v3802_v5 = vmul.f32 %v6071_v43, %v7201_v37  ;;  %v4823_v37 = vld [vmem:[%s7431_s2 + $0xa0] ss:$0 sm:$0xff] }
0x1532   :  { %v5879_v18 = vunpack.i.h.bf16 %v5877_v48  ;;  %v5878_v58 = vunpack.i.l.bf16 %v5877_v48  ;;  %v5696_v23 = vpack.c.bf16 %v5894_v53, %v5893_v51 }
0x1533   :  { %v5897_v26 = vpop.permute.xlu1 %5896 }
0x1534   :  { %v5668_v61 = vpack.c.bf16 %v5879_v18, %v5878_v58  ;;  %v5899_v10 = vunpack.i.h.bf16 %v5897_v26  ;;  %v5898_v45 = vunpack.i.l.bf16 %v5897_v26 }
0x1536   :  { %5670 = vmatprep.subr.msk.bf16.mxu1 %vm6425_vm13, %v5668_v61  ;;  %v5700_v59 = vpack.c.bf16 %v5899_v10, %v5898_v45 }
0x1537   :  { %5673 = vmatpush3.bf16.msk.msra.mxu1 %vm6425_vm13, %v5668_v61 }
0x1538   :  { %5675 = vmatprep.subr.bf16.mxu1 %v5674_v22  ;;  %v6073_v42 = vpop.eup %6072 }
0x1539   :  { %v6075_v31 = vpop.eup %6074  ;;  %v3803_v0 = vmul.f32 %v6073_v42, %v7211_v38 }
0x153a   :  { %5370 = vmatmul.mubr.msk.f32.vlgmr.msra.gmra.mrb[36].mxu1 %vm361_vm9, %v3417_v3  ;;  %v3804_v57 = vmul.f32 %v6075_v31, %v7207_v52  ;;  %v5714_v3 = vpack.c.bf16 %v4222_v56, %v4221_v35 }
0x153b   :  { %5372 = vmatprep.mubr.msk.f32.mxu1 %vm361_vm9, %v3418_v24  ;;  %5677 = vmatpush3.bf16.msra.mxu1 %v5674_v22 }
0x153c   :  { %5680 = vmatprep.subr.msk.bf16.mxu1 %vm6425_vm13, %v5678_v63  ;;  %5715 = vmatprep.subr.bf16.mxu0 %v5714_v3 }
0x153e   :  { %5373 = vmatmul.mubr.msk.f32.gmra.mrb[38].mxu1 %vm361_vm9, %v3419_v47 }
0x153f   :  { %5683 = vmatpush3.bf16.msk.msra.mxu1 %vm6425_vm13, %v5678_v63  ;;  %5383 = vmatprep.mubr.msk.f32.mxu1 %vm361_vm9, %v3259_v34 }
0x1540   :  { %5697 = vmatprep.subr.bf16.mxu1 %v5696_v23 }
0x1542   :  { %5384 = vmatmul.mubr.msk.f32.vlgmr.msra.gmra.mrb[36].mxu1 %vm361_vm9, %v3260_v39 }
0x1543   :  { %5386 = vmatprep.mubr.msk.f32.mxu1 %vm361_vm9, %v3261_v46  ;;  %5699 = vmatpush3.bf16.msra.mxu1 %v5696_v23 }
0x1544   :  { %5702 = vmatprep.subr.msk.bf16.mxu1 %vm6425_vm13, %v5700_v59 }
0x1546   :  { %5387 = vmatmul.mubr.msk.f32.gmra.mrb[38].mxu1 %vm361_vm9, %v3262_v21 }
0x1547   :  { %5705 = vmatpush3.bf16.msk.msra.mxu1 %vm6425_vm13, %v5700_v59  ;;  %5411 = vmatprep.mubr.msk.f32.mxu1 %vm361_vm9, %v3801_v28 }
0x154a   :  { %5412 = vmatmul.mubr.msk.f32.vlgmr.msra.gmra.mrb[36].mxu1 %vm361_vm9, %v3802_v5 }
0x154b   :  { %5414 = vmatprep.mubr.msk.f32.mxu1 %vm361_vm9, %v3803_v0 }
0x154e   :  { %5415 = vmatmul.mubr.msk.f32.gmra.mrb[38].mxu1 %vm361_vm9, %v3804_v57 }
0x161d   :  { %v5413_v15 = vpop.f32.mrb[36].mxu1 }
0x161e   :  { %v3904_v9 = vpop.f32.mrb[37].mxu1 }
0x161f   :  { %5421 = vmatprep.mubr.msk.f32.mxu0 %vm134_vm0, %v3904_v9 }
0x1620   :  { %5422 = vmatmul.mubr.msk.f32.vlgmr.msra.gmra.mrb[44].mxu0 %vm134_vm0, %v5413_v15 }
0x1621   :  { %v5416_v33 = vpop.f32.mrb[38].mxu1  ;;  %5717 = vmatpush3.bf16.msra.mxu0 %v5714_v3 }
0x1622   :  { %v3914_v44 = vpop.f32.mrb[39].mxu1 }
0x1623   :  { %5424 = vmatprep.mubr.msk.f32.mxu0 %vm134_vm0, %v3914_v44 }
0x1624   :  { %5425 = vmatmul.mubr.msk.f32.gmra.mrb[46].mxu0 %vm134_vm0, %v5416_v33 }
0x16f3   :  { %v5423_v38 = vpop.f32.mrb[44].mxu0 }
0x16f4   :  { %v4018_v52 = vadd.f32 %v5423_v38, %v4823_v37  ;;  %v4012_v4 = vpop.f32.mrb[45].mxu0  ;;  %v4828_v38 = vld [vmem:[%s7431_s2 + $0xa1] ss:$0 sm:$0xff] }
0x16f5   :  { %v4013_v40 = vadd.f32 %v4823_v37, %v4012_v4 }
0x16f6   :  { %v7285_v6 = vadd.f32 %v4018_v52, %v7010_v2 }
0x16f7   :  { %v7288_v11 = vadd.f32 %v4013_v40, %v7007_v7  ;;  %v5426_v20 = vpop.f32.mrb[46].mxu0 }
0x16f8   :  { %v4022_v29 = vpop.f32.mrb[47].mxu0  ;;  %v4040_v49 = vsel %vm134_vm0, %v7285_v6, 0.0  ;;  %v4054_v50 = vmul.f32 %v7285_v6, %v7285_v6  ;;  %v4028_v62 = vadd.f32 %v5426_v20, %v4823_v37 }
0x16f9   :  { %v4023_v17 = vadd.f32 %v4823_v37, %v4022_v29  ;;  %4041 = vadd.xlane.f32.xlu1 %v4040_v49  ;;  %v4037_v25 = vsel %vm134_vm0, %v7288_v11, 0.0  ;;  %v4053_v19 = vmul.f32 %v7288_v11, %v7288_v11 }
0x16fa   :  { %4038 = vadd.xlane.f32.xlu0 %v4037_v25  ;;  %v4060_v7 = vsel %vm134_vm0, %v4054_v50, 0.0  ;;  %v7307_v18 = vadd.f32 %v4028_v62, %v7019_v54  ;;  %v4113_v54 = vld [vmem:[%s7431_s2 + $0x80] sm:$0xff] }
0x16fb   :  { %v7297_v2 = vadd.f32 %v4023_v17, %v7017_v14  ;;  %v4057_v14 = vsel %vm134_vm0, %v4053_v19, 0.0  ;;  %v5710_v22 = vpack.c.bf16 %v4114_v41, %v4113_v54 }
0x16fc   :  { %v4046_v61 = vsel %vm1203_vm14, %v7307_v18, 0.0  ;;  %v4056_v16 = vmul.f32 %v7307_v18, %v7307_v18 }
0x16fd   :  { %v4043_v48 = vsel %vm134_vm0, %v7297_v2, 0.0  ;;  %v4055_v30 = vmul.f32 %v7297_v2, %v7297_v2  ;;  %5711 = vmatprep.subr.bf16.mxu1 %v5710_v22 }
0x16fe   :  { %4061 = vadd.xlane.f32.xlu0 %v4060_v7  ;;  %4044 = vadd.xlane.f32.xlu1 %v4043_v48  ;;  %v4066_v12 = vsel %vm1203_vm14, %v4056_v16, 0.0 }
0x16ff   :  { %v4063_v58 = vsel %vm134_vm0, %v4055_v30, 0.0  ;;  %5713 = vmatpush3.bf16.msra.mxu1 %v5710_v22 }
0x1702   :  { %4058 = vadd.xlane.f32.xlu0 %v4057_v14  ;;  %4064 = vadd.xlane.f32.xlu1 %v4063_v58  ;;  %v4830_v14 = vld [vmem:[%s7431_s2 + $0xa3] ss:$0 sm:$0xff] }
0x1706   :  { %4047 = vadd.xlane.f32.xlu0 %v4046_v61 }
0x170a   :  { %4067 = vadd.xlane.f32.xlu0 %v4066_v12 }
0x1786   :  { %v4042_v32 = vpop.xlane.xlu1 %4041 }
0x1787   :  { %v4039_v24 = vpop.xlane.xlu0 %4038  ;;  %v4050_v36 = vmul.f32 0.11111111, %v4042_v32 }
0x1788   :  { %v4049_v63 = vmul.f32 0.11111111, %v4039_v24  ;;  %v4835_v24 = vld [vmem:[%s7431_s2 + $0xa4] ss:$0 sm:$0xff] }
0x1789   :  { %v4074_v26 = vmul.f32 %v4050_v36, %v4050_v36  ;;  %v4082_v9 = vsub.f32 %v7285_v6, %v4050_v36  ;;  %v4829_v6 = vld [vmem:[%s7431_s2 + $0xa2] ss:$0 sm:$0xff] }
0x178a   :  { %v4073_v8 = vmul.f32 %v4049_v63, %v4049_v63  ;;  %v4081_v37 = vsub.f32 %v7288_v11, %v4049_v63 }
0x178b   :  { %v4062_v53 = vpop.xlane.xlu0 %4061  ;;  %v4045_v51 = vpop.xlane.xlu1 %4044 }
0x178c   :  { %v4070_v47 = vmul.f32 0.11111111, %v4062_v53  ;;  %v4051_v55 = vmul.f32 0.11111111, %v4045_v51 }
0x178e   :  { %v4078_v34 = vsub.f32 %v4070_v47, %v4074_v26  ;;  %v4075_v39 = vmul.f32 %v4051_v55, %v4051_v55  ;;  %v4083_v4 = vsub.f32 %v7297_v2, %v4051_v55 }
0x178f   :  { %v4059_v23 = vpop.xlane.xlu0 %4058  ;;  %v4065_v10 = vpop.xlane.xlu1 %4064 }
0x1790   :  { %v4086_v45 = vadd.f32 1e-05, %v4078_v34  ;;  %v4069_v27 = vmul.f32 0.11111111, %v4059_v23  ;;  %v4071_v46 = vmul.f32 0.11111111, %v4065_v10 }
0x1792   :  { %6076 = vrsqrt.f32 %v4086_v45  ;;  %v4077_v1 = vsub.f32 %v4069_v27, %v4073_v8  ;;  %v4079_v59 = vsub.f32 %v4071_v46, %v4075_v39 }
0x1793   :  { %v4048_v21 = vpop.xlane.xlu0 %4047 }
0x1794   :  { %v4085_v43 = vadd.f32 1e-05, %v4077_v1  ;;  %v4087_v28 = vadd.f32 1e-05, %v4079_v59  ;;  %v4052_v42 = vmul.f32 0.11111111, %v4048_v21 }
0x1796   :  { %6078 = vrsqrt.f32 %v4085_v43  ;;  %v4076_v31 = vmul.f32 %v4052_v42, %v4052_v42  ;;  %v4084_v11 = vsub.f32 %v7307_v18, %v4052_v42 }
0x1797   :  { %6080 = vrsqrt.f32 %v4087_v28  ;;  %v4068_v5 = vpop.xlane.xlu0 %4067 }
0x1798   :  { %v4072_v0 = vmul.f32 0.11111111, %v4068_v5 }
0x179a   :  { %v4080_v57 = vsub.f32 %v4072_v0, %v4076_v31 }
0x179c   :  { %v6077_v15 = vpop.eup %6076  ;;  %v4088_v33 = vadd.f32 1e-05, %v4080_v57  ;;  %v6108_v57 = vmov 0.0|0.0  }
0x179d   :  { %v4094_v44 = vmul.f32 %v6077_v15, %v4082_v9  ;;  %5718 = vmatprep.subr.bf16.mxu1 %v6108_v57  ;;  %5725 = vmatprep.subr.bf16.mxu0 %v6108_v57  ;;  %v4484_v15 = vld [vmem:[%s7431_s2 + $0xa8] sm:$0xff]  ;;  %v4485_v9 = vld [vmem:[%s7431_s2 + $0xb0] sm:$0xff] }
0x179e   :  { %6082 = vrsqrt.f32 %v4088_v33  ;;  %v5726_v33 = vpack.c.bf16 %v4485_v9, %v4484_v15 }
0x179f   :  { %v4102_v29 = vmul.f32 %v4828_v38, %v4094_v44 }
0x17a0   :  { %v6079_v52 = vpop.eup %6078 }
0x17a1   :  { %v6081_v40 = vpop.eup %6080  ;;  %v4093_v20 = vmul.f32 %v6079_v52, %v4081_v37  ;;  %v4110_v62 = vadd.f32 %v4829_v6, %v4102_v29 }
0x17a2   :  { %v4095_v49 = vmul.f32 %v6081_v40, %v4083_v4 }
0x17a3   :  { %v4101_v17 = vmul.f32 %v4828_v38, %v4093_v20 }
0x17a4   :  { %v4103_v25 = vmul.f32 %v4828_v38, %v4095_v49 }
0x17a5   :  { %v4109_v50 = vadd.f32 %v4829_v6, %v4101_v17 }
0x17a6   :  { %v4111_v7 = vadd.f32 %v4829_v6, %v4103_v25 }
0x17a7   :  { %5431 = vmatprep.mubr.msk.f32.mxu1 %vm134_vm0, %v4109_v50 }
0x17a8   :  { %v6083_v48 = vpop.eup %6082  ;;  %5432 = vmatmul.mubr.msk.f32.vlgmr.msra.gmra.mrb[40].mxu1 %vm134_vm0, %v4110_v62 }
0x17a9   :  { %5434 = vmatprep.mubr.msk.f32.mxu1 %vm134_vm0, %v4111_v7  ;;  %v4096_v2 = vmul.f32 %v6083_v48, %v4084_v11 }
0x17ab   :  { %v4104_v19 = vmul.f32 %v4828_v38, %v4096_v2 }
0x17ad   :  { %v4112_v30 = vadd.f32 %v4829_v6, %v4104_v19 }
0x17af   :  { %5435 = vmatmul.mubr.msk.f32.gmra.mrb[42].mxu1 %vm134_vm0, %v4112_v30 }
0x17b0   :  { %5455 = vmatprep.mubr.msk.f32.mxu1 %vm6109_vm15, %v6103_v60 }
0x187b   :  { %v5433_v58 = vpop.f32.mrb[40].mxu1 }
0x187c   :  { %v4204_v61 = vadd.f32 %v5433_v58, %v4830_v14  ;;  %v4198_v18 = vpop.f32.mrb[41].mxu1 }
0x187d   :  { %v4199_v16 = vadd.f32 %v4830_v14, %v4198_v18 }
0x187e   :  { %v4218_v54 = vmax.f32 %v4204_v61, 0.0 }
0x187f   :  { %v4217_v12 = vmax.f32 %v4199_v16, 0.0 }
0x1881   :  { %5441 = vmatprep.mubr.msk.f32.mxu0 %vm134_vm0, %v4217_v12 }
0x1882   :  { %v5436_v41 = vpop.f32.mrb[42].mxu1  ;;  %5442 = vmatmul.mubr.msk.f32.vlgmr.msra.gmra.mrb[48].mxu0 %vm134_vm0, %v4218_v54 }
0x1883   :  { %v4214_v22 = vadd.f32 %v5436_v41, %v4830_v14  ;;  %v4208_v35 = vpop.f32.mrb[43].mxu1  ;;  %5727 = vmatpush3.bf16.msra.mxu0 %v5726_v33  ;;  %v4846_v33 = vld [vmem:[%s7430_s1 + $0x58] ss:$0 sm:$0xff] }
0x1884   :  { %v4209_v56 = vadd.f32 %v4830_v14, %v4208_v35 }
0x1885   :  { %v4220_v32 = vmax.f32 %v4214_v22, 0.0 }
0x1886   :  { %v4219_v3 = vmax.f32 %v4209_v56, 0.0 }
0x1888   :  { %5444 = vmatprep.mubr.msk.f32.mxu0 %vm134_vm0, %v4219_v3  ;;  %v4840_v3 = vld [vmem:[%s7431_s2 + $0xa5] ss:$0 sm:$0xff] }
0x1889   :  { %5445 = vmatmul.mubr.msk.f32.gmra.mrb[50].mxu0 %vm134_vm0, %v4220_v32 }
0x188a   :  { %5462 = vmatprep.mubr.msk.f32.mxu0 %vm6109_vm15, %v6103_v60 }
0x1955   :  { %v5443_v36 = vpop.f32.mrb[48].mxu0 }
0x1956   :  { %v4312_v63 = vadd.f32 %v5443_v36, %v4835_v24  ;;  %v4306_v53 = vpop.f32.mrb[49].mxu0  ;;  %v4841_v36 = vld [vmem:[%s7431_s2 + $0xa6] ss:$0 sm:$0xff] }
0x1957   :  { %v4307_v51 = vadd.f32 %v4835_v24, %v4306_v53 }
0x1958   :  { %v7352_v26 = vadd.f32 %v4312_v63, %v4110_v62 }
0x1959   :  { %v7354_v47 = vadd.f32 %v4307_v51, %v4109_v50 }
0x195a   :  { %v4334_v55 = vsel %vm134_vm0, %v7352_v26, 0.0  ;;  %v4348_v34 = vmul.f32 %v7352_v26, %v7352_v26 }
0x195b   :  { %4335 = vadd.xlane.f32.xlu0 %v4334_v55  ;;  %v4331_v8 = vsel %vm134_vm0, %v7354_v47, 0.0  ;;  %v4347_v23 = vmul.f32 %v7354_v47, %v7354_v47 }
0x195c   :  { %4332 = vadd.xlane.f32.xlu1 %v4331_v8  ;;  %v5446_v10 = vpop.f32.mrb[50].mxu0  ;;  %v4354_v46 = vsel %vm134_vm0, %v4348_v34, 0.0 }
0x195d   :  { %v4322_v45 = vadd.f32 %v5446_v10, %v4835_v24  ;;  %v4316_v39 = vpop.f32.mrb[51].mxu0  ;;  %v4351_v59 = vsel %vm134_vm0, %v4347_v23, 0.0 }
0x195e   :  { %v4317_v27 = vadd.f32 %v4835_v24, %v4316_v39 }
0x195f   :  { %v7365_v1 = vadd.f32 %v4322_v45, %v4112_v30  ;;  %4355 = vadd.xlane.f32.xlu0 %v4354_v46 }
0x1960   :  { %v7368_v21 = vadd.f32 %v4317_v27, %v4111_v7  ;;  %4352 = vadd.xlane.f32.xlu1 %v4351_v59 }
0x1961   :  { %v4340_v43 = vsel %vm1203_vm14, %v7365_v1, 0.0  ;;  %v4350_v42 = vmul.f32 %v7365_v1, %v7365_v1 }
0x1962   :  { %v4337_v28 = vsel %vm134_vm0, %v7368_v21, 0.0  ;;  %v4349_v5 = vmul.f32 %v7368_v21, %v7368_v21 }
0x1963   :  { %4341 = vadd.xlane.f32.xlu0 %v4340_v43  ;;  %v4360_v31 = vsel %vm1203_vm14, %v4350_v42, 0.0 }
0x1964   :  { %4338 = vadd.xlane.f32.xlu1 %v4337_v28  ;;  %v4357_v0 = vsel %vm134_vm0, %v4349_v5, 0.0  ;;  %v4566_v5 = vld [vmem:[%s7430_s1 + $0x50] sm:$0xff] }
0x1967   :  { %4361 = vadd.xlane.f32.xlu0 %v4360_v31  ;;  %v5729_v31 = vpack.c.bf16 %v4566_v5, %v4565_v13 }
0x1968   :  { %4358 = vadd.xlane.f32.xlu1 %v4357_v0  ;;  %v4844_v0 = vld [vmem:[%s7431_s2 + $0xb8] ss:$0 sm:$0xff] }
0x19e8   :  { %v4336_v44 = vpop.xlane.xlu0 %4335 }
0x19e9   :  { %v4344_v37 = vmul.f32 0.11111111, %v4336_v44  ;;  %v4333_v38 = vpop.xlane.xlu1 %4332 }
0x19ea   :  { %v4343_v52 = vmul.f32 0.11111111, %v4333_v38 }
0x19eb   :  { %v4368_v40 = vmul.f32 %v4344_v37, %v4344_v37  ;;  %v4376_v22 = vsub.f32 %v7352_v26, %v4344_v37 }
0x19ec   :  { %v4356_v4 = vpop.xlane.xlu0 %4355  ;;  %v4367_v49 = vmul.f32 %v4343_v52, %v4343_v52  ;;  %v4375_v56 = vsub.f32 %v7354_v47, %v4343_v52 }
0x19ed   :  { %v4364_v20 = vmul.f32 0.11111111, %v4356_v4  ;;  %v4353_v29 = vpop.xlane.xlu1 %4352 }
0x19ee   :  { %v4363_v6 = vmul.f32 0.11111111, %v4353_v29 }
0x19ef   :  { %v4372_v17 = vsub.f32 %v4364_v20, %v4368_v40 }
0x19f0   :  { %v4371_v25 = vsub.f32 %v4363_v6, %v4367_v49  ;;  %v4342_v50 = vpop.xlane.xlu0 %4341 }
0x19f1   :  { %v4380_v62 = vadd.f32 1e-05, %v4372_v17  ;;  %v4346_v11 = vmul.f32 0.11111111, %v4342_v50  ;;  %v4339_v7 = vpop.xlane.xlu1 %4338 }
0x19f2   :  { %v4379_v48 = vadd.f32 1e-05, %v4371_v25  ;;  %v4345_v2 = vmul.f32 0.11111111, %v4339_v7 }
0x19f3   :  { %6084 = vrsqrt.f32 %v4380_v62  ;;  %v4370_v30 = vmul.f32 %v4346_v11, %v4346_v11  ;;  %v4378_v26 = vsub.f32 %v7365_v1, %v4346_v11  ;;  %v4407_v1 = vld [vmem:[%s7430_s1 + $0x80] sm:$0xff] }
0x19f4   :  { %6086 = vrsqrt.f32 %v4379_v48  ;;  %v4362_v19 = vpop.xlane.xlu0 %4361  ;;  %v4369_v61 = vmul.f32 %v4345_v2, %v4345_v2  ;;  %v4377_v47 = vsub.f32 %v7368_v21, %v4345_v2 }
0x19f5   :  { %v4366_v14 = vmul.f32 0.11111111, %v4362_v19  ;;  %v4359_v58 = vpop.xlane.xlu1 %4358 }
0x19f6   :  { %v4365_v18 = vmul.f32 0.11111111, %v4359_v58 }
0x19f7   :  { %v4374_v16 = vsub.f32 %v4366_v14, %v4370_v30 }
0x19f8   :  { %v4373_v12 = vsub.f32 %v4365_v18, %v4369_v61 }
0x19f9   :  { %v4382_v54 = vadd.f32 1e-05, %v4374_v16 }
0x19fa   :  { %v4381_v41 = vadd.f32 1e-05, %v4373_v12 }
0x19fb   :  { %6088 = vrsqrt.f32 %v4382_v54 }
0x19fc   :  { %6090 = vrsqrt.f32 %v4381_v41 }
0x19fd   :  { %v6085_v35 = vpop.eup %6084 }
0x19fe   :  { %v6087_v32 = vpop.eup %6086  ;;  %v4388_v24 = vmul.f32 %v6085_v35, %v4376_v22 }
0x19ff   :  { %v4387_v63 = vmul.f32 %v6087_v32, %v4375_v56 }
0x1a00   :  { %v4396_v53 = vmul.f32 %v4840_v3, %v4388_v24 }
0x1a01   :  { %v4395_v51 = vmul.f32 %v4840_v3, %v4387_v63 }
0x1a02   :  { %v4404_v55 = vadd.f32 %v4841_v36, %v4396_v53 }
0x1a03   :  { %v4403_v34 = vadd.f32 %v4841_v36, %v4395_v51 }
0x1a05   :  { %v6089_v8 = vpop.eup %6088  ;;  %v5719_v23 = vpack.c.bf16 %v4404_v55, %v4403_v34 }
0x1a06   :  { %v6091_v10 = vpop.eup %6090  ;;  %v4390_v45 = vmul.f32 %v6089_v8, %v4378_v26 }
0x1a07   :  { %v4389_v39 = vmul.f32 %v6091_v10, %v4377_v47  ;;  %5720 = vmatpush3.bf16.msra.mxu1 %v5719_v23 }
0x1a08   :  { %5721 = vmatprep.subr.bf16.mxu1 %v6108_v57  ;;  %v4398_v27 = vmul.f32 %v4840_v3, %v4390_v45 }
0x1a09   :  { %v4397_v46 = vmul.f32 %v4840_v3, %v4389_v39 }
0x1a0a   :  { %v4406_v59 = vadd.f32 %v4841_v36, %v4398_v27 }
0x1a0b   :  { %v4405_v43 = vadd.f32 %v4841_v36, %v4397_v46 }
0x1a0d   :  { %v5722_v28 = vpack.c.bf16 %v4406_v59, %v4405_v43 }
0x1a0f   :  { %5724 = vmatpush3.bf16.msk.msra.mxu1 %vm6425_vm13, %v5722_v28 }
0x1a10   :  { %5728 = vmatprep.subr.bf16.mxu1 %v6108_v57 }
0x1a12   :  { %5456 = vmatmul.mubr.msk.f32.vlgmr.msra.gmra.mrb[44].mxu1 %vm361_vm9, %v4407_v1 }
0x1a13   :  { %5469 = vmatprep.mubr.msk.f32.mxu1 %vm6109_vm15, %v6103_v60  ;;  %5730 = vmatpush3.bf16.msra.mxu1 %v5729_v31 }
0x1ae5   :  { %v4480_v21 = vpop.f32.mrb[44].mxu1 }
0x1ae6   :  { %v5457_v42 = vpop.f32.mrb[45].mxu1  ;;  %5463 = vmatmul.mubr.msk.f32.vlgmr.msra.gmra.mrb[52].mxu0 %vm134_vm0, %v4480_v21 }
0x1bb9   :  { %v4560_v57 = vpop.f32.mrb[52].mxu0 }
0x1bba   :  { %v4561_v60 = vadd.f32 %v4844_v0, %v4560_v57  ;;  %v5464_v15 = vpop.f32.mrb[53].mxu0 }
0x1bbc   :  { %v4564_v9 = vmax.f32 %v4561_v60, 0.0 }
0x1bbe   :  { %5470 = vmatmul.mubr.msk.f32.vlgmr.msra.gmra.mrb[46].mxu1 %vm134_vm0, %v4564_v9 }
0x1c91   :  { %v4641_v44 = vpop.f32.mrb[46].mxu1 }
0x1c92   :  { %v4642_v37 = vadd.f32 %v4846_v33, %v4641_v44  ;;  %v5471_v38 = vpop.f32.mrb[47].mxu1 }
0x1c94   :  { %4645 = vst [vmem:[%s7432_s3] sm:$0xff] %v4642_v37 }

</bundles_post_ra>
